<compile_context>
chip_gen: v7x
topology: tpu7x:2x2x1
jax: 0.10.0
libtpu: 0.0.40
codegen_flags: <defaults>
</compile_context>

<pallas_src>
import functools

import jax
import jax.numpy as jnp
from jax.experimental import pallas as pl
from jax.experimental.pallas import tpu as pltpu

INPUT_SIZE = 23
HIDDEN = 100
NUM_CLASSES = 4

H_PAD = 128                   # per-direction hidden padded to a full lane width
D_PAD = 128                   # in-kernel lane padding of the feature dim
OUT_PAD = 128                 # lane-padded logits (sliced to 4 in the wrapper)
SUBLANE = 8
NDIR = 2
GATES = 3
H2 = NDIR * H_PAD             # 256: fused (fw|bw) hidden width
GI_W = NDIR * GATES * H_PAD   # 768: fused input-projection width


def _sigmoid_via_tanh(x):
    # sigmoid(x) == 0.5*tanh(0.5*x)+0.5 : a single native EUP tanh (shorter
    # serial chain than exp + reciprocal).
    return 0.5 * jnp.tanh(0.5 * x) + 0.5


def bigru_fc_kernel(x_ref, wi_ref, wh_ref, bi_ref, bhn_ref, fcw_ref, fcb_ref,
                    out_ref, xp_ref, gi_ref, *, T, Bp):
    # x_ref:   (T*Bp, 23)      time-major (forward order), batch zero-padded
    # wi_ref:  (D_PAD, 768)    [fw: r|z|n | bw: r|z|n], 128 lanes per gate
    # wh_ref:  (256, 768)      block-diagonal; gate chunks of 256 lanes = [fw|bw]
    # bi_ref:  (1, 768)        b_ih (all gates) + b_hh (r,z) pre-folded
    # bhn_ref: (1, 256)        [b_hn_fw | b_hn_bw] (stays inside the r*(...) term)
    # fcw_ref: (256, OUT_PAD)  fc weight laid out like the fused hidden
    # fcb_ref: (1, OUT_PAD)
    # out_ref: (Bp, OUT_PAD)   lane-padded logits
    # xp_ref:  VMEM scratch (T*Bp, D_PAD)  lane-padded copy of x
    # gi_ref:  VMEM scratch (T*Bp, 768)    hoisted input projections
    D = x_ref.shape[1]
    assert x_ref.shape[0] == T * Bp, (x_ref.shape, T, Bp)   # trace-time guard

    # Lane-pad x once inside VMEM, then ONE hoisted MXU matmul computes every
    # timestep's input projection for BOTH directions (x read exactly once).
    xp_ref[...] = jnp.zeros_like(xp_ref)
    xp_ref[:, 0:D] = x_ref[...]
    gi_ref[...] = (
        jnp.dot(xp_ref[...], wi_ref[...], preferred_element_type=jnp.float32)
        + bi_ref[...]
    )

    wh = wh_ref[...]            # loop-invariant, hoisted
    bhn = bhn_ref[...]
    # Fused hidden state: lanes [0:128] = forward h, lanes [128:256] = backward h.
    h = jnp.zeros((Bp, H2), jnp.float32)

    # T is small & static -> full unroll so the scheduler overlaps the fw/bw chains.
    for t in range(T):
        rf = t * Bp                 # forward direction reads time t
        rb = (T - 1 - t) * Bp       # backward direction reads time T-1-t
        gi_f = gi_ref[rf:rf + Bp, 0:GATES * H_PAD]
        gi_b = gi_ref[rb:rb + Bp, GATES * H_PAD:GI_W]
        # Per-gate (fw|bw) 256-lane inputs; independent of h -> off critical path.
        gr = jnp.concatenate([gi_f[:, 0:H_PAD], gi_b[:, 0:H_PAD]], axis=-1)
        gz = jnp.concatenate([gi_f[:, H_PAD:2 * H_PAD],
                              gi_b[:, H_PAD:2 * H_PAD]], axis=-1)
        gn = jnp.concatenate([gi_f[:, 2 * H_PAD:3 * H_PAD],
                              gi_b[:, 2 * H_PAD:3 * H_PAD]], axis=-1)

        # Single block-diagonal hidden->hidden matmul: both directions, all 3 gates.
        gh = jnp.dot(h, wh, preferred_element_type=jnp.float32)       # (Bp, 768)
        r = _sigmoid_via_tanh(gr + gh[:, 0:H2])
        z = _sigmoid_via_tanh(gz + gh[:, H2:2 * H2])                  # off crit path
        n = jnp.tanh(gn + r * (gh[:, 2 * H2:3 * H2] + bhn))
        h = n + z * (h - n)

    # Fused final Linear(200,4): one (Bp,256)@(256,OUT_PAD) dot, no 2nd kernel.
    out_ref[...] = (
        jnp.dot(h, fcw_ref[...], preferred_element_type=jnp.float32) + fcb_ref[...]
    )


def init_params(key):
    """Deterministic init mimicking PyTorch's uniform(-1/sqrt(H), 1/sqrt(H))."""
    kgru = 1.0 / float(jnp.sqrt(jnp.float32(HIDDEN)))
    kfc = 1.0 / float(jnp.sqrt(jnp.float32(2 * HIDDEN)))
    keys = jax.random.split(key, 10)

    def u(k_, shape, bound):
        return jax.random.uniform(k_, shape, jnp.float32, -bound, bound)

    return dict(
        # gate order (r, z, n); PyTorch layout weight_ih (3H, D) -> (3, H, D)
        w_ih_f=u(keys[0], (3, HIDDEN, INPUT_SIZE), kgru),
        w_hh_f=u(keys[1], (3, HIDDEN, HIDDEN), kgru),
        b_ih_f=u(keys[2], (3, HIDDEN), kgru),
        b_hh_f=u(keys[3], (3, HIDDEN), kgru),
        w_ih_b=u(keys[4], (3, HIDDEN, INPUT_SIZE), kgru),
        w_hh_b=u(keys[5], (3, HIDDEN, HIDDEN), kgru),
        b_ih_b=u(keys[6], (3, HIDDEN), kgru),
        b_hh_b=u(keys[7], (3, HIDDEN), kgru),
        fc_w=u(keys[8], (NUM_CLASSES, 2 * HIDDEN), kfc),
        fc_b=u(keys[9], (NUM_CLASSES,), kfc),
    )


def _pack_params(p):
    """Pad + fuse both directions' weights for the single fused kernel."""
    wi = jnp.zeros((D_PAD, GI_W), jnp.float32)      # GI layout: dir-major, gate chunks
    bi = jnp.zeros((1, GI_W), jnp.float32)
    wh = jnp.zeros((H2, GI_W), jnp.float32)         # GH layout: gate-major, (fw|bw) chunks
    bhn = jnp.zeros((1, H2), jnp.float32)
    for d, sfx in enumerate(("f", "b")):
        w_ih, w_hh = p[f"w_ih_{sfx}"], p[f"w_hh_{sfx}"]
        b_ih, b_hh = p[f"b_ih_{sfx}"], p[f"b_hh_{sfx}"]
        for g in range(GATES):
            ci = (d * GATES + g) * H_PAD            # GI column block for this dir+gate
            wi = wi.at[0:INPUT_SIZE, ci:ci + HIDDEN].set(w_ih[g].T)
            ch = g * H2 + d * H_PAD                 # GH column block (gate chunk, dir half)
            rh = d * H_PAD                          # Wh rows touched by this dir's h lanes
            wh = wh.at[rh:rh + HIDDEN, ch:ch + HIDDEN].set(w_hh[g].T)
        # Fold b_ih (all gates) + b_hh (r,z) into the hoisted GI; keep only b_hn.
        base = d * GATES * H_PAD
        bi = bi.at[0, base + 0 * H_PAD: base + 0 * H_PAD + HIDDEN].set(b_ih[0] + b_hh[0])
        bi = bi.at[0, base + 1 * H_PAD: base + 1 * H_PAD + HIDDEN].set(b_ih[1] + b_hh[1])
        bi = bi.at[0, base + 2 * H_PAD: base + 2 * H_PAD + HIDDEN].set(b_ih[2])
        bhn = bhn.at[0, d * H_PAD: d * H_PAD + HIDDEN].set(b_hh[2])
    # fc: logits = h_both @ fcw + fcb, with fcw rows laid out like the fused hidden.
    fcw = jnp.zeros((H2, OUT_PAD), jnp.float32)
    fcw = fcw.at[0:HIDDEN, 0:NUM_CLASSES].set(p["fc_w"][:, 0:HIDDEN].T)
    fcw = fcw.at[H_PAD:H_PAD + HIDDEN, 0:NUM_CLASSES].set(p["fc_w"][:, HIDDEN:2 * HIDDEN].T)
    fcb = jnp.zeros((1, OUT_PAD), jnp.float32).at[0, 0:NUM_CLASSES].set(p["fc_b"])
    return wi, wh, bi, bhn, fcw, fcb


def gru_forward(x, p):
    """x: (B, T, D) float-castable -> (B, 4) float32 (matches the PyTorch forward)."""
    x = x.astype(jnp.float32)                        # mirrors input.float()
    B, T, D = x.shape
    Bp = max(SUBLANE, ((B + SUBLANE - 1) // SUBLANE) * SUBLANE)

    # Time-major, batch zero-padded.  Feature dim left at 23 in HBM (no flip,
    # no duplication, no 128-pad in HBM) -> minimal wrapper ops & DMA bytes.
    x_tm = jnp.transpose(x, (1, 0, 2))                       # (T, B, D)
    x_tm = jnp.pad(x_tm, ((0, 0), (0, Bp - B), (0, 0)))      # (T, Bp, D)
    x_flat = x_tm.reshape(T * Bp, D)

    wi, wh, bi, bhn, fcw, fcb = _pack_params(p)

    vmem = pl.BlockSpec(memory_space=pltpu.MemorySpace.VMEM)
    out_pad = pl.pallas_call(
        functools.partial(bigru_fc_kernel, T=T, Bp=Bp),
        out_shape=jax.ShapeDtypeStruct((Bp, OUT_PAD), jnp.float32),
        in_specs=[vmem] * 7,
        out_specs=vmem,
        scratch_shapes=[
            pltpu.VMEM((T * Bp, D_PAD), jnp.float32),   # lane-padded x
            pltpu.VMEM((T * Bp, GI_W), jnp.float32),    # hoisted input projections
        ],
        # TODO(synk): for large T*Bp (~>20k rows) the GI scratch would blow the
        # scoped-VMEM limit (and v7x's 64 MiB VMEM): chunk GI over T with
        # pltpu.emit_pipeline instead of one resident scratch.
    )(x_flat, wi, wh, bi, bhn, fcw, fcb)

    return out_pad[:B, :NUM_CLASSES]


def gru_ref(x, p):
    """Pure-JAX reference with PyTorch nn.GRU semantics (for verification)."""
    x = x.astype(jnp.float32)
    B, T, D = x.shape

    def step(xt, h, w_ih, w_hh, b_ih, b_hh):
        r = jax.nn.sigmoid(xt @ w_ih[0].T + b_ih[0] + h @ w_hh[0].T + b_hh[0])
        z = jax.nn.sigmoid(xt @ w_ih[1].T + b_ih[1] + h @ w_hh[1].T + b_hh[1])
        n = jnp.tanh(xt @ w_ih[2].T + b_ih[2] + r * (h @ w_hh[2].T + b_hh[2]))
        return (1.0 - z) * n + z * h

    h_f = jnp.zeros((B, HIDDEN), jnp.float32)
    h_b = jnp.zeros((B, HIDDEN), jnp.float32)
    for t in range(T):
        h_f = step(x[:, t, :], h_f, p["w_ih_f"], p["w_hh_f"], p["b_ih_f"], p["b_hh_f"])
        h_b = step(x[:, T - 1 - t, :], h_b, p["w_ih_b"], p["w_hh_b"], p["b_ih_b"], p["b_hh_b"])
    h_cat = jnp.concatenate([h_f, h_b], axis=-1)
    return h_cat @ p["fc_w"].T + p["fc_b"]


if __name__ == "__main__":
    key = jax.random.PRNGKey(0)
    kx, kp = jax.random.split(key)

    B, T = 2, 8
    x = jax.random.normal(kx, (B, T, INPUT_SIZE), jnp.float32)
    params = init_params(kp)

    out = jax.block_until_ready(gru_forward(x, params))

    ref = gru_ref(x, params)
    assert out.shape == (B, NUM_CLASSES)
    assert jnp.allclose(out, ref, atol=1e-3, rtol=1e-3), (out, ref)

    print("KERNEL_OK")
</pallas_src>

<mosaic_0001>
module attributes {stable_mosaic.version = 11 : i64} {
  func.func @bigru_fc_kernel(%arg0: memref<64x23xf32, #tpu.memory_space<vmem>>, %arg1: memref<128x768xf32, #tpu.memory_space<vmem>>, %arg2: memref<256x768xf32, #tpu.memory_space<vmem>>, %arg3: memref<1x768xf32, #tpu.memory_space<vmem>>, %arg4: memref<1x256xf32, #tpu.memory_space<vmem>>, %arg5: memref<256x128xf32, #tpu.memory_space<vmem>>, %arg6: memref<1x128xf32, #tpu.memory_space<vmem>>, %arg7: memref<8x128xf32, #tpu.memory_space<vmem>>, %arg8: memref<64x128xf32, #tpu.memory_space<vmem>>, %arg9: memref<64x768xf32, #tpu.memory_space<vmem>>) attributes {dimension_semantics = [], scalar_prefetch = 0 : i64, scratch_operands = 2 : i64, tpu.core_type = #tpu.core_type<tc>} {
    %cst = arith.constant 0.000000e+00 : f32
    %0 = vector.broadcast %cst : f32 to vector<64x128xf32>
    %c0 = arith.constant 0 : index
    %c0_0 = arith.constant 0 : index
    %1 = vector.load %arg8[%c0, %c0_0] : memref<64x128xf32, #tpu.memory_space<vmem>>, vector<64x128xf32>
    tpu.vector_store %arg8[%c0, %c0_0], %0 {strides = array<i32>} : memref<64x128xf32, #tpu.memory_space<vmem>>, vector<64x128xf32>,
    %c0_1 = arith.constant 0 : index
    %c0_2 = arith.constant 0 : index
    %2 = vector.load %arg0[%c0_1, %c0_2] : memref<64x23xf32, #tpu.memory_space<vmem>>, vector<64x23xf32>
    %c0_3 = arith.constant 0 : index
    %c0_4 = arith.constant 0 : index
    %3 = vector.load %arg8[%c0_3, %c0_4] : memref<64x128xf32, #tpu.memory_space<vmem>>, vector<64x23xf32>
    tpu.vector_store %arg8[%c0_3, %c0_4], %2 {strides = array<i32>} : memref<64x128xf32, #tpu.memory_space<vmem>>, vector<64x23xf32>,
    %c0_5 = arith.constant 0 : index
    %c0_6 = arith.constant 0 : index
    %4 = vector.load %arg8[%c0_5, %c0_6] : memref<64x128xf32, #tpu.memory_space<vmem>>, vector<64x128xf32>
    %c0_7 = arith.constant 0 : index
    %c0_8 = arith.constant 0 : index
    %5 = vector.load %arg1[%c0_7, %c0_8] : memref<128x768xf32, #tpu.memory_space<vmem>>, vector<128x768xf32>
    %cst_9 = arith.constant dense<0.000000e+00> : vector<64x768xf32>
    %6 = tpu.matmul %4, %5, %cst_9 {dimension_numbers = #tpu.dot_dimension_numbers<[1], [0], [0], [1], [0, 0, 1, 1], [], []>} : vector<64x128xf32>, vector<128x768xf32>, vector<64x768xf32> -> vector<64x768xf32>
    %c0_10 = arith.constant 0 : index
    %c0_11 = arith.constant 0 : index
    %7 = vector.load %arg3[%c0_10, %c0_11] : memref<1x768xf32, #tpu.memory_space<vmem>>, vector<1x768xf32>
    %8 = vector.broadcast %7 : vector<1x768xf32> to vector<64x768xf32>
    %9 = arith.addf %6, %8 : vector<64x768xf32>
    %c0_12 = arith.constant 0 : index
    %c0_13 = arith.constant 0 : index
    %10 = vector.load %arg9[%c0_12, %c0_13] : memref<64x768xf32, #tpu.memory_space<vmem>>, vector<64x768xf32>
    tpu.vector_store %arg9[%c0_12, %c0_13], %9 {strides = array<i32>} : memref<64x768xf32, #tpu.memory_space<vmem>>, vector<64x768xf32>,
    %c0_14 = arith.constant 0 : index
    %c0_15 = arith.constant 0 : index
    %11 = vector.load %arg2[%c0_14, %c0_15] : memref<256x768xf32, #tpu.memory_space<vmem>>, vector<256x768xf32>
    %c0_16 = arith.constant 0 : index
    %c0_17 = arith.constant 0 : index
    %12 = vector.load %arg4[%c0_16, %c0_17] : memref<1x256xf32, #tpu.memory_space<vmem>>, vector<1x256xf32>
    %cst_18 = arith.constant 0.000000e+00 : f32
    %13 = vector.broadcast %cst_18 : f32 to vector<8x256xf32>
    %c0_19 = arith.constant 0 : index
    %c0_20 = arith.constant 0 : index
    %14 = vector.load %arg9[%c0_19, %c0_20] : memref<64x768xf32, #tpu.memory_space<vmem>>, vector<8x384xf32>
    %c56 = arith.constant 56 : index
    %c384 = arith.constant 384 : index
    %15 = vector.load %arg9[%c56, %c384] : memref<64x768xf32, #tpu.memory_space<vmem>>, vector<8x384xf32>
    %16 = vector.extract_strided_slice %14 {offsets = [0, 0], sizes = [8, 128], strides = [1, 1]} : vector<8x384xf32> to vector<8x128xf32>
    %17 = vector.extract_strided_slice %15 {offsets = [0, 0], sizes = [8, 128], strides = [1, 1]} : vector<8x384xf32> to vector<8x128xf32>
    %18 = tpu.concatenate %16, %17 in 1 : vector<8x128xf32>, vector<8x128xf32> -> vector<8x256xf32>
    %19 = vector.extract_strided_slice %14 {offsets = [0, 128], sizes = [8, 128], strides = [1, 1]} : vector<8x384xf32> to vector<8x128xf32>
    %20 = vector.extract_strided_slice %15 {offsets = [0, 128], sizes = [8, 128], strides = [1, 1]} : vector<8x384xf32> to vector<8x128xf32>
    %21 = tpu.concatenate %19, %20 in 1 : vector<8x128xf32>, vector<8x128xf32> -> vector<8x256xf32>
    %22 = vector.extract_strided_slice %14 {offsets = [0, 256], sizes = [8, 128], strides = [1, 1]} : vector<8x384xf32> to vector<8x128xf32>
    %23 = vector.extract_strided_slice %15 {offsets = [0, 256], sizes = [8, 128], strides = [1, 1]} : vector<8x384xf32> to vector<8x128xf32>
    %24 = tpu.concatenate %22, %23 in 1 : vector<8x128xf32>, vector<8x128xf32> -> vector<8x256xf32>
    %cst_21 = arith.constant dense<0.000000e+00> : vector<8x768xf32>
    %25 = tpu.matmul %13, %11, %cst_21 {dimension_numbers = #tpu.dot_dimension_numbers<[1], [0], [0], [1], [0, 0, 1, 1], [], []>} : vector<8x256xf32>, vector<256x768xf32>, vector<8x768xf32> -> vector<8x768xf32>
    %26 = vector.extract_strided_slice %25 {offsets = [0, 0], sizes = [8, 256], strides = [1, 1]} : vector<8x768xf32> to vector<8x256xf32>
    %27 = arith.addf %18, %26 : vector<8x256xf32>
    %cst_22 = arith.constant 5.000000e-01 : f32
    %28 = vector.broadcast %cst_22 : f32 to vector<8x256xf32>
    %29 = arith.mulf %28, %27 : vector<8x256xf32>
    %30 = math.tanh %29 : vector<8x256xf32>
    %cst_23 = arith.constant 5.000000e-01 : f32
    %31 = vector.broadcast %cst_23 : f32 to vector<8x256xf32>
    %32 = arith.mulf %31, %30 : vector<8x256xf32>
    %cst_24 = arith.constant 5.000000e-01 : f32
    %33 = vector.broadcast %cst_24 : f32 to vector<8x256xf32>
    %34 = arith.addf %32, %33 : vector<8x256xf32>
    %35 = vector.extract_strided_slice %25 {offsets = [0, 256], sizes = [8, 256], strides = [1, 1]} : vector<8x768xf32> to vector<8x256xf32>
    %36 = arith.addf %21, %35 : vector<8x256xf32>
    %cst_25 = arith.constant 5.000000e-01 : f32
    %37 = vector.broadcast %cst_25 : f32 to vector<8x256xf32>
    %38 = arith.mulf %37, %36 : vector<8x256xf32>
    %39 = math.tanh %38 : vector<8x256xf32>
    %cst_26 = arith.constant 5.000000e-01 : f32
    %40 = vector.broadcast %cst_26 : f32 to vector<8x256xf32>
    %41 = arith.mulf %40, %39 : vector<8x256xf32>
    %cst_27 = arith.constant 5.000000e-01 : f32
    %42 = vector.broadcast %cst_27 : f32 to vector<8x256xf32>
    %43 = arith.addf %41, %42 : vector<8x256xf32>
    %44 = vector.extract_strided_slice %25 {offsets = [0, 512], sizes = [8, 256], strides = [1, 1]} : vector<8x768xf32> to vector<8x256xf32>
    %45 = vector.broadcast %12 : vector<1x256xf32> to vector<8x256xf32>
    %46 = arith.addf %44, %45 : vector<8x256xf32>
    %47 = arith.mulf %34, %46 : vector<8x256xf32>
    %48 = arith.addf %24, %47 : vector<8x256xf32>
    %49 = math.tanh %48 : vector<8x256xf32>
    %50 = arith.subf %13, %49 : vector<8x256xf32>
    %51 = arith.mulf %43, %50 : vector<8x256xf32>
    %52 = arith.addf %49, %51 : vector<8x256xf32>
    %c8 = arith.constant 8 : index
    %c0_28 = arith.constant 0 : index
    %53 = vector.load %arg9[%c8, %c0_28] : memref<64x768xf32, #tpu.memory_space<vmem>>, vector<8x384xf32>
    %c48 = arith.constant 48 : index
    %c384_29 = arith.constant 384 : index
    %54 = vector.load %arg9[%c48, %c384_29] : memref<64x768xf32, #tpu.memory_space<vmem>>, vector<8x384xf32>
    %55 = vector.extract_strided_slice %53 {offsets = [0, 0], sizes = [8, 128], strides = [1, 1]} : vector<8x384xf32> to vector<8x128xf32>
    %56 = vector.extract_strided_slice %54 {offsets = [0, 0], sizes = [8, 128], strides = [1, 1]} : vector<8x384xf32> to vector<8x128xf32>
    %57 = tpu.concatenate %55, %56 in 1 : vector<8x128xf32>, vector<8x128xf32> -> vector<8x256xf32>
    %58 = vector.extract_strided_slice %53 {offsets = [0, 128], sizes = [8, 128], strides = [1, 1]} : vector<8x384xf32> to vector<8x128xf32>
    %59 = vector.extract_strided_slice %54 {offsets = [0, 128], sizes = [8, 128], strides = [1, 1]} : vector<8x384xf32> to vector<8x128xf32>
    %60 = tpu.concatenate %58, %59 in 1 : vector<8x128xf32>, vector<8x128xf32> -> vector<8x256xf32>
    %61 = vector.extract_strided_slice %53 {offsets = [0, 256], sizes = [8, 128], strides = [1, 1]} : vector<8x384xf32> to vector<8x128xf32>
    %62 = vector.extract_strided_slice %54 {offsets = [0, 256], sizes = [8, 128], strides = [1, 1]} : vector<8x384xf32> to vector<8x128xf32>
    %63 = tpu.concatenate %61, %62 in 1 : vector<8x128xf32>, vector<8x128xf32> -> vector<8x256xf32>
    %cst_30 = arith.constant dense<0.000000e+00> : vector<8x768xf32>
    %64 = tpu.matmul %52, %11, %cst_30 {dimension_numbers = #tpu.dot_dimension_numbers<[1], [0], [0], [1], [0, 0, 1, 1], [], []>} : vector<8x256xf32>, vector<256x768xf32>, vector<8x768xf32> -> vector<8x768xf32>
    %65 = vector.extract_strided_slice %64 {offsets = [0, 0], sizes = [8, 256], strides = [1, 1]} : vector<8x768xf32> to vector<8x256xf32>
    %66 = arith.addf %57, %65 : vector<8x256xf32>
    %cst_31 = arith.constant 5.000000e-01 : f32
    %67 = vector.broadcast %cst_31 : f32 to vector<8x256xf32>
    %68 = arith.mulf %67, %66 : vector<8x256xf32>
    %69 = math.tanh %68 : vector<8x256xf32>
    %cst_32 = arith.constant 5.000000e-01 : f32
    %70 = vector.broadcast %cst_32 : f32 to vector<8x256xf32>
    %71 = arith.mulf %70, %69 : vector<8x256xf32>
    %cst_33 = arith.constant 5.000000e-01 : f32
    %72 = vector.broadcast %cst_33 : f32 to vector<8x256xf32>
    %73 = arith.addf %71, %72 : vector<8x256xf32>
    %74 = vector.extract_strided_slice %64 {offsets = [0, 256], sizes = [8, 256], strides = [1, 1]} : vector<8x768xf32> to vector<8x256xf32>
    %75 = arith.addf %60, %74 : vector<8x256xf32>
    %cst_34 = arith.constant 5.000000e-01 : f32
    %76 = vector.broadcast %cst_34 : f32 to vector<8x256xf32>
    %77 = arith.mulf %76, %75 : vector<8x256xf32>
    %78 = math.tanh %77 : vector<8x256xf32>
    %cst_35 = arith.constant 5.000000e-01 : f32
    %79 = vector.broadcast %cst_35 : f32 to vector<8x256xf32>
    %80 = arith.mulf %79, %78 : vector<8x256xf32>
    %cst_36 = arith.constant 5.000000e-01 : f32
    %81 = vector.broadcast %cst_36 : f32 to vector<8x256xf32>
    %82 = arith.addf %80, %81 : vector<8x256xf32>
    %83 = vector.extract_strided_slice %64 {offsets = [0, 512], sizes = [8, 256], strides = [1, 1]} : vector<8x768xf32> to vector<8x256xf32>
    %84 = vector.broadcast %12 : vector<1x256xf32> to vector<8x256xf32>
    %85 = arith.addf %83, %84 : vector<8x256xf32>
    %86 = arith.mulf %73, %85 : vector<8x256xf32>
    %87 = arith.addf %63, %86 : vector<8x256xf32>
    %88 = math.tanh %87 : vector<8x256xf32>
    %89 = arith.subf %52, %88 : vector<8x256xf32>
    %90 = arith.mulf %82, %89 : vector<8x256xf32>
    %91 = arith.addf %88, %90 : vector<8x256xf32>
    %c16 = arith.constant 16 : index
    %c0_37 = arith.constant 0 : index
    %92 = vector.load %arg9[%c16, %c0_37] : memref<64x768xf32, #tpu.memory_space<vmem>>, vector<8x384xf32>
    %c40 = arith.constant 40 : index
    %c384_38 = arith.constant 384 : index
    %93 = vector.load %arg9[%c40, %c384_38] : memref<64x768xf32, #tpu.memory_space<vmem>>, vector<8x384xf32>
    %94 = vector.extract_strided_slice %92 {offsets = [0, 0], sizes = [8, 128], strides = [1, 1]} : vector<8x384xf32> to vector<8x128xf32>
    %95 = vector.extract_strided_slice %93 {offsets = [0, 0], sizes = [8, 128], strides = [1, 1]} : vector<8x384xf32> to vector<8x128xf32>
    %96 = tpu.concatenate %94, %95 in 1 : vector<8x128xf32>, vector<8x128xf32> -> vector<8x256xf32>
    %97 = vector.extract_strided_slice %92 {offsets = [0, 128], sizes = [8, 128], strides = [1, 1]} : vector<8x384xf32> to vector<8x128xf32>
    %98 = vector.extract_strided_slice %93 {offsets = [0, 128], sizes = [8, 128], strides = [1, 1]} : vector<8x384xf32> to vector<8x128xf32>
    %99 = tpu.concatenate %97, %98 in 1 : vector<8x128xf32>, vector<8x128xf32> -> vector<8x256xf32>
    %100 = vector.extract_strided_slice %92 {offsets = [0, 256], sizes = [8, 128], strides = [1, 1]} : vector<8x384xf32> to vector<8x128xf32>
    %101 = vector.extract_strided_slice %93 {offsets = [0, 256], sizes = [8, 128], strides = [1, 1]} : vector<8x384xf32> to vector<8x128xf32>
    %102 = tpu.concatenate %100, %101 in 1 : vector<8x128xf32>, vector<8x128xf32> -> vector<8x256xf32>
    %cst_39 = arith.constant dense<0.000000e+00> : vector<8x768xf32>
    %103 = tpu.matmul %91, %11, %cst_39 {dimension_numbers = #tpu.dot_dimension_numbers<[1], [0], [0], [1], [0, 0, 1, 1], [], []>} : vector<8x256xf32>, vector<256x768xf32>, vector<8x768xf32> -> vector<8x768xf32>
    %104 = vector.extract_strided_slice %103 {offsets = [0, 0], sizes = [8, 256], strides = [1, 1]} : vector<8x768xf32> to vector<8x256xf32>
    %105 = arith.addf %96, %104 : vector<8x256xf32>
    %cst_40 = arith.constant 5.000000e-01 : f32
    %106 = vector.broadcast %cst_40 : f32 to vector<8x256xf32>
    %107 = arith.mulf %106, %105 : vector<8x256xf32>
    %108 = math.tanh %107 : vector<8x256xf32>
    %cst_41 = arith.constant 5.000000e-01 : f32
    %109 = vector.broadcast %cst_41 : f32 to vector<8x256xf32>
    %110 = arith.mulf %109, %108 : vector<8x256xf32>
    %cst_42 = arith.constant 5.000000e-01 : f32
    %111 = vector.broadcast %cst_42 : f32 to vector<8x256xf32>
    %112 = arith.addf %110, %111 : vector<8x256xf32>
    %113 = vector.extract_strided_slice %103 {offsets = [0, 256], sizes = [8, 256], strides = [1, 1]} : vector<8x768xf32> to vector<8x256xf32>
    %114 = arith.addf %99, %113 : vector<8x256xf32>
    %cst_43 = arith.constant 5.000000e-01 : f32
    %115 = vector.broadcast %cst_43 : f32 to vector<8x256xf32>
    %116 = arith.mulf %115, %114 : vector<8x256xf32>
    %117 = math.tanh %116 : vector<8x256xf32>
    %cst_44 = arith.constant 5.000000e-01 : f32
    %118 = vector.broadcast %cst_44 : f32 to vector<8x256xf32>
    %119 = arith.mulf %118, %117 : vector<8x256xf32>
    %cst_45 = arith.constant 5.000000e-01 : f32
    %120 = vector.broadcast %cst_45 : f32 to vector<8x256xf32>
    %121 = arith.addf %119, %120 : vector<8x256xf32>
    %122 = vector.extract_strided_slice %103 {offsets = [0, 512], sizes = [8, 256], strides = [1, 1]} : vector<8x768xf32> to vector<8x256xf32>
    %123 = vector.broadcast %12 : vector<1x256xf32> to vector<8x256xf32>
    %124 = arith.addf %122, %123 : vector<8x256xf32>
    %125 = arith.mulf %112, %124 : vector<8x256xf32>
    %126 = arith.addf %102, %125 : vector<8x256xf32>
    %127 = math.tanh %126 : vector<8x256xf32>
    %128 = arith.subf %91, %127 : vector<8x256xf32>
    %129 = arith.mulf %121, %128 : vector<8x256xf32>
    %130 = arith.addf %127, %129 : vector<8x256xf32>
    %c24 = arith.constant 24 : index
    %c0_46 = arith.constant 0 : index
    %131 = vector.load %arg9[%c24, %c0_46] : memref<64x768xf32, #tpu.memory_space<vmem>>, vector<8x384xf32>
    %c32 = arith.constant 32 : index
    %c384_47 = arith.constant 384 : index
    %132 = vector.load %arg9[%c32, %c384_47] : memref<64x768xf32, #tpu.memory_space<vmem>>, vector<8x384xf32>
    %133 = vector.extract_strided_slice %131 {offsets = [0, 0], sizes = [8, 128], strides = [1, 1]} : vector<8x384xf32> to vector<8x128xf32>
    %134 = vector.extract_strided_slice %132 {offsets = [0, 0], sizes = [8, 128], strides = [1, 1]} : vector<8x384xf32> to vector<8x128xf32>
    %135 = tpu.concatenate %133, %134 in 1 : vector<8x128xf32>, vector<8x128xf32> -> vector<8x256xf32>
    %136 = vector.extract_strided_slice %131 {offsets = [0, 128], sizes = [8, 128], strides = [1, 1]} : vector<8x384xf32> to vector<8x128xf32>
    %137 = vector.extract_strided_slice %132 {offsets = [0, 128], sizes = [8, 128], strides = [1, 1]} : vector<8x384xf32> to vector<8x128xf32>
    %138 = tpu.concatenate %136, %137 in 1 : vector<8x128xf32>, vector<8x128xf32> -> vector<8x256xf32>
    %139 = vector.extract_strided_slice %131 {offsets = [0, 256], sizes = [8, 128], strides = [1, 1]} : vector<8x384xf32> to vector<8x128xf32>
    %140 = vector.extract_strided_slice %132 {offsets = [0, 256], sizes = [8, 128], strides = [1, 1]} : vector<8x384xf32> to vector<8x128xf32>
    %141 = tpu.concatenate %139, %140 in 1 : vector<8x128xf32>, vector<8x128xf32> -> vector<8x256xf32>
    %cst_48 = arith.constant dense<0.000000e+00> : vector<8x768xf32>
    %142 = tpu.matmul %130, %11, %cst_48 {dimension_numbers = #tpu.dot_dimension_numbers<[1], [0], [0], [1], [0, 0, 1, 1], [], []>} : vector<8x256xf32>, vector<256x768xf32>, vector<8x768xf32> -> vector<8x768xf32>
    %143 = vector.extract_strided_slice %142 {offsets = [0, 0], sizes = [8, 256], strides = [1, 1]} : vector<8x768xf32> to vector<8x256xf32>
    %144 = arith.addf %135, %143 : vector<8x256xf32>
    %cst_49 = arith.constant 5.000000e-01 : f32
    %145 = vector.broadcast %cst_49 : f32 to vector<8x256xf32>
    %146 = arith.mulf %145, %144 : vector<8x256xf32>
    %147 = math.tanh %146 : vector<8x256xf32>
    %cst_50 = arith.constant 5.000000e-01 : f32
    %148 = vector.broadcast %cst_50 : f32 to vector<8x256xf32>
    %149 = arith.mulf %148, %147 : vector<8x256xf32>
    %cst_51 = arith.constant 5.000000e-01 : f32
    %150 = vector.broadcast %cst_51 : f32 to vector<8x256xf32>
    %151 = arith.addf %149, %150 : vector<8x256xf32>
    %152 = vector.extract_strided_slice %142 {offsets = [0, 256], sizes = [8, 256], strides = [1, 1]} : vector<8x768xf32> to vector<8x256xf32>
    %153 = arith.addf %138, %152 : vector<8x256xf32>
    %cst_52 = arith.constant 5.000000e-01 : f32
    %154 = vector.broadcast %cst_52 : f32 to vector<8x256xf32>
    %155 = arith.mulf %154, %153 : vector<8x256xf32>
    %156 = math.tanh %155 : vector<8x256xf32>
    %cst_53 = arith.constant 5.000000e-01 : f32
    %157 = vector.broadcast %cst_53 : f32 to vector<8x256xf32>
    %158 = arith.mulf %157, %156 : vector<8x256xf32>
    %cst_54 = arith.constant 5.000000e-01 : f32
    %159 = vector.broadcast %cst_54 : f32 to vector<8x256xf32>
    %160 = arith.addf %158, %159 : vector<8x256xf32>
    %161 = vector.extract_strided_slice %142 {offsets = [0, 512], sizes = [8, 256], strides = [1, 1]} : vector<8x768xf32> to vector<8x256xf32>
    %162 = vector.broadcast %12 : vector<1x256xf32> to vector<8x256xf32>
    %163 = arith.addf %161, %162 : vector<8x256xf32>
    %164 = arith.mulf %151, %163 : vector<8x256xf32>
    %165 = arith.addf %141, %164 : vector<8x256xf32>
    %166 = math.tanh %165 : vector<8x256xf32>
    %167 = arith.subf %130, %166 : vector<8x256xf32>
    %168 = arith.mulf %160, %167 : vector<8x256xf32>
    %169 = arith.addf %166, %168 : vector<8x256xf32>
    %c32_55 = arith.constant 32 : index
    %c0_56 = arith.constant 0 : index
    %170 = vector.load %arg9[%c32_55, %c0_56] : memref<64x768xf32, #tpu.memory_space<vmem>>, vector<8x384xf32>
    %c24_57 = arith.constant 24 : index
    %c384_58 = arith.constant 384 : index
    %171 = vector.load %arg9[%c24_57, %c384_58] : memref<64x768xf32, #tpu.memory_space<vmem>>, vector<8x384xf32>
    %172 = vector.extract_strided_slice %170 {offsets = [0, 0], sizes = [8, 128], strides = [1, 1]} : vector<8x384xf32> to vector<8x128xf32>
    %173 = vector.extract_strided_slice %171 {offsets = [0, 0], sizes = [8, 128], strides = [1, 1]} : vector<8x384xf32> to vector<8x128xf32>
    %174 = tpu.concatenate %172, %173 in 1 : vector<8x128xf32>, vector<8x128xf32> -> vector<8x256xf32>
    %175 = vector.extract_strided_slice %170 {offsets = [0, 128], sizes = [8, 128], strides = [1, 1]} : vector<8x384xf32> to vector<8x128xf32>
    %176 = vector.extract_strided_slice %171 {offsets = [0, 128], sizes = [8, 128], strides = [1, 1]} : vector<8x384xf32> to vector<8x128xf32>
    %177 = tpu.concatenate %175, %176 in 1 : vector<8x128xf32>, vector<8x128xf32> -> vector<8x256xf32>
    %178 = vector.extract_strided_slice %170 {offsets = [0, 256], sizes = [8, 128], strides = [1, 1]} : vector<8x384xf32> to vector<8x128xf32>
    %179 = vector.extract_strided_slice %171 {offsets = [0, 256], sizes = [8, 128], strides = [1, 1]} : vector<8x384xf32> to vector<8x128xf32>
    %180 = tpu.concatenate %178, %179 in 1 : vector<8x128xf32>, vector<8x128xf32> -> vector<8x256xf32>
    %cst_59 = arith.constant dense<0.000000e+00> : vector<8x768xf32>
    %181 = tpu.matmul %169, %11, %cst_59 {dimension_numbers = #tpu.dot_dimension_numbers<[1], [0], [0], [1], [0, 0, 1, 1], [], []>} : vector<8x256xf32>, vector<256x768xf32>, vector<8x768xf32> -> vector<8x768xf32>
    %182 = vector.extract_strided_slice %181 {offsets = [0, 0], sizes = [8, 256], strides = [1, 1]} : vector<8x768xf32> to vector<8x256xf32>
    %183 = arith.addf %174, %182 : vector<8x256xf32>
    %cst_60 = arith.constant 5.000000e-01 : f32
    %184 = vector.broadcast %cst_60 : f32 to vector<8x256xf32>
    %185 = arith.mulf %184, %183 : vector<8x256xf32>
    %186 = math.tanh %185 : vector<8x256xf32>
    %cst_61 = arith.constant 5.000000e-01 : f32
    %187 = vector.broadcast %cst_61 : f32 to vector<8x256xf32>
    %188 = arith.mulf %187, %186 : vector<8x256xf32>
    %cst_62 = arith.constant 5.000000e-01 : f32
    %189 = vector.broadcast %cst_62 : f32 to vector<8x256xf32>
    %190 = arith.addf %188, %189 : vector<8x256xf32>
    %191 = vector.extract_strided_slice %181 {offsets = [0, 256], sizes = [8, 256], strides = [1, 1]} : vector<8x768xf32> to vector<8x256xf32>
    %192 = arith.addf %177, %191 : vector<8x256xf32>
    %cst_63 = arith.constant 5.000000e-01 : f32
    %193 = vector.broadcast %cst_63 : f32 to vector<8x256xf32>
    %194 = arith.mulf %193, %192 : vector<8x256xf32>
    %195 = math.tanh %194 : vector<8x256xf32>
    %cst_64 = arith.constant 5.000000e-01 : f32
    %196 = vector.broadcast %cst_64 : f32 to vector<8x256xf32>
    %197 = arith.mulf %196, %195 : vector<8x256xf32>
    %cst_65 = arith.constant 5.000000e-01 : f32
    %198 = vector.broadcast %cst_65 : f32 to vector<8x256xf32>
    %199 = arith.addf %197, %198 : vector<8x256xf32>
    %200 = vector.extract_strided_slice %181 {offsets = [0, 512], sizes = [8, 256], strides = [1, 1]} : vector<8x768xf32> to vector<8x256xf32>
    %201 = vector.broadcast %12 : vector<1x256xf32> to vector<8x256xf32>
    %202 = arith.addf %200, %201 : vector<8x256xf32>
    %203 = arith.mulf %190, %202 : vector<8x256xf32>
    %204 = arith.addf %180, %203 : vector<8x256xf32>
    %205 = math.tanh %204 : vector<8x256xf32>
    %206 = arith.subf %169, %205 : vector<8x256xf32>
    %207 = arith.mulf %199, %206 : vector<8x256xf32>
    %208 = arith.addf %205, %207 : vector<8x256xf32>
    %c40_66 = arith.constant 40 : index
    %c0_67 = arith.constant 0 : index
    %209 = vector.load %arg9[%c40_66, %c0_67] : memref<64x768xf32, #tpu.memory_space<vmem>>, vector<8x384xf32>
    %c16_68 = arith.constant 16 : index
    %c384_69 = arith.constant 384 : index
    %210 = vector.load %arg9[%c16_68, %c384_69] : memref<64x768xf32, #tpu.memory_space<vmem>>, vector<8x384xf32>
    %211 = vector.extract_strided_slice %209 {offsets = [0, 0], sizes = [8, 128], strides = [1, 1]} : vector<8x384xf32> to vector<8x128xf32>
    %212 = vector.extract_strided_slice %210 {offsets = [0, 0], sizes = [8, 128], strides = [1, 1]} : vector<8x384xf32> to vector<8x128xf32>
    %213 = tpu.concatenate %211, %212 in 1 : vector<8x128xf32>, vector<8x128xf32> -> vector<8x256xf32>
    %214 = vector.extract_strided_slice %209 {offsets = [0, 128], sizes = [8, 128], strides = [1, 1]} : vector<8x384xf32> to vector<8x128xf32>
    %215 = vector.extract_strided_slice %210 {offsets = [0, 128], sizes = [8, 128], strides = [1, 1]} : vector<8x384xf32> to vector<8x128xf32>
    %216 = tpu.concatenate %214, %215 in 1 : vector<8x128xf32>, vector<8x128xf32> -> vector<8x256xf32>
    %217 = vector.extract_strided_slice %209 {offsets = [0, 256], sizes = [8, 128], strides = [1, 1]} : vector<8x384xf32> to vector<8x128xf32>
    %218 = vector.extract_strided_slice %210 {offsets = [0, 256], sizes = [8, 128], strides = [1, 1]} : vector<8x384xf32> to vector<8x128xf32>
    %219 = tpu.concatenate %217, %218 in 1 : vector<8x128xf32>, vector<8x128xf32> -> vector<8x256xf32>
    %cst_70 = arith.constant dense<0.000000e+00> : vector<8x768xf32>
    %220 = tpu.matmul %208, %11, %cst_70 {dimension_numbers = #tpu.dot_dimension_numbers<[1], [0], [0], [1], [0, 0, 1, 1], [], []>} : vector<8x256xf32>, vector<256x768xf32>, vector<8x768xf32> -> vector<8x768xf32>
    %221 = vector.extract_strided_slice %220 {offsets = [0, 0], sizes = [8, 256], strides = [1, 1]} : vector<8x768xf32> to vector<8x256xf32>
    %222 = arith.addf %213, %221 : vector<8x256xf32>
    %cst_71 = arith.constant 5.000000e-01 : f32
    %223 = vector.broadcast %cst_71 : f32 to vector<8x256xf32>
    %224 = arith.mulf %223, %222 : vector<8x256xf32>
    %225 = math.tanh %224 : vector<8x256xf32>
    %cst_72 = arith.constant 5.000000e-01 : f32
    %226 = vector.broadcast %cst_72 : f32 to vector<8x256xf32>
    %227 = arith.mulf %226, %225 : vector<8x256xf32>
    %cst_73 = arith.constant 5.000000e-01 : f32
    %228 = vector.broadcast %cst_73 : f32 to vector<8x256xf32>
    %229 = arith.addf %227, %228 : vector<8x256xf32>
    %230 = vector.extract_strided_slice %220 {offsets = [0, 256], sizes = [8, 256], strides = [1, 1]} : vector<8x768xf32> to vector<8x256xf32>
    %231 = arith.addf %216, %230 : vector<8x256xf32>
    %cst_74 = arith.constant 5.000000e-01 : f32
    %232 = vector.broadcast %cst_74 : f32 to vector<8x256xf32>
    %233 = arith.mulf %232, %231 : vector<8x256xf32>
    %234 = math.tanh %233 : vector<8x256xf32>
    %cst_75 = arith.constant 5.000000e-01 : f32
    %235 = vector.broadcast %cst_75 : f32 to vector<8x256xf32>
    %236 = arith.mulf %235, %234 : vector<8x256xf32>
    %cst_76 = arith.constant 5.000000e-01 : f32
    %237 = vector.broadcast %cst_76 : f32 to vector<8x256xf32>
    %238 = arith.addf %236, %237 : vector<8x256xf32>
    %239 = vector.extract_strided_slice %220 {offsets = [0, 512], sizes = [8, 256], strides = [1, 1]} : vector<8x768xf32> to vector<8x256xf32>
    %240 = vector.broadcast %12 : vector<1x256xf32> to vector<8x256xf32>
    %241 = arith.addf %239, %240 : vector<8x256xf32>
    %242 = arith.mulf %229, %241 : vector<8x256xf32>
    %243 = arith.addf %219, %242 : vector<8x256xf32>
    %244 = math.tanh %243 : vector<8x256xf32>
    %245 = arith.subf %208, %244 : vector<8x256xf32>
    %246 = arith.mulf %238, %245 : vector<8x256xf32>
    %247 = arith.addf %244, %246 : vector<8x256xf32>
    %c48_77 = arith.constant 48 : index
    %c0_78 = arith.constant 0 : index
    %248 = vector.load %arg9[%c48_77, %c0_78] : memref<64x768xf32, #tpu.memory_space<vmem>>, vector<8x384xf32>
    %c8_79 = arith.constant 8 : index
    %c384_80 = arith.constant 384 : index
    %249 = vector.load %arg9[%c8_79, %c384_80] : memref<64x768xf32, #tpu.memory_space<vmem>>, vector<8x384xf32>
    %250 = vector.extract_strided_slice %248 {offsets = [0, 0], sizes = [8, 128], strides = [1, 1]} : vector<8x384xf32> to vector<8x128xf32>
    %251 = vector.extract_strided_slice %249 {offsets = [0, 0], sizes = [8, 128], strides = [1, 1]} : vector<8x384xf32> to vector<8x128xf32>
    %252 = tpu.concatenate %250, %251 in 1 : vector<8x128xf32>, vector<8x128xf32> -> vector<8x256xf32>
    %253 = vector.extract_strided_slice %248 {offsets = [0, 128], sizes = [8, 128], strides = [1, 1]} : vector<8x384xf32> to vector<8x128xf32>
    %254 = vector.extract_strided_slice %249 {offsets = [0, 128], sizes = [8, 128], strides = [1, 1]} : vector<8x384xf32> to vector<8x128xf32>
    %255 = tpu.concatenate %253, %254 in 1 : vector<8x128xf32>, vector<8x128xf32> -> vector<8x256xf32>
    %256 = vector.extract_strided_slice %248 {offsets = [0, 256], sizes = [8, 128], strides = [1, 1]} : vector<8x384xf32> to vector<8x128xf32>
    %257 = vector.extract_strided_slice %249 {offsets = [0, 256], sizes = [8, 128], strides = [1, 1]} : vector<8x384xf32> to vector<8x128xf32>
    %258 = tpu.concatenate %256, %257 in 1 : vector<8x128xf32>, vector<8x128xf32> -> vector<8x256xf32>
    %cst_81 = arith.constant dense<0.000000e+00> : vector<8x768xf32>
    %259 = tpu.matmul %247, %11, %cst_81 {dimension_numbers = #tpu.dot_dimension_numbers<[1], [0], [0], [1], [0, 0, 1, 1], [], []>} : vector<8x256xf32>, vector<256x768xf32>, vector<8x768xf32> -> vector<8x768xf32>
    %260 = vector.extract_strided_slice %259 {offsets = [0, 0], sizes = [8, 256], strides = [1, 1]} : vector<8x768xf32> to vector<8x256xf32>
    %261 = arith.addf %252, %260 : vector<8x256xf32>
    %cst_82 = arith.constant 5.000000e-01 : f32
    %262 = vector.broadcast %cst_82 : f32 to vector<8x256xf32>
    %263 = arith.mulf %262, %261 : vector<8x256xf32>
    %264 = math.tanh %263 : vector<8x256xf32>
    %cst_83 = arith.constant 5.000000e-01 : f32
    %265 = vector.broadcast %cst_83 : f32 to vector<8x256xf32>
    %266 = arith.mulf %265, %264 : vector<8x256xf32>
    %cst_84 = arith.constant 5.000000e-01 : f32
    %267 = vector.broadcast %cst_84 : f32 to vector<8x256xf32>
    %268 = arith.addf %266, %267 : vector<8x256xf32>
    %269 = vector.extract_strided_slice %259 {offsets = [0, 256], sizes = [8, 256], strides = [1, 1]} : vector<8x768xf32> to vector<8x256xf32>
    %270 = arith.addf %255, %269 : vector<8x256xf32>
    %cst_85 = arith.constant 5.000000e-01 : f32
    %271 = vector.broadcast %cst_85 : f32 to vector<8x256xf32>
    %272 = arith.mulf %271, %270 : vector<8x256xf32>
    %273 = math.tanh %272 : vector<8x256xf32>
    %cst_86 = arith.constant 5.000000e-01 : f32
    %274 = vector.broadcast %cst_86 : f32 to vector<8x256xf32>
    %275 = arith.mulf %274, %273 : vector<8x256xf32>
    %cst_87 = arith.constant 5.000000e-01 : f32
    %276 = vector.broadcast %cst_87 : f32 to vector<8x256xf32>
    %277 = arith.addf %275, %276 : vector<8x256xf32>
    %278 = vector.extract_strided_slice %259 {offsets = [0, 512], sizes = [8, 256], strides = [1, 1]} : vector<8x768xf32> to vector<8x256xf32>
    %279 = vector.broadcast %12 : vector<1x256xf32> to vector<8x256xf32>
    %280 = arith.addf %278, %279 : vector<8x256xf32>
    %281 = arith.mulf %268, %280 : vector<8x256xf32>
    %282 = arith.addf %258, %281 : vector<8x256xf32>
    %283 = math.tanh %282 : vector<8x256xf32>
    %284 = arith.subf %247, %283 : vector<8x256xf32>
    %285 = arith.mulf %277, %284 : vector<8x256xf32>
    %286 = arith.addf %283, %285 : vector<8x256xf32>
    %c56_88 = arith.constant 56 : index
    %c0_89 = arith.constant 0 : index
    %287 = vector.load %arg9[%c56_88, %c0_89] : memref<64x768xf32, #tpu.memory_space<vmem>>, vector<8x384xf32>
    %c0_90 = arith.constant 0 : index
    %c384_91 = arith.constant 384 : index
    %288 = vector.load %arg9[%c0_90, %c384_91] : memref<64x768xf32, #tpu.memory_space<vmem>>, vector<8x384xf32>
    %289 = vector.extract_strided_slice %287 {offsets = [0, 0], sizes = [8, 128], strides = [1, 1]} : vector<8x384xf32> to vector<8x128xf32>
    %290 = vector.extract_strided_slice %288 {offsets = [0, 0], sizes = [8, 128], strides = [1, 1]} : vector<8x384xf32> to vector<8x128xf32>
    %291 = tpu.concatenate %289, %290 in 1 : vector<8x128xf32>, vector<8x128xf32> -> vector<8x256xf32>
    %292 = vector.extract_strided_slice %287 {offsets = [0, 128], sizes = [8, 128], strides = [1, 1]} : vector<8x384xf32> to vector<8x128xf32>
    %293 = vector.extract_strided_slice %288 {offsets = [0, 128], sizes = [8, 128], strides = [1, 1]} : vector<8x384xf32> to vector<8x128xf32>
    %294 = tpu.concatenate %292, %293 in 1 : vector<8x128xf32>, vector<8x128xf32> -> vector<8x256xf32>
    %295 = vector.extract_strided_slice %287 {offsets = [0, 256], sizes = [8, 128], strides = [1, 1]} : vector<8x384xf32> to vector<8x128xf32>
    %296 = vector.extract_strided_slice %288 {offsets = [0, 256], sizes = [8, 128], strides = [1, 1]} : vector<8x384xf32> to vector<8x128xf32>
    %297 = tpu.concatenate %295, %296 in 1 : vector<8x128xf32>, vector<8x128xf32> -> vector<8x256xf32>
    %cst_92 = arith.constant dense<0.000000e+00> : vector<8x768xf32>
    %298 = tpu.matmul %286, %11, %cst_92 {dimension_numbers = #tpu.dot_dimension_numbers<[1], [0], [0], [1], [0, 0, 1, 1], [], []>} : vector<8x256xf32>, vector<256x768xf32>, vector<8x768xf32> -> vector<8x768xf32>
    %299 = vector.extract_strided_slice %298 {offsets = [0, 0], sizes = [8, 256], strides = [1, 1]} : vector<8x768xf32> to vector<8x256xf32>
    %300 = arith.addf %291, %299 : vector<8x256xf32>
    %cst_93 = arith.constant 5.000000e-01 : f32
    %301 = vector.broadcast %cst_93 : f32 to vector<8x256xf32>
    %302 = arith.mulf %301, %300 : vector<8x256xf32>
    %303 = math.tanh %302 : vector<8x256xf32>
    %cst_94 = arith.constant 5.000000e-01 : f32
    %304 = vector.broadcast %cst_94 : f32 to vector<8x256xf32>
    %305 = arith.mulf %304, %303 : vector<8x256xf32>
    %cst_95 = arith.constant 5.000000e-01 : f32
    %306 = vector.broadcast %cst_95 : f32 to vector<8x256xf32>
    %307 = arith.addf %305, %306 : vector<8x256xf32>
    %308 = vector.extract_strided_slice %298 {offsets = [0, 256], sizes = [8, 256], strides = [1, 1]} : vector<8x768xf32> to vector<8x256xf32>
    %309 = arith.addf %294, %308 : vector<8x256xf32>
    %cst_96 = arith.constant 5.000000e-01 : f32
    %310 = vector.broadcast %cst_96 : f32 to vector<8x256xf32>
    %311 = arith.mulf %310, %309 : vector<8x256xf32>
    %312 = math.tanh %311 : vector<8x256xf32>
    %cst_97 = arith.constant 5.000000e-01 : f32
    %313 = vector.broadcast %cst_97 : f32 to vector<8x256xf32>
    %314 = arith.mulf %313, %312 : vector<8x256xf32>
    %cst_98 = arith.constant 5.000000e-01 : f32
    %315 = vector.broadcast %cst_98 : f32 to vector<8x256xf32>
    %316 = arith.addf %314, %315 : vector<8x256xf32>
    %317 = vector.extract_strided_slice %298 {offsets = [0, 512], sizes = [8, 256], strides = [1, 1]} : vector<8x768xf32> to vector<8x256xf32>
    %318 = vector.broadcast %12 : vector<1x256xf32> to vector<8x256xf32>
    %319 = arith.addf %317, %318 : vector<8x256xf32>
    %320 = arith.mulf %307, %319 : vector<8x256xf32>
    %321 = arith.addf %297, %320 : vector<8x256xf32>
    %322 = math.tanh %321 : vector<8x256xf32>
    %323 = arith.subf %286, %322 : vector<8x256xf32>
    %324 = arith.mulf %316, %323 : vector<8x256xf32>
    %325 = arith.addf %322, %324 : vector<8x256xf32>
    %c0_99 = arith.constant 0 : index
    %c0_100 = arith.constant 0 : index
    %326 = vector.load %arg5[%c0_99, %c0_100] : memref<256x128xf32, #tpu.memory_space<vmem>>, vector<256x128xf32>
    %cst_101 = arith.constant dense<0.000000e+00> : vector<8x128xf32>
    %327 = tpu.matmul %325, %326, %cst_101 {dimension_numbers = #tpu.dot_dimension_numbers<[1], [0], [0], [1], [0, 0, 1, 1], [], []>} : vector<8x256xf32>, vector<256x128xf32>, vector<8x128xf32> -> vector<8x128xf32>
    %c0_102 = arith.constant 0 : index
    %c0_103 = arith.constant 0 : index
    %328 = vector.load %arg6[%c0_102, %c0_103] : memref<1x128xf32, #tpu.memory_space<vmem>>, vector<1x128xf32>
    %329 = vector.broadcast %328 : vector<1x128xf32> to vector<8x128xf32>
    %330 = arith.addf %327, %329 : vector<8x128xf32>
    %c0_104 = arith.constant 0 : index
    %c0_105 = arith.constant 0 : index
    %331 = vector.load %arg7[%c0_104, %c0_105] : memref<8x128xf32, #tpu.memory_space<vmem>>, vector<8x128xf32>
    tpu.vector_store %arg7[%c0_104, %c0_105], %330 {strides = array<i32>} : memref<8x128xf32, #tpu.memory_space<vmem>>, vector<8x128xf32>,
    return
  }
}

</mosaic_0001>

<bundles_post_ra>
// kernel: tpu_custom_call.1
= control target key start
LH: loop header
LB: loop body
LE: loop exit
PB: predicated region body
PF: predicated region fallthrough
CT: control target
= control target key end

     0   :  { %12 = vsyncpa [#allocation5], 0  ;;  %s6365_s0 = inlined_call_operand.vmem [shape: f32[64,23], index: 0, kind: input, shape index: {}]   ;;  %s6366_s1 = inlined_call_operand.hbm [shape: f32[128,768], index: 1, kind: input, shape index: {}]   ;;  %s6367_s2 = inlined_call_operand.hbm [shape: f32[256,768], index: 2, kind: input, shape index: {}]   ;;  %s6368_s3 = inlined_call_operand.vmem [shape: f32[1,768], index: 3, kind: input, shape index: {}]   ;;  %s6369_s4 = inlined_call_operand.vmem [shape: f32[1,256], index: 4, kind: input, shape index: {}]   ;;  %s6370_s5 = inlined_call_operand.hbm [shape: f32[256,128], index: 5, kind: input, shape index: {}]   ;;  %s6371_s6 = inlined_call_operand.vmem [shape: f32[1,128], index: 6, kind: input, shape index: {}]   ;;  %s6372_s7 = inlined_call_operand.hbm [shape: f32[8,128], index: 7, kind: output, shape index: {}]  }
   0x1   :  { %13 = vsyncpa [#allocation8], 0 }
   0x2   :  { %14 = vsyncpa [#allocation6], 0  ;;  %s4869_s24 = smov [#allocation7]   ;;  %s4870_s26 = smov [#allocation4]  }
   0x3   :  { %s34_s25 = sshll.u32 %s4869_s24, 4  ;;  %s22_s27 = sshll.u32 %s4870_s26, 4  ;;  %s35_s25 = int_to_ptr.vmem [resolvable:$true] %s34_s25  ;;  %s4918_s27 = int_to_ptr.vmem [resolvable:$true] %s22_s27 }
   0x4   :  { %s4775_s30 = scalar_lea.hbm %s6367_s2, 24576 }
   0x5   :  { %p4776_p0 = scmp.ne.s32.totalorder %s6367_s2, %s4775_s30  ;;  %p4779_p1 = scmp.lt.u32.totalorder %s4775_s30, %s6367_s2 }
   0x7   :  { %p4781_p2 = pnand %p4779_p1, %p4776_p0 }
   0x9   :  { %4784 = shalt.err (!%p4781_p2)
}
   0xa   :  { %s4785_s12 = scalar_lea.vmem %s35_s25, 24576  ;;  %p4790_p4 = scmp.lt.s32.totalorder %s35_s25, %s35_s25 }
   0xb   :  { %p4786_p3 = scmp.ne.s32.totalorder %s35_s25, %s4785_s12  ;;  %p4791_p5 = scmp.lt.s32.totalorder %s4785_s12, %s4785_s12 }
   0xd   :  { %p4792_p6 = por %p4791_p5, %p4790_p4 }
   0xf   :  { %p4793_p7 = pnand %p4792_p6, %p4786_p3 }
  0x11   :  { %4796 = shalt.err (!%p4793_p7)
}
  0x12   :  { %s4871_s13 = smov 768   ;;  %s4872_s14 = smov 48  }
  0x13   :  { %40 = dma.hbm_to_vmem [thread:$0]  %s6367_s2, 24576, %s35_s25, [#allocation8], %s4871_s13, %s4871_s13, %s4872_s14  }
  0x14   :  { %s4797_s19 = scalar_lea.hbm %s6366_s1, 12288 }
  0x15   :  { %p4798_p8 = scmp.ne.s32.totalorder %s6366_s1, %s4797_s19  ;;  %p4801_p9 = scmp.lt.u32.totalorder %s4797_s19, %s6366_s1 }
  0x17   :  { %p4803_p10 = pnand %p4801_p9, %p4798_p8 }
  0x19   :  { %4806 = shalt.err (!%p4803_p10)
}
  0x1a   :  { %s4807_s24 = scalar_lea.vmem %s4918_s27, 12288  ;;  %p4812_p12 = scmp.lt.s32.totalorder %s4918_s27, %s4918_s27 }
  0x1b   :  { %p4808_p11 = scmp.ne.s32.totalorder %s4918_s27, %s4807_s24  ;;  %p4813_p13 = scmp.lt.s32.totalorder %s4807_s24, %s4807_s24 }
  0x1d   :  { %p4814_p0 = por %p4813_p13, %p4812_p12 }
  0x1f   :  { %p4815_p1 = pnand %p4814_p0, %p4808_p11 }
  0x21   :  { %4818 = shalt.err (!%p4815_p1)
}
  0x22   :  { %28 = dma.hbm_to_vmem [thread:$0]  %s6366_s1, 12288, %s4918_s27, [#allocation5], %s4871_s13, %s4871_s13, %s4872_s14  }
  0x23   :  { %s4873_s26 = smov [#allocation9]   ;;  %s4819_s8 = scalar_lea.hbm %s6370_s5, 4096 }
  0x24   :  { %s50_s28 = sshll.u32 %s4873_s26, 4  ;;  %p4820_p2 = scmp.ne.s32.totalorder %s6370_s5, %s4819_s8  ;;  %s51_s28 = int_to_ptr.vmem [resolvable:$true] %s50_s28 }
  0x25   :  { %p4823_p3 = scmp.lt.u32.totalorder %s4819_s8, %s6370_s5 }
  0x27   :  { %p4825_p4 = pnand %p4823_p3, %p4820_p2 }
  0x29   :  { %4828 = shalt.err (!%p4825_p4)
}
  0x2a   :  { %s4829_s15 = scalar_lea.vmem %s51_s28, 4096  ;;  %p4834_p6 = scmp.lt.s32.totalorder %s51_s28, %s51_s28 }
  0x2b   :  { %p4830_p5 = scmp.ne.s32.totalorder %s51_s28, %s4829_s15  ;;  %p4835_p7 = scmp.lt.s32.totalorder %s4829_s15, %s4829_s15 }
  0x2d   :  { %p4836_p8 = por %p4835_p7, %p4834_p6 }
  0x2f   :  { %p4837_p9 = pnand %p4836_p8, %p4830_p5 }
  0x31   :  { %4840 = shalt.err (!%p4837_p9)
}
  0x32   :  { %s4874_s1 = smov 128   ;;  %s4875_s27 = smov 8  }
  0x33   :  { %56 = dma.hbm_to_vmem [thread:$0]  %s6370_s5, 4096, %s51_s28, [#allocation8], %s4874_s1, %s4874_s1, %s4875_s27  }
  0x34   :  { %4863 = dma.done.wait [#allocation5], 12288  }
  0x35   :  { %4864 = vsyncadd [#allocation5], 4294955008 }
  0x36   :  { %4865 = dma.done.wait [#allocation8], 28672  }
  0x37   :  { %4866 = vsyncadd [#allocation8], 4294938624  ;;  %v6375_v0 = vmov 0.0   ;;  %v102_v1 = vld [vmem:[#allocation4 + $0x8] sm:$0xff]  ;;  %v108_v2 = vld [vmem:[#allocation4 + $0x38] sm:$0xff]  ;;  %vm84_vm0 = vcmask 187392  }
  0x38   :  { %406 = vmatprep.mubr.f32.mxu1 %v6375_v0  ;;  %68 = vst [vmem:[#allocation2] sm:$0xff] %v6375_v0  ;;  %69 = vst [vmem:[#allocation2 + $0x8] sm:$0xff] %v6375_v0  ;;  %293 = vmatprep.mubr.f32.mxu0 %v6375_v0  ;;  %v104_v3 = vld [vmem:[#allocation4 + $0x18] sm:$0xff]  ;;  %v3006_v4 = vpack.c.bf16 %v108_v2, %v102_v1  ;;  %v110_v5 = vld [vmem:[#allocation4 + $0x48] sm:$0xff]  ;;  %s4877_s11 = smov [#allocation10]  }
  0x39   :  { %70 = vst [vmem:[#allocation2 + $0x10] sm:$0xff] %v6375_v0  ;;  %71 = vst [vmem:[#allocation2 + $0x18] sm:$0xff] %v6375_v0  ;;  %v101_v6 = vld [vmem:[#allocation4] sm:$0xff]  ;;  %v107_v7 = vld [vmem:[#allocation4 + $0x30] sm:$0xff]  ;;  %v3038_v8 = vpack.c.bf16 %v110_v5, %v104_v3  ;;  %s2960_s12 = sshll.u32 %s4877_s11, 4  ;;  %s2961_s12 = int_to_ptr.vmem [resolvable:$true] %s2960_s12 }
  0x3a   :  { %72 = vst [vmem:[#allocation2 + $0x20] sm:$0xff] %v6375_v0  ;;  %73 = vst [vmem:[#allocation2 + $0x28] sm:$0xff] %v6375_v0  ;;  %v3008_v9 = vpack.c.bf16 %v107_v7, %v101_v6  ;;  %v103_v10 = vld [vmem:[#allocation4 + $0x10] sm:$0xff]  ;;  %v109_v11 = vld [vmem:[#allocation4 + $0x40] sm:$0xff]  ;;  %3007 = vmatprep.subr.bf16.mxu0 %v3006_v4  ;;  %s4841_s15 = scalar_lea.vmem %s2961_s12, 128  ;;  %p4846_p11 = scmp.lt.s32.totalorder %s2961_s12, %s2961_s12 }
  0x3b   :  { %74 = vst [vmem:[#allocation2 + $0x30] sm:$0xff] %v6375_v0  ;;  %75 = vst [vmem:[#allocation2 + $0x38] sm:$0xff] %v6375_v0  ;;  %v114_v12 = vld [vmem:[#allocation4 + $0x68] sm:$0xff]  ;;  %v3040_v13 = vpack.c.bf16 %v109_v11, %v103_v10  ;;  %v120_v14 = vld [vmem:[#allocation4 + $0x98] sm:$0xff]  ;;  %3039 = vmatprep.subr.bf16.mxu1 %v3038_v8  ;;  %p4842_p10 = scmp.ne.s32.totalorder %s2961_s12, %s4841_s15  ;;  %p4847_p12 = scmp.lt.s32.totalorder %s4841_s15, %s4841_s15 }
  0x3c   :  { %v116_v15 = vld [vmem:[#allocation4 + $0x78] sm:$0xff]  ;;  %v122_v16 = vld [vmem:[#allocation4 + $0xa8] sm:$0xff]  ;;  %3009 = vmatpush1.bf16.msra.mxu0 %v3008_v9  ;;  %v3010_v17 = vpack.c.bf16 %v120_v14, %v114_v12  ;;  %v113_v19 = vld [vmem:[#allocation4 + $0x60] sm:$0xff] }
  0x3d   :  { %v3042_v18 = vpack.c.bf16 %v122_v16, %v116_v15  ;;  %v119_v20 = vld [vmem:[#allocation4 + $0x90] sm:$0xff]  ;;  %3041 = vmatpush1.bf16.msra.mxu1 %v3040_v13  ;;  %v121_v23 = vld [vmem:[#allocation4 + $0xa0] sm:$0xff]  ;;  %v126_v24 = vld [vmem:[#allocation4 + $0xc8] sm:$0xff]  ;;  %p4848_p13 = por %p4847_p12, %p4846_p11 }
  0x3e   :  { %v115_v21 = vld [vmem:[#allocation4 + $0x70] sm:$0xff]  ;;  %v3012_v22 = vpack.c.bf16 %v119_v20, %v113_v19  ;;  %v132_v25 = vld [vmem:[#allocation4 + $0xf8] sm:$0xff]  ;;  %3011 = vmatprep.subr.bf16.mxu0 %v3010_v17  ;;  %v134_v29 = vld [vmem:[#allocation4 + $0x108] sm:$0xff] }
  0x3f   :  { %3043 = vmatprep.subr.bf16.mxu1 %v3042_v18  ;;  %v3044_v26 = vpack.c.bf16 %v121_v23, %v115_v21  ;;  %v3014_v27 = vpack.c.bf16 %v132_v25, %v126_v24  ;;  %v128_v28 = vld [vmem:[#allocation4 + $0xd8] sm:$0xff]  ;;  %v125_v30 = vld [vmem:[#allocation4 + $0xc0] sm:$0xff]  ;;  %v131_v32 = vld [vmem:[#allocation4 + $0xf0] sm:$0xff]  ;;  %p4849_p0 = pnand %p4848_p13, %p4842_p10 }
  0x40   :  { %v3046_v31 = vpack.c.bf16 %v134_v29, %v128_v28  ;;  %v127_v33 = vld [vmem:[#allocation4 + $0xd0] sm:$0xff]  ;;  %v133_v34 = vld [vmem:[#allocation4 + $0x100] sm:$0xff]  ;;  %3013 = vmatpush1.bf16.msra.mxu0 %v3012_v22  ;;  %v3016_v35 = vpack.c.bf16 %v131_v32, %v125_v30  ;;  %v138_v36 = vld [vmem:[#allocation4 + $0x128] sm:$0xff] }
  0x41   :  { %v144_v37 = vld [vmem:[#allocation4 + $0x158] sm:$0xff]  ;;  %3045 = vmatpush1.bf16.msra.mxu1 %v3044_v26  ;;  %3015 = vmatprep.subr.bf16.mxu0 %v3014_v27  ;;  %v3048_v39 = vpack.c.bf16 %v133_v34, %v127_v33  ;;  %v146_v41 = vld [vmem:[#allocation4 + $0x168] sm:$0xff]  ;;  %v137_v42 = vld [vmem:[#allocation4 + $0x120] sm:$0xff] }
  0x42   :  { %v140_v38 = vld [vmem:[#allocation4 + $0x138] sm:$0xff]  ;;  %v3018_v40 = vpack.c.bf16 %v144_v37, %v138_v36  ;;  %v143_v43 = vld [vmem:[#allocation4 + $0x150] sm:$0xff]  ;;  %3047 = vmatprep.subr.bf16.mxu1 %v3046_v31  ;;  %v145_v46 = vld [vmem:[#allocation4 + $0x160] sm:$0xff] }
  0x43   :  { %v3050_v44 = vpack.c.bf16 %v146_v41, %v140_v38  ;;  %v139_v45 = vld [vmem:[#allocation4 + $0x130] sm:$0xff]  ;;  %v150_v47 = vld [vmem:[#allocation4 + $0x188] sm:$0xff]  ;;  %v156_v48 = vld [vmem:[#allocation4 + $0x1b8] sm:$0xff]  ;;  %v3020_v51 = vpack.c.bf16 %v143_v43, %v137_v42 }
  0x44   :  { %v152_v49 = vld [vmem:[#allocation4 + $0x198] sm:$0xff]  ;;  %v158_v50 = vld [vmem:[#allocation4 + $0x1c8] sm:$0xff]  ;;  %3017 = vmatpush1.bf16.msra.mxu0 %v3016_v35  ;;  %v3052_v52 = vpack.c.bf16 %v145_v46, %v139_v45  ;;  %v3022_v53 = vpack.c.bf16 %v156_v48, %v150_v47  ;;  %v149_v54 = vld [vmem:[#allocation4 + $0x180] sm:$0xff] }
  0x45   :  { %3049 = vmatpush1.bf16.msra.mxu1 %v3048_v39  ;;  %3019 = vmatprep.subr.bf16.mxu0 %v3018_v40  ;;  %v155_v55 = vld [vmem:[#allocation4 + $0x1b0] sm:$0xff]  ;;  %v3054_v57 = vpack.c.bf16 %v158_v50, %v152_v49  ;;  %v157_v58 = vld [vmem:[#allocation4 + $0x1c0] sm:$0xff]  ;;  %v162_v59 = vld [vmem:[#allocation4 + $0x1e8] sm:$0xff] }
  0x46   :  { %v151_v56 = vld [vmem:[#allocation4 + $0x190] sm:$0xff]  ;;  %3051 = vmatprep.subr.bf16.mxu1 %v3050_v44  ;;  %v168_v60 = vld [vmem:[#allocation4 + $0x218] sm:$0xff]  ;;  %v170_v62 = vld [vmem:[#allocation4 + $0x228] sm:$0xff]  ;;  %v3024_v63 = vpack.c.bf16 %v155_v55, %v149_v54 }
  0x47   :  { %v164_v61 = vld [vmem:[#allocation4 + $0x1f8] sm:$0xff]  ;;  %v3056_v1 = vpack.c.bf16 %v157_v58, %v151_v56  ;;  %v3026_v2 = vpack.c.bf16 %v168_v60, %v162_v59  ;;  %v161_v3 = vld [vmem:[#allocation4 + $0x1e0] sm:$0xff]  ;;  %v167_v4 = vld [vmem:[#allocation4 + $0x210] sm:$0xff] }
  0x48   :  { %3021 = vmatpush1.bf16.msra.mxu0 %v3020_v51  ;;  %v163_v5 = vld [vmem:[#allocation4 + $0x1f0] sm:$0xff]  ;;  %v3058_v6 = vpack.c.bf16 %v170_v62, %v164_v61  ;;  %v169_v7 = vld [vmem:[#allocation4 + $0x220] sm:$0xff]  ;;  %v174_v8 = vld [vmem:[#allocation4 + $0x248] sm:$0xff]  ;;  %v3028_v12 = vpack.c.bf16 %v167_v4, %v161_v3 }
  0x49   :  { %3053 = vmatpush1.bf16.msra.mxu1 %v3052_v52  ;;  %3023 = vmatprep.subr.bf16.mxu0 %v3022_v53  ;;  %v180_v9 = vld [vmem:[#allocation4 + $0x278] sm:$0xff]  ;;  %v182_v11 = vld [vmem:[#allocation4 + $0x288] sm:$0xff]  ;;  %v173_v13 = vld [vmem:[#allocation4 + $0x240] sm:$0xff]  ;;  %v3060_v14 = vpack.c.bf16 %v169_v7, %v163_v5 }
  0x4a   :  { %3055 = vmatprep.subr.bf16.mxu1 %v3054_v57  ;;  %v176_v10 = vld [vmem:[#allocation4 + $0x258] sm:$0xff]  ;;  %v3030_v15 = vpack.c.bf16 %v180_v9, %v174_v8  ;;  %v179_v16 = vld [vmem:[#allocation4 + $0x270] sm:$0xff]  ;;  %v76_v18 = vld [vmem:[%s6365_s0] sm:$0xff] }
  0x4b   :  { %v175_v17 = vld [vmem:[#allocation4 + $0x250] sm:$0xff]  ;;  %v3062_v19 = vpack.c.bf16 %v182_v11, %v176_v10  ;;  %v181_v20 = vld [vmem:[#allocation4 + $0x280] sm:$0xff]  ;;  %v186_v21 = vld [vmem:[#allocation4 + $0x2a8] sm:$0xff]  ;;  %85 = vst.msk [vmem:[#allocation2] sm:$0xff] %vm84_vm0, %v76_v18  ;;  %v3032_v25 = vpack.c.bf16 %v179_v16, %v173_v13 }
  0x4c   :  { %3025 = vmatpush1.bf16.msra.mxu0 %v3024_v63  ;;  %v192_v22 = vld [vmem:[#allocation4 + $0x2d8] sm:$0xff]  ;;  %v194_v24 = vld [vmem:[#allocation4 + $0x2e8] sm:$0xff]  ;;  %v185_v26 = vld [vmem:[#allocation4 + $0x2a0] sm:$0xff]  ;;  %v3064_v27 = vpack.c.bf16 %v181_v20, %v175_v17 }
  0x4d   :  { %3057 = vmatpush1.bf16.msra.mxu1 %v3056_v1  ;;  %3027 = vmatprep.subr.bf16.mxu0 %v3026_v2  ;;  %v188_v23 = vld [vmem:[#allocation4 + $0x2b8] sm:$0xff]  ;;  %v3034_v28 = vpack.c.bf16 %v192_v22, %v186_v21  ;;  %v191_v29 = vld [vmem:[#allocation4 + $0x2d0] sm:$0xff]  ;;  %v77_v31 = vld [vmem:[%s6365_s0 + $0x8] sm:$0xff] }
  0x4e   :  { %3059 = vmatprep.subr.bf16.mxu1 %v3058_v6  ;;  %v187_v30 = vld [vmem:[#allocation4 + $0x2b0] sm:$0xff]  ;;  %v3066_v32 = vpack.c.bf16 %v194_v24, %v188_v23  ;;  %v193_v33 = vld [vmem:[#allocation4 + $0x2e0] sm:$0xff]  ;;  %v106_v34 = vld [vmem:[#allocation4 + $0x28] sm:$0xff]  ;;  %86 = vst.msk [vmem:[#allocation2 + $0x8] sm:$0xff] %vm84_vm0, %v77_v31  ;;  %v3036_v38 = vpack.c.bf16 %v191_v29, %v185_v26 }
  0x4f   :  { %v112_v35 = vld [vmem:[#allocation4 + $0x58] sm:$0xff]  ;;  %v617_v36 = vld [vmem:[#allocation7 + $0x8] sm:$0xff]  ;;  %v78_v39 = vld [vmem:[%s6365_s0 + $0x10] sm:$0xff]  ;;  %v3068_v40 = vpack.c.bf16 %v193_v33, %v187_v30 }
  0x50   :  { %3029 = vmatpush1.bf16.msra.mxu0 %v3028_v12  ;;  %v623_v37 = vld [vmem:[#allocation7 + $0x38] sm:$0xff]  ;;  %v3070_v41 = vpack.c.bf16 %v112_v35, %v106_v34  ;;  %v105_v42 = vld [vmem:[#allocation4 + $0x20] sm:$0xff]  ;;  %v111_v43 = vld [vmem:[#allocation4 + $0x50] sm:$0xff]  ;;  %87 = vst.msk [vmem:[#allocation2 + $0x10] sm:$0xff] %vm84_vm0, %v78_v39 }
  0x51   :  { %3061 = vmatpush1.bf16.msra.mxu1 %v3060_v14  ;;  %3031 = vmatprep.subr.bf16.mxu0 %v3030_v15  ;;  %v4983_v44 = vpack.c.bf16 %v623_v37, %v617_v36  ;;  %v616_v45 = vld [vmem:[#allocation7] sm:$0xff]  ;;  %v622_v46 = vld [vmem:[#allocation7 + $0x30] sm:$0xff]  ;;  %v118_v47 = vld [vmem:[#allocation4 + $0x88] sm:$0xff]  ;;  %v3072_v52 = vpack.c.bf16 %v111_v43, %v105_v42 }
  0x52   :  { %3063 = vmatprep.subr.bf16.mxu1 %v3062_v19  ;;  %v124_v48 = vld [vmem:[#allocation4 + $0xb8] sm:$0xff]  ;;  %v629_v49 = vld [vmem:[#allocation7 + $0x68] sm:$0xff]  ;;  %v4985_v51 = vld [vmem:[#allocation2] sm:$0xff]  ;;  %v4990_v54 = vpack.c.bf16 %v622_v46, %v616_v45 }
  0x53   :  { %6523 = vst [vmem:[#allocation14_spill] sm:$0xff] %v4983_v44  ;;  %v635_v50 = vld [vmem:[#allocation7 + $0x98] sm:$0xff]  ;;  %v117_v55 = vld [vmem:[#allocation4 + $0x80] sm:$0xff]  ;;  %v123_v56 = vld [vmem:[#allocation4 + $0xb0] sm:$0xff]  ;;  %v3074_v58 = vpack.c.bf16 %v124_v48, %v118_v47 }
  0x54   :  { %3033 = vmatpush1.bf16.msra.mxu0 %v3032_v25  ;;  %v79_v53 = vld [vmem:[%s6365_s0 + $0x18] sm:$0xff]  ;;  %v628_v57 = vld [vmem:[#allocation7 + $0x60] sm:$0xff]  ;;  %v4994_v59 = vpack.c.bf16 %v635_v50, %v629_v49  ;;  %v634_v60 = vld [vmem:[#allocation7 + $0x90] sm:$0xff]  ;;  %v3076_v4 = vpack.c.bf16 %v123_v56, %v117_v55 }
  0x55   :  { %3065 = vmatpush1.bf16.msra.mxu1 %v3064_v27  ;;  %3035 = vmatprep.subr.bf16.mxu0 %v3034_v28  ;;  %88 = vst.msk [vmem:[#allocation2 + $0x18] sm:$0xff] %vm84_vm0, %v79_v53  ;;  %v130_v61 = vld [vmem:[#allocation4 + $0xe8] sm:$0xff]  ;;  %v136_v62 = vld [vmem:[#allocation4 + $0x118] sm:$0xff]  ;;  %v80_v2 = vld [vmem:[%s6365_s0 + $0x20] sm:$0xff]  ;;  %v5006_v6 = vpack.c.bf16 %v634_v60, %v628_v57 }
  0x56   :  { %3067 = vmatprep.subr.bf16.mxu1 %v3066_v32  ;;  %v641_v63 = vld [vmem:[#allocation7 + $0xc8] sm:$0xff]  ;;  %v647_v1 = vld [vmem:[#allocation7 + $0xf8] sm:$0xff]  ;;  %v129_v5 = vld [vmem:[#allocation4 + $0xe0] sm:$0xff]  ;;  %89 = vst.msk [vmem:[#allocation2 + $0x20] sm:$0xff] %vm84_vm0, %v80_v2  ;;  %v3078_v7 = vpack.c.bf16 %v136_v62, %v130_v61 }
  0x57   :  { %v5001_v3 = vld [vmem:[#allocation2 + $0x8] sm:$0xff]  ;;  %v135_v8 = vld [vmem:[#allocation4 + $0x110] sm:$0xff]  ;;  %v640_v9 = vld [vmem:[#allocation7 + $0xc0] sm:$0xff]  ;;  %v5009_v11 = vpack.c.bf16 %v647_v1, %v641_v63 }
  0x58   :  { %3037 = vmatpush1.bf16.msra.mxu0 %v3036_v38  ;;  %v646_v10 = vld [vmem:[#allocation7 + $0xf0] sm:$0xff]  ;;  %v142_v12 = vld [vmem:[#allocation4 + $0x148] sm:$0xff]  ;;  %v148_v13 = vld [vmem:[#allocation4 + $0x178] sm:$0xff]  ;;  %v3080_v18 = vpack.c.bf16 %v135_v8, %v129_v5 }
  0x59   :  { %3069 = vmatpush1.bf16.msra.mxu1 %v3068_v40  ;;  %3071 = vmatprep.subr.bf16.mxu0 %v3070_v41  ;;  %v81_v14 = vld [vmem:[%s6365_s0 + $0x28] sm:$0xff]  ;;  %v659_v16 = vld [vmem:[#allocation7 + $0x158] sm:$0xff]  ;;  %v5018_v17 = vld [vmem:[#allocation2 + $0x10] sm:$0xff]  ;;  %v5021_v20 = vpack.c.bf16 %v646_v10, %v640_v9  ;;  %v3082_v21 = vpack.c.bf16 %v148_v13, %v142_v12 }
  0x5a   :  { %3103 = vmatprep.subr.bf16.mxu1 %v4983_v44  ;;  %v653_v15 = vld [vmem:[#allocation7 + $0x128] sm:$0xff]  ;;  %90 = vst.msk [vmem:[#allocation2 + $0x28] sm:$0xff] %vm84_vm0, %v81_v14  ;;  %v141_v19 = vld [vmem:[#allocation4 + $0x140] sm:$0xff]  ;;  %v147_v22 = vld [vmem:[#allocation4 + $0x170] sm:$0xff] }
  0x5b   :  { %294 = vmatmul.mubr.f32.vlgmr.msra.gmra.mrb[0].mxu0 %v4985_v51  ;;  %v652_v23 = vld [vmem:[#allocation7 + $0x120] sm:$0xff]  ;;  %v658_v24 = vld [vmem:[#allocation7 + $0x150] sm:$0xff]  ;;  %v5024_v25 = vpack.c.bf16 %v659_v16, %v653_v15  ;;  %v154_v26 = vld [vmem:[#allocation4 + $0x1a8] sm:$0xff]  ;;  %v3084_v32 = vpack.c.bf16 %v147_v22, %v141_v19 }
  0x5c   :  { %407 = vmatmul.mubr.f32.vlgmr.msra.gmra.mrb[0].mxu1 %v4985_v51  ;;  %3073 = vmatpush1.bf16.msra.mxu0 %v3072_v52  ;;  %v160_v27 = vld [vmem:[#allocation4 + $0x1d8] sm:$0xff]  ;;  %v82_v28 = vld [vmem:[%s6365_s0 + $0x30] sm:$0xff]  ;;  %v665_v29 = vld [vmem:[#allocation7 + $0x188] sm:$0xff]  ;;  %v5037_v34 = vpack.c.bf16 %v658_v24, %v652_v23 }
  0x5d   :  { %3105 = vmatpush1.bf16.msra.mxu1 %v4990_v54  ;;  %299 = vmatprep.mubr.f32.mxu0 %v6375_v0  ;;  %v671_v30 = vld [vmem:[#allocation7 + $0x1b8] sm:$0xff]  ;;  %91 = vst.msk [vmem:[#allocation2 + $0x30] sm:$0xff] %vm84_vm0, %v82_v28  ;;  %v153_v33 = vld [vmem:[#allocation4 + $0x1a0] sm:$0xff]  ;;  %v3086_v35 = vpack.c.bf16 %v160_v27, %v154_v26  ;;  %v159_v36 = vld [vmem:[#allocation4 + $0x1d0] sm:$0xff] }
  0x5e   :  { %3075 = vmatprep.subr.bf16.mxu0 %v3074_v58  ;;  %3107 = vmatprep.subr.bf16.mxu1 %v4994_v59  ;;  %v5034_v31 = vld [vmem:[#allocation2 + $0x18] sm:$0xff]  ;;  %v664_v37 = vld [vmem:[#allocation7 + $0x180] sm:$0xff]  ;;  %v5043_v39 = vpack.c.bf16 %v671_v30, %v665_v29  ;;  %v670_v40 = vld [vmem:[#allocation7 + $0x1b0] sm:$0xff]  ;;  %v3088_v47 = vpack.c.bf16 %v159_v36, %v153_v33 }
  0x5f   :  { %300 = vmatmul.mubr.f32.gmra.mrb[2].mxu0 %v5001_v3  ;;  %412 = vmatprep.mubr.f32.mxu1 %v6375_v0  ;;  %v83_v38 = vld [vmem:[%s6365_s0 + $0x38] sm:$0xff]  ;;  %v166_v41 = vld [vmem:[#allocation4 + $0x208] sm:$0xff]  ;;  %v5050_v46 = vld [vmem:[#allocation2 + $0x20] sm:$0xff]  ;;  %v5053_v48 = vpack.c.bf16 %v670_v40, %v664_v37 }
  0x60   :  { %3077 = vmatpush1.bf16.msra.mxu0 %v3076_v4  ;;  %305 = vmatprep.mubr.f32.mxu0 %v6375_v0  ;;  %v172_v42 = vld [vmem:[#allocation4 + $0x238] sm:$0xff]  ;;  %92 = vst.msk [vmem:[#allocation2 + $0x38] sm:$0xff] %vm84_vm0, %v83_v38  ;;  %v677_v43 = vld [vmem:[#allocation7 + $0x1e8] sm:$0xff]  ;;  %v165_v50 = vld [vmem:[#allocation4 + $0x200] sm:$0xff] }
  0x61   :  { %3109 = vmatpush1.bf16.msra.mxu1 %v5006_v6  ;;  %3079 = vmatprep.subr.bf16.mxu0 %v3078_v7  ;;  %v683_v45 = vld [vmem:[#allocation7 + $0x218] sm:$0xff]  ;;  %v3090_v49 = vpack.c.bf16 %v172_v42, %v166_v41  ;;  %v171_v52 = vld [vmem:[#allocation4 + $0x230] sm:$0xff]  ;;  %v676_v53 = vld [vmem:[#allocation7 + $0x1e0] sm:$0xff] }
  0x62   :  { %3111 = vmatprep.subr.bf16.mxu1 %v5009_v11  ;;  %413 = vmatmul.mubr.f32.gmra.mrb[2].mxu1 %v5001_v3  ;;  %v5056_v55 = vpack.c.bf16 %v683_v45, %v677_v43  ;;  %v682_v56 = vld [vmem:[#allocation7 + $0x210] sm:$0xff]  ;;  %v178_v57 = vld [vmem:[#allocation4 + $0x268] sm:$0xff]  ;;  %v184_v58 = vld [vmem:[#allocation4 + $0x298] sm:$0xff]  ;;  %v3092_v63 = vpack.c.bf16 %v171_v52, %v165_v50 }
  0x63   :  { %306 = vmatmul.mubr.f32.gmra.mrb[4].mxu0 %v5018_v17  ;;  %418 = vmatprep.mubr.f32.mxu1 %v6375_v0  ;;  %v689_v60 = vld [vmem:[#allocation7 + $0x248] sm:$0xff]  ;;  %v695_v61 = vld [vmem:[#allocation7 + $0x278] sm:$0xff]  ;;  %v5065_v1 = vpack.c.bf16 %v682_v56, %v676_v53  ;;  %v3094_v2 = vpack.c.bf16 %v184_v58, %v178_v57  ;;  %v177_v4 = vld [vmem:[#allocation4 + $0x260] sm:$0xff] }
  0x64   :  { %3081 = vmatpush1.bf16.msra.mxu0 %v3080_v18  ;;  %311 = vmatprep.mubr.f32.mxu0 %v6375_v0  ;;  %v5062_v62 = vld [vmem:[#allocation2 + $0x28] sm:$0xff]  ;;  %v183_v5 = vld [vmem:[#allocation4 + $0x290] sm:$0xff]  ;;  %v688_v7 = vld [vmem:[#allocation7 + $0x240] sm:$0xff]  ;;  %v5068_v8 = vpack.c.bf16 %v695_v61, %v689_v60 }
  0x65   :  { %3113 = vmatpush1.bf16.msra.mxu1 %v5021_v20  ;;  %3083 = vmatprep.subr.bf16.mxu0 %v3082_v21  ;;  %v694_v9 = vld [vmem:[#allocation7 + $0x270] sm:$0xff]  ;;  %v190_v10 = vld [vmem:[#allocation4 + $0x2c8] sm:$0xff]  ;;  %v196_v12 = vld [vmem:[#allocation4 + $0x2f8] sm:$0xff]  ;;  %v3096_v16 = vpack.c.bf16 %v183_v5, %v177_v4 }
  0x66   :  { %3115 = vmatprep.subr.bf16.mxu1 %v5024_v25  ;;  %419 = vmatmul.mubr.f32.gmra.mrb[4].mxu1 %v5018_v17  ;;  %v701_v13 = vld [vmem:[#allocation7 + $0x2a8] sm:$0xff]  ;;  %v707_v14 = vld [vmem:[#allocation7 + $0x2d8] sm:$0xff]  ;;  %v5074_v15 = vld [vmem:[#allocation2 + $0x30] sm:$0xff]  ;;  %v5077_v18 = vpack.c.bf16 %v694_v9, %v688_v7  ;;  %v3098_v19 = vpack.c.bf16 %v196_v12, %v190_v10 }
  0x67   :  { %312 = vmatmul.mubr.f32.gmra.mrb[6].mxu0 %v5034_v31  ;;  %424 = vmatprep.mubr.f32.mxu1 %v6375_v0  ;;  %v189_v21 = vld [vmem:[#allocation4 + $0x2c0] sm:$0xff]  ;;  %v195_v22 = vld [vmem:[#allocation4 + $0x2f0] sm:$0xff]  ;;  %v5080_v24 = vpack.c.bf16 %v707_v14, %v701_v13  ;;  %v619_v27 = vld [vmem:[#allocation7 + $0x18] sm:$0xff] }
  0x68   :  { %3085 = vmatpush1.bf16.msra.mxu0 %v3084_v32  ;;  %317 = vmatprep.mubr.f32.mxu0 %v6375_v0  ;;  %v700_v23 = vld [vmem:[#allocation7 + $0x2a0] sm:$0xff]  ;;  %v706_v26 = vld [vmem:[#allocation7 + $0x2d0] sm:$0xff]  ;;  %v625_v28 = vld [vmem:[#allocation7 + $0x48] sm:$0xff]  ;;  %v3100_v33 = vpack.c.bf16 %v195_v22, %v189_v21 }
  0x69   :  { %3117 = vmatpush1.bf16.msra.mxu1 %v5037_v34  ;;  %3087 = vmatprep.subr.bf16.mxu0 %v3086_v35  ;;  %v713_v29 = vld [vmem:[#allocation7 + $0x308] sm:$0xff]  ;;  %v719_v30 = vld [vmem:[#allocation7 + $0x338] sm:$0xff]  ;;  %v5089_v35 = vpack.c.bf16 %v706_v26, %v700_v23  ;;  %v5091_v36 = vpack.c.bf16 %v625_v28, %v619_v27  ;;  %v712_v37 = vld [vmem:[#allocation7 + $0x300] sm:$0xff] }
  0x6a   :  { %3119 = vmatprep.subr.bf16.mxu1 %v5043_v39  ;;  %425 = vmatmul.mubr.f32.gmra.mrb[6].mxu1 %v5034_v31  ;;  %v5086_v32 = vld [vmem:[#allocation2 + $0x38] sm:$0xff]  ;;  %v618_v38 = vld [vmem:[#allocation7 + $0x10] sm:$0xff]  ;;  %v624_v40 = vld [vmem:[#allocation7 + $0x40] sm:$0xff]  ;;  %v5094_v41 = vpack.c.bf16 %v719_v30, %v713_v29 }
  0x6b   :  { %318 = vmatmul.mubr.f32.gmra.mrb[8].mxu0 %v5050_v46  ;;  %430 = vmatprep.mubr.f32.mxu1 %v6375_v0  ;;  %6524 = vst [vmem:[#allocation15_spill] sm:$0xff] %v5091_v36  ;;  %v718_v42 = vld [vmem:[#allocation7 + $0x330] sm:$0xff]  ;;  %v631_v43 = vld [vmem:[#allocation7 + $0x78] sm:$0xff]  ;;  %v637_v45 = vld [vmem:[#allocation7 + $0xa8] sm:$0xff]  ;;  %v5100_v50 = vpack.c.bf16 %v624_v40, %v618_v38 }
  0x6c   :  { %3089 = vmatpush1.bf16.msra.mxu0 %v3088_v47  ;;  %323 = vmatprep.mubr.f32.mxu0 %v6375_v0  ;;  %v725_v47 = vld [vmem:[#allocation7 + $0x368] sm:$0xff]  ;;  %v5104_v52 = vpack.c.bf16 %v718_v42, %v712_v37  ;;  %v5106_v53 = vpack.c.bf16 %v637_v45, %v631_v43  ;;  %v724_v56 = vld [vmem:[#allocation7 + $0x360] sm:$0xff]  ;;  %v630_v57 = vld [vmem:[#allocation7 + $0x70] sm:$0xff] }
  0x6d   :  { %3121 = vmatpush1.bf16.msra.mxu1 %v5053_v48  ;;  %3091 = vmatprep.subr.bf16.mxu0 %v3090_v49  ;;  %v731_v49 = vld [vmem:[#allocation7 + $0x398] sm:$0xff]  ;;  %6525 = vst [vmem:[#allocation16_spill] sm:$0xff] %v5100_v50  ;;  %v636_v58 = vld [vmem:[#allocation7 + $0xa0] sm:$0xff]  ;;  %v730_v61 = vld [vmem:[#allocation7 + $0x390] sm:$0xff] }
  0x6e   :  { %3123 = vmatprep.subr.bf16.mxu1 %v5056_v55  ;;  %431 = vmatmul.mubr.f32.gmra.mrb[8].mxu1 %v5050_v46  ;;  %6526 = vst [vmem:[#allocation17_spill] sm:$0xff] %v5106_v53  ;;  %v5109_v60 = vpack.c.bf16 %v731_v49, %v725_v47  ;;  %v737_v4 = vld [vmem:[#allocation7 + $0x3c8] sm:$0xff]  ;;  %v743_v5 = vld [vmem:[#allocation7 + $0x3f8] sm:$0xff]  ;;  %v5115_v7 = vpack.c.bf16 %v636_v58, %v630_v57  ;;  %v736_v12 = vld [vmem:[#allocation7 + $0x3c0] sm:$0xff] }
  0x6f   :  { %324 = vmatmul.mubr.f32.gmra.mrb[10].mxu0 %v5062_v62  ;;  %436 = vmatprep.mubr.f32.mxu1 %v6375_v0  ;;  %v5120_v9 = vpack.c.bf16 %v730_v61, %v724_v56  ;;  %v648_v13 = vld [vmem:[#allocation7 + $0x100] sm:$0xff]  ;;  %v5125_v14 = vpack.c.bf16 %v743_v5, %v737_v4  ;;  %v661_v21 = vld [vmem:[#allocation7 + $0x168] sm:$0xff]  ;;  %v755_v23 = vld [vmem:[#allocation7 + $0x458] sm:$0xff] }
  0x70   :  { %3093 = vmatpush1.bf16.msra.mxu0 %v3092_v63  ;;  %329 = vmatprep.mubr.f32.mxu0 %v6375_v0  ;;  %v643_v63 = vld [vmem:[#allocation7 + $0xd8] sm:$0xff]  ;;  %6527 = vst [vmem:[#allocation18_spill] sm:$0xff] %v5115_v7  ;;  %v749_v22 = vld [vmem:[#allocation7 + $0x428] sm:$0xff]  ;;  %v748_v29 = vld [vmem:[#allocation7 + $0x420] sm:$0xff] }
  0x71   :  { %3125 = vmatpush1.bf16.msra.mxu1 %v5065_v1  ;;  %3095 = vmatprep.subr.bf16.mxu0 %v3094_v2  ;;  %v649_v2 = vld [vmem:[#allocation7 + $0x108] sm:$0xff]  ;;  %6529 = vst [vmem:[#allocation20_spill] sm:$0xff] %v5125_v14  ;;  %v654_v30 = vld [vmem:[#allocation7 + $0x130] sm:$0xff]  ;;  %v667_v38 = vld [vmem:[#allocation7 + $0x198] sm:$0xff] }
  0x72   :  { %3127 = vmatprep.subr.bf16.mxu1 %v5068_v8  ;;  %437 = vmatmul.mubr.f32.gmra.mrb[10].mxu1 %v5062_v62  ;;  %v5122_v10 = vpack.c.bf16 %v649_v2, %v643_v63  ;;  %v754_v37 = vld [vmem:[#allocation7 + $0x450] sm:$0xff]  ;;  %v673_v40 = vld [vmem:[#allocation7 + $0x1c8] sm:$0xff]  ;;  %v767_v43 = vld [vmem:[#allocation7 + $0x4b8] sm:$0xff] }
  0x73   :  { %330 = vmatmul.mubr.f32.gmra.mrb[12].mxu0 %v5074_v15  ;;  %442 = vmatprep.mubr.f32.mxu1 %v6375_v0  ;;  %v761_v42 = vld [vmem:[#allocation7 + $0x488] sm:$0xff]  ;;  %v5148_v47 = vpack.c.bf16 %v754_v37, %v748_v29  ;;  %v5150_v49 = vpack.c.bf16 %v673_v40, %v667_v38  ;;  %v760_v56 = vld [vmem:[#allocation7 + $0x480] sm:$0xff]  ;;  %v666_v57 = vld [vmem:[#allocation7 + $0x190] sm:$0xff] }
  0x74   :  { %3097 = vmatpush1.bf16.msra.mxu0 %v3096_v16  ;;  %335 = vmatprep.mubr.f32.mxu0 %v6375_v0  ;;  %6528 = vst [vmem:[#allocation19_spill] sm:$0xff] %v5122_v10  ;;  %v742_v16 = vld [vmem:[#allocation7 + $0x3f0] sm:$0xff]  ;;  %v672_v58 = vld [vmem:[#allocation7 + $0x1c0] sm:$0xff]  ;;  %v679_v63 = vld [vmem:[#allocation7 + $0x1f8] sm:$0xff] }
  0x75   :  { %3129 = vmatpush1.bf16.msra.mxu1 %v5077_v18  ;;  %3099 = vmatprep.subr.bf16.mxu0 %v3098_v19  ;;  %v655_v19 = vld [vmem:[#allocation7 + $0x138] sm:$0xff]  ;;  %v5134_v27 = vpack.c.bf16 %v742_v16, %v736_v12  ;;  %6535 = vst [vmem:[#allocation26_spill] sm:$0xff] %v5148_v47  ;;  %6536 = vst [vmem:[#allocation27_spill] sm:$0xff] %v5150_v49  ;;  %v766_v61 = vld [vmem:[#allocation7 + $0x4b0] sm:$0xff]  ;;  %v5157_v12 = vpack.c.bf16 %v672_v58, %v666_v57 }
  0x76   :  { %3131 = vmatprep.subr.bf16.mxu1 %v5080_v24  ;;  %443 = vmatmul.mubr.f32.gmra.mrb[12].mxu1 %v5074_v15  ;;  %v5136_v28 = vpack.c.bf16 %v661_v21, %v655_v19  ;;  %v685_v2 = vld [vmem:[#allocation7 + $0x228] sm:$0xff]  ;;  %v779_v5 = vld [vmem:[#allocation7 + $0x518] sm:$0xff]  ;;  %v772_v16 = vld [vmem:[#allocation7 + $0x4e0] sm:$0xff] }
  0x77   :  { %336 = vmatmul.mubr.f32.gmra.mrb[14].mxu0 %v5086_v32  ;;  %448 = vmatprep.mubr.f32.mxu1 %v6375_v0  ;;  %6531 = vst [vmem:[#allocation22_spill] sm:$0xff] %v5134_v27  ;;  %v773_v4 = vld [vmem:[#allocation7 + $0x4e8] sm:$0xff]  ;;  %6538 = vst [vmem:[#allocation29_spill] sm:$0xff] %v5157_v12  ;;  %v678_v19 = vld [vmem:[#allocation7 + $0x1f0] sm:$0xff] }
  0x78   :  { %3101 = vmatpush1.bf16.msra.mxu0 %v3100_v33  ;;  %519 = vmatprep.mubr.f32.mxu0 %v6375_v0  ;;  %6532 = vst [vmem:[#allocation23_spill] sm:$0xff] %v5136_v28  ;;  %v660_v33 = vld [vmem:[#allocation7 + $0x160] sm:$0xff]  ;;  %v697_v29 = vld [vmem:[#allocation7 + $0x288] sm:$0xff]  ;;  %v790_v57 = vld [vmem:[#allocation7 + $0x570] sm:$0xff] }
  0x79   :  { %3133 = vmatpush1.bf16.msra.mxu1 %v5089_v35  ;;  %3167 = vmatprep.subr.bf16.mxu0 %v5091_v36  ;;  %v5143_v45 = vpack.c.bf16 %v660_v33, %v654_v30  ;;  %v684_v21 = vld [vmem:[#allocation7 + $0x220] sm:$0xff]  ;;  %v785_v30 = vld [vmem:[#allocation7 + $0x548] sm:$0xff]  ;;  %v791_v33 = vld [vmem:[#allocation7 + $0x578] sm:$0xff] }
  0x7a   :  { %3135 = vmatprep.subr.bf16.mxu1 %v5094_v41  ;;  %449 = vmatmul.mubr.f32.gmra.mrb[14].mxu1 %v5086_v32  ;;  %v5171_v37 = vpack.c.bf16 %v684_v21, %v678_v19  ;;  %v703_v58 = vld [vmem:[#allocation7 + $0x2b8] sm:$0xff]  ;;  %v796_v19 = vld [vmem:[#allocation7 + $0x5a0] sm:$0xff]  ;;  %v702_v21 = vld [vmem:[#allocation7 + $0x2b0] sm:$0xff] }
  0x7b   :  { %520 = vmatmul.mubr.f32.vlgmr.msra.gmra.mrb[16].mxu0 %v4985_v51  ;;  %879 = vmatprep.mubr.f32.mxu1 %v6375_v0  ;;  %v642_v51 = vld [vmem:[#allocation7 + $0xd0] sm:$0xff]  ;;  %6534 = vst [vmem:[#allocation25_spill] sm:$0xff] %v5143_v45 }
  0x7c   :  { %3169 = vmatpush1.bf16.msra.mxu0 %v5100_v50  ;;  %525 = vmatprep.mubr.f32.mxu0 %v6375_v0  ;;  %v5129_v26 = vpack.c.bf16 %v648_v13, %v642_v51  ;;  %v5162_v51 = vpack.c.bf16 %v766_v61, %v760_v56  ;;  %v5164_v13 = vpack.c.bf16 %v685_v2, %v679_v63  ;;  %v696_v56 = vld [vmem:[#allocation7 + $0x280] sm:$0xff]  ;;  %v709_v61 = vld [vmem:[#allocation7 + $0x2e8] sm:$0xff]  ;;  %v803_v2 = vld [vmem:[#allocation7 + $0x5d8] sm:$0xff] }
  0x7d   :  { %3137 = vmatpush1.bf16.msra.mxu1 %v5104_v52  ;;  %3171 = vmatprep.subr.bf16.mxu0 %v5106_v53  ;;  %6542 = vst [vmem:[#allocation33_spill] sm:$0xff] %v5171_v37  ;;  %v797_v63 = vld [vmem:[#allocation7 + $0x5a8] sm:$0xff] }
  0x7e   :  { %3139 = vmatprep.subr.bf16.mxu1 %v5109_v60  ;;  %6530 = vst [vmem:[#allocation21_spill] sm:$0xff] %v5129_v26  ;;  %6539 = vst [vmem:[#allocation30_spill] sm:$0xff] %v5162_v51 }
  0x7f   :  { %526 = vmatmul.mubr.f32.gmra.mrb[18].mxu0 %v5001_v3  ;;  %v5139_v3 = vpack.c.bf16 %v755_v23, %v749_v22  ;;  %6540 = vst [vmem:[#allocation31_spill] sm:$0xff] %v5164_v13  ;;  %v778_v22 = vld [vmem:[#allocation7 + $0x510] sm:$0xff]  ;;  %v691_v23 = vld [vmem:[#allocation7 + $0x258] sm:$0xff] }
  0x80   :  { %3173 = vmatpush1.bf16.msra.mxu0 %v5115_v7  ;;  %531 = vmatprep.mubr.f32.mxu0 %v6375_v0  ;;  %v5176_v38 = vpack.c.bf16 %v778_v22, %v772_v16  ;;  %v5178_v40 = vpack.c.bf16 %v697_v29, %v691_v23  ;;  %v5192_v16 = vpack.c.bf16 %v709_v61, %v703_v58  ;;  %v708_v22 = vld [vmem:[#allocation7 + $0x2e0] sm:$0xff]  ;;  %v802_v23 = vld [vmem:[#allocation7 + $0x5d0] sm:$0xff]  ;;  %v715_v29 = vld [vmem:[#allocation7 + $0x318] sm:$0xff] }
  0x81   :  { %3141 = vmatpush1.bf16.msra.mxu1 %v5120_v9  ;;  %3175 = vmatprep.subr.bf16.mxu0 %v5122_v10  ;;  %6533 = vst [vmem:[#allocation24_spill] sm:$0xff] %v5139_v3  ;;  %v714_v58 = vld [vmem:[#allocation7 + $0x310] sm:$0xff]  ;;  %v720_v61 = vld [vmem:[#allocation7 + $0x340] sm:$0xff] }
  0x82   :  { %3143 = vmatprep.subr.bf16.mxu1 %v5125_v14  ;;  %6543 = vst [vmem:[#allocation34_spill] sm:$0xff] %v5176_v38  ;;  %6544 = vst [vmem:[#allocation35_spill] sm:$0xff] %v5178_v40 }
  0x83   :  { %532 = vmatmul.mubr.f32.gmra.mrb[20].mxu0 %v5018_v17  ;;  %v5153_v17 = vpack.c.bf16 %v767_v43, %v761_v42  ;;  %v784_v42 = vld [vmem:[#allocation7 + $0x540] sm:$0xff]  ;;  %v690_v43 = vld [vmem:[#allocation7 + $0x250] sm:$0xff]  ;;  %6548 = vst [vmem:[#allocation39_spill] sm:$0xff] %v5192_v16 }
  0x84   :  { %3177 = vmatpush1.bf16.msra.mxu0 %v5129_v26  ;;  %537 = vmatprep.mubr.f32.mxu0 %v6375_v0 }
  0x85   :  { %3145 = vmatpush1.bf16.msra.mxu1 %v5134_v27  ;;  %3179 = vmatprep.subr.bf16.mxu0 %v5136_v28  ;;  %6537 = vst [vmem:[#allocation28_spill] sm:$0xff] %v5153_v17 }
  0x86   :  { %3147 = vmatprep.subr.bf16.mxu1 %v5139_v3 }
  0x87   :  { %538 = vmatmul.mubr.f32.gmra.mrb[22].mxu0 %v5034_v31  ;;  %v5167_v31 = vpack.c.bf16 %v779_v5, %v773_v4  ;;  %v5185_v4 = vpack.c.bf16 %v696_v56, %v690_v43  ;;  %v5190_v5 = vpack.c.bf16 %v790_v57, %v784_v42  ;;  %v627_v43 = vld [vmem:[#allocation7 + $0x58] sm:$0xff]  ;;  %v5199_v42 = vpack.c.bf16 %v708_v22, %v702_v21  ;;  %v733_v22 = vld [vmem:[#allocation7 + $0x3a8] sm:$0xff] }
  0x88   :  { %3181 = vmatpush1.bf16.msra.mxu0 %v5143_v45  ;;  %543 = vmatprep.mubr.f32.mxu0 %v6375_v0  ;;  %v5204_v56 = vpack.c.bf16 %v802_v23, %v796_v19  ;;  %v727_v21 = vld [vmem:[#allocation7 + $0x378] sm:$0xff]  ;;  %v5213_v19 = vpack.c.bf16 %v720_v61, %v714_v58  ;;  %v6555_v23 = vmov 0.0   ;;  %v745_v61 = vld [vmem:[#allocation7 + $0x408] sm:$0xff] }
  0x89   :  { %3149 = vmatpush1.bf16.msra.mxu1 %v5148_v47  ;;  %3183 = vmatprep.subr.bf16.mxu0 %v5150_v49  ;;  %6541 = vst [vmem:[#allocation32_spill] sm:$0xff] %v5167_v31  ;;  %6546 = vst [vmem:[#allocation37_spill] sm:$0xff] %v5185_v4  ;;  %v739_v58 = vld [vmem:[#allocation7 + $0x3d8] sm:$0xff] }
  0x8a   :  { %3151 = vmatprep.subr.bf16.mxu1 %v5153_v17  ;;  %6547 = vst [vmem:[#allocation38_spill] sm:$0xff] %v5190_v5  ;;  %6550 = vst [vmem:[#allocation41_spill] sm:$0xff] %v5199_v42 }
  0x8b   :  { %544 = vmatmul.mubr.f32.gmra.mrb[24].mxu0 %v5050_v46  ;;  %v5181_v46 = vpack.c.bf16 %v791_v33, %v785_v30  ;;  %v721_v30 = vld [vmem:[#allocation7 + $0x348] sm:$0xff]  ;;  %6551 = vst [vmem:[#allocation42_spill] sm:$0xff] %v5204_v56  ;;  %6554 = vst [vmem:[#allocation45_spill] sm:$0xff] %v5213_v19 }
  0x8c   :  { %3185 = vmatpush1.bf16.msra.mxu0 %v5157_v12  ;;  %549 = vmatprep.mubr.f32.mxu0 %v6375_v0  ;;  %v621_v33 = vld [vmem:[#allocation7 + $0x28] sm:$0xff]  ;;  %v5206_v57 = vpack.c.bf16 %v721_v30, %v715_v29  ;;  %v5220_v30 = vpack.c.bf16 %v733_v22, %v727_v21  ;;  %v5233_v21 = vpack.c.bf16 %v745_v61, %v739_v58  ;;  %v644_v22 = vld [vmem:[#allocation7 + $0xe0] sm:$0xff] }
  0x8d   :  { %3153 = vmatpush1.bf16.msra.mxu1 %v5162_v51  ;;  %3187 = vmatprep.subr.bf16.mxu0 %v5164_v13  ;;  %6545 = vst [vmem:[#allocation36_spill] sm:$0xff] %v5181_v46  ;;  %v656_v61 = vld [vmem:[#allocation7 + $0x140] sm:$0xff] }
  0x8e   :  { %3155 = vmatprep.subr.bf16.mxu1 %v5167_v31  ;;  %6552 = vst [vmem:[#allocation43_spill] sm:$0xff] %v5206_v57  ;;  %6557 = vst [vmem:[#allocation47_spill] sm:$0xff] %v5220_v30 }
  0x8f   :  { %550 = vmatmul.mubr.f32.gmra.mrb[26].mxu0 %v5062_v62  ;;  %v5195_v62 = vpack.c.bf16 %v803_v2, %v797_v63  ;;  %v620_v63 = vld [vmem:[#allocation7 + $0x20] sm:$0xff]  ;;  %v626_v2 = vld [vmem:[#allocation7 + $0x50] sm:$0xff]  ;;  %6561 = vst [vmem:[#allocation51_spill] sm:$0xff] %v5233_v21 }
  0x90   :  { %3189 = vmatpush1.bf16.msra.mxu0 %v5171_v37  ;;  %555 = vmatprep.mubr.f32.mxu0 %v6375_v0  ;;  %v5218_v29 = vpack.c.bf16 %v626_v2, %v620_v63 }
  0x91   :  { %3157 = vmatpush1.bf16.msra.mxu1 %v5176_v38  ;;  %3191 = vmatprep.subr.bf16.mxu0 %v5178_v40  ;;  %6549 = vst [vmem:[#allocation40_spill] sm:$0xff] %v5195_v62 }
  0x92   :  { %3159 = vmatprep.subr.bf16.mxu1 %v5181_v46  ;;  %6556 = vst [vmem:[#allocation46_spill] sm:$0xff] %v5218_v29 }
  0x93   :  { %556 = vmatmul.mubr.f32.gmra.mrb[28].mxu0 %v5074_v15  ;;  %v5209_v15 = vpack.c.bf16 %v627_v43, %v621_v33  ;;  %v726_v33 = vld [vmem:[#allocation7 + $0x370] sm:$0xff]  ;;  %v732_v43 = vld [vmem:[#allocation7 + $0x3a0] sm:$0xff] }
  0x94   :  { %3193 = vmatpush1.bf16.msra.mxu0 %v5185_v4  ;;  %561 = vmatprep.mubr.f32.mxu0 %v6375_v0  ;;  %v633_v4 = vld [vmem:[#allocation7 + $0x88] sm:$0xff]  ;;  %v639_v0 = vld [vmem:[#allocation7 + $0xb8] sm:$0xff]  ;;  %v5227_v63 = vpack.c.bf16 %v732_v43, %v726_v33 }
  0x95   :  { %3161 = vmatpush1.bf16.msra.mxu1 %v5190_v5  ;;  %3195 = vmatprep.subr.bf16.mxu0 %v5192_v16  ;;  %6553 = vst [vmem:[#allocation44_spill] sm:$0xff] %v5209_v15  ;;  %v632_v16 = vld [vmem:[#allocation7 + $0x80] sm:$0xff]  ;;  %v651_v5 = vld [vmem:[#allocation7 + $0x118] sm:$0xff]  ;;  %v657_v33 = vld [vmem:[#allocation7 + $0x148] sm:$0xff] }
  0x96   :  { %3163 = vmatprep.subr.bf16.mxu1 %v5195_v62  ;;  %v645_v62 = vld [vmem:[#allocation7 + $0xe8] sm:$0xff]  ;;  %6559 = vst [vmem:[#allocation49_spill] sm:$0xff] %v5227_v63  ;;  %v663_v43 = vld [vmem:[#allocation7 + $0x178] sm:$0xff] }
  0x97   :  { %562 = vmatmul.mubr.f32.gmra.mrb[30].mxu0 %v5086_v32  ;;  %v5223_v32 = vpack.c.bf16 %v639_v0, %v633_v4  ;;  %v738_v0 = vld [vmem:[#allocation7 + $0x3d0] sm:$0xff]  ;;  %v744_v4 = vld [vmem:[#allocation7 + $0x400] sm:$0xff] }
  0x98   :  { %3197 = vmatpush1.bf16.msra.mxu0 %v5199_v42  ;;  %950 = vmatprep.mubr.f32.mxu0 %v6555_v23  ;;  %v638_v42 = vld [vmem:[#allocation7 + $0xb0] sm:$0xff] }
  0x99   :  { %3165 = vmatpush1.bf16.msra.mxu1 %v5204_v56  ;;  %3199 = vmatprep.subr.bf16.mxu0 %v5206_v57  ;;  %6558 = vst [vmem:[#allocation48_spill] sm:$0xff] %v5223_v32  ;;  %v5231_v2 = vpack.c.bf16 %v638_v42, %v632_v16  ;;  %v5236_v57 = vpack.c.bf16 %v651_v5, %v645_v62  ;;  %v751_v56 = vld [vmem:[#allocation7 + $0x438] sm:$0xff]  ;;  %v750_v5 = vld [vmem:[#allocation7 + $0x430] sm:$0xff]  ;;  %v756_v62 = vld [vmem:[#allocation7 + $0x460] sm:$0xff] }
  0x9a   :  { %3231 = vmatprep.subr.bf16.mxu1 %v5209_v15  ;;  %v650_v15 = vld [vmem:[#allocation7 + $0x110] sm:$0xff]  ;;  %v5240_v16 = vpack.c.bf16 %v744_v4, %v738_v0  ;;  %v669_v0 = vld [vmem:[#allocation7 + $0x1a8] sm:$0xff]  ;;  %v675_v4 = vld [vmem:[#allocation7 + $0x1d8] sm:$0xff] }
  0x9b   :  { %6560 = vst [vmem:[#allocation50_spill] sm:$0xff] %v5231_v2  ;;  %6562 = vst [vmem:[#allocation52_spill] sm:$0xff] %v5236_v57  ;;  %v5244_v42 = vpack.c.bf16 %v650_v15, %v644_v22  ;;  %v768_v22 = vld [vmem:[#allocation7 + $0x4c0] sm:$0xff] }
  0x9c   :  { %880 = vmatmul.mubr.f32.vlgmr.msra.gmra.mrb[16].mxu1 %v6555_v23  ;;  %3201 = vmatpush1.bf16.msra.mxu0 %v5213_v19  ;;  %v757_v19 = vld [vmem:[#allocation7 + $0x468] sm:$0xff]  ;;  %6563 = vst [vmem:[#allocation53_spill] sm:$0xff] %v5240_v16 }
  0x9d   :  { %3233 = vmatpush1.bf16.msra.mxu1 %v5218_v29  ;;  %3203 = vmatprep.subr.bf16.mxu0 %v5220_v30  ;;  %6564 = vst [vmem:[#allocation54_spill] sm:$0xff] %v5244_v42  ;;  %v5246_v58 = vpack.c.bf16 %v757_v19, %v751_v56  ;;  %v662_v29 = vld [vmem:[#allocation7 + $0x170] sm:$0xff]  ;;  %v763_v30 = vld [vmem:[#allocation7 + $0x498] sm:$0xff] }
  0x9e   :  { %3235 = vmatprep.subr.bf16.mxu1 %v5223_v32  ;;  %1021 = vmatprep.mubr.f32.mxu1 %v6555_v23  ;;  %v5249_v32 = vpack.c.bf16 %v663_v43, %v657_v33  ;;  %v5256_v56 = vpack.c.bf16 %v662_v29, %v656_v61  ;;  %v762_v19 = vld [vmem:[#allocation7 + $0x490] sm:$0xff]  ;;  %v668_v33 = vld [vmem:[#allocation7 + $0x1a0] sm:$0xff]  ;;  %v5261_v43 = vpack.c.bf16 %v675_v4, %v669_v0 }
  0x9f   :  { %6565 = vst [vmem:[#allocation55_spill] sm:$0xff] %v5246_v58  ;;  %v780_v61 = vld [vmem:[#allocation7 + $0x520] sm:$0xff] }
  0xa0   :  { %3205 = vmatpush1.bf16.msra.mxu0 %v5227_v63  ;;  %6566 = vst [vmem:[#allocation56_spill] sm:$0xff] %v5249_v32  ;;  %v769_v63 = vld [vmem:[#allocation7 + $0x4c8] sm:$0xff]  ;;  %6568 = vst [vmem:[#allocation58_spill] sm:$0xff] %v5256_v56  ;;  %v680_v0 = vld [vmem:[#allocation7 + $0x200] sm:$0xff] }
  0xa1   :  { %3237 = vmatpush1.bf16.msra.mxu1 %v5231_v2  ;;  %3207 = vmatprep.subr.bf16.mxu0 %v5233_v21  ;;  %v5252_v2 = vpack.c.bf16 %v756_v62, %v750_v5  ;;  %v5258_v15 = vpack.c.bf16 %v769_v63, %v763_v30  ;;  %6570 = vst [vmem:[#allocation60_spill] sm:$0xff] %v5261_v43  ;;  %v775_v21 = vld [vmem:[#allocation7 + $0x4f8] sm:$0xff]  ;;  %v681_v5 = vld [vmem:[#allocation7 + $0x208] sm:$0xff]  ;;  %v774_v63 = vld [vmem:[#allocation7 + $0x4f0] sm:$0xff] }
  0xa2   :  { %3239 = vmatprep.subr.bf16.mxu1 %v5236_v57  ;;  %v674_v57 = vld [vmem:[#allocation7 + $0x1d0] sm:$0xff]  ;;  %v687_v62 = vld [vmem:[#allocation7 + $0x238] sm:$0xff] }
  0xa3   :  { %6567 = vst [vmem:[#allocation57_spill] sm:$0xff] %v5252_v2  ;;  %6569 = vst [vmem:[#allocation59_spill] sm:$0xff] %v5258_v15  ;;  %v5268_v29 = vpack.c.bf16 %v674_v57, %v668_v33  ;;  %v5273_v4 = vpack.c.bf16 %v687_v62, %v681_v5  ;;  %v792_v33 = vld [vmem:[#allocation7 + $0x580] sm:$0xff] }
  0xa4   :  { %3209 = vmatpush1.bf16.msra.mxu0 %v5240_v16  ;;  %v781_v16 = vld [vmem:[#allocation7 + $0x528] sm:$0xff]  ;;  %v692_v5 = vld [vmem:[#allocation7 + $0x260] sm:$0xff] }
  0xa5   :  { %3241 = vmatpush1.bf16.msra.mxu1 %v5244_v42  ;;  %3211 = vmatprep.subr.bf16.mxu0 %v5246_v58  ;;  %v5264_v42 = vpack.c.bf16 %v768_v22, %v762_v19  ;;  %6572 = vst [vmem:[#allocation62_spill] sm:$0xff] %v5268_v29  ;;  %v5270_v30 = vpack.c.bf16 %v781_v16, %v775_v21  ;;  %6574 = vst [vmem:[#allocation64_spill] sm:$0xff] %v5273_v4  ;;  %v787_v58 = vld [vmem:[#allocation7 + $0x558] sm:$0xff]  ;;  %v693_v19 = vld [vmem:[#allocation7 + $0x268] sm:$0xff] }
  0xa6   :  { %3243 = vmatprep.subr.bf16.mxu1 %v5249_v32  ;;  %v686_v32 = vld [vmem:[#allocation7 + $0x230] sm:$0xff]  ;;  %v699_v22 = vld [vmem:[#allocation7 + $0x298] sm:$0xff] }
  0xa7   :  { %6571 = vst [vmem:[#allocation61_spill] sm:$0xff] %v5264_v42  ;;  %6573 = vst [vmem:[#allocation63_spill] sm:$0xff] %v5270_v30  ;;  %v5280_v57 = vpack.c.bf16 %v686_v32, %v680_v0  ;;  %v786_v16 = vld [vmem:[#allocation7 + $0x550] sm:$0xff]  ;;  %v5285_v62 = vpack.c.bf16 %v699_v22, %v693_v19  ;;  %v804_v0 = vld [vmem:[#allocation7 + $0x5e0] sm:$0xff] }
  0xa8   :  { %3213 = vmatpush1.bf16.msra.mxu0 %v5252_v2  ;;  %v793_v2 = vld [vmem:[#allocation7 + $0x588] sm:$0xff]  ;;  %v704_v22 = vld [vmem:[#allocation7 + $0x2c0] sm:$0xff] }
  0xa9   :  { %3245 = vmatpush1.bf16.msra.mxu1 %v5256_v56  ;;  %3215 = vmatprep.subr.bf16.mxu0 %v5258_v15  ;;  %v5276_v56 = vpack.c.bf16 %v780_v61, %v774_v63  ;;  %v5282_v21 = vpack.c.bf16 %v793_v2, %v787_v58  ;;  %v799_v15 = vld [vmem:[#allocation7 + $0x5b8] sm:$0xff]  ;;  %v705_v63 = vld [vmem:[#allocation7 + $0x2c8] sm:$0xff]  ;;  %v798_v58 = vld [vmem:[#allocation7 + $0x5b0] sm:$0xff] }
  0xaa   :  { %3247 = vmatprep.subr.bf16.mxu1 %v5261_v43  ;;  %v698_v43 = vld [vmem:[#allocation7 + $0x290] sm:$0xff]  ;;  %v711_v61 = vld [vmem:[#allocation7 + $0x2f8] sm:$0xff] }
  0xab   :  { %6575 = vst [vmem:[#allocation65_spill] sm:$0xff] %v5276_v56  ;;  %6576 = vst [vmem:[#allocation66_spill] sm:$0xff] %v5282_v21  ;;  %v5292_v32 = vpack.c.bf16 %v698_v43, %v692_v5  ;;  %v5297_v19 = vpack.c.bf16 %v711_v61, %v705_v63  ;;  %v716_v43 = vld [vmem:[#allocation7 + $0x320] sm:$0xff]  ;;  %v729_v5 = vld [vmem:[#allocation7 + $0x388] sm:$0xff] }
  0xac   :  { %3217 = vmatpush1.bf16.msra.mxu0 %v5264_v42  ;;  %v805_v42 = vld [vmem:[#allocation7 + $0x5e8] sm:$0xff]  ;;  %v735_v63 = vld [vmem:[#allocation7 + $0x3b8] sm:$0xff] }
  0xad   :  { %3249 = vmatpush1.bf16.msra.mxu1 %v5268_v29  ;;  %3219 = vmatprep.subr.bf16.mxu0 %v5270_v30  ;;  %v5288_v29 = vpack.c.bf16 %v792_v33, %v786_v16  ;;  %v5294_v2 = vpack.c.bf16 %v805_v42, %v799_v15  ;;  %v717_v30 = vld [vmem:[#allocation7 + $0x328] sm:$0xff]  ;;  %v5300_v16 = vpack.c.bf16 %v804_v0, %v798_v58  ;;  %v722_v33 = vld [vmem:[#allocation7 + $0x350] sm:$0xff]  ;;  %v728_v58 = vld [vmem:[#allocation7 + $0x380] sm:$0xff] }
  0xae   :  { %3251 = vmatprep.subr.bf16.mxu1 %v5273_v4  ;;  %v710_v4 = vld [vmem:[#allocation7 + $0x2f0] sm:$0xff]  ;;  %v5311_v61 = vpack.c.bf16 %v722_v33, %v716_v43  ;;  %v740_v33 = vld [vmem:[#allocation7 + $0x3e0] sm:$0xff] }
  0xaf   :  { %6577 = vst [vmem:[#allocation67_spill] sm:$0xff] %v5288_v29  ;;  %6578 = vst [vmem:[#allocation68_spill] sm:$0xff] %v5294_v2  ;;  %v5304_v42 = vpack.c.bf16 %v710_v4, %v704_v22  ;;  %v5315_v4 = vpack.c.bf16 %v735_v63, %v729_v5  ;;  %v734_v0 = vld [vmem:[#allocation7 + $0x3b0] sm:$0xff]  ;;  %v753_v63 = vld [vmem:[#allocation7 + $0x448] sm:$0xff] }
  0xb0   :  { %3221 = vmatpush1.bf16.msra.mxu0 %v5276_v56  ;;  %v723_v56 = vld [vmem:[#allocation7 + $0x358] sm:$0xff]  ;;  %6579 = vst [vmem:[#allocation69_spill] sm:$0xff] %v5300_v16  ;;  %6582 = vst [vmem:[#allocation72_spill] sm:$0xff] %v5311_v61  ;;  %v5320_v22 = vpack.c.bf16 %v734_v0, %v728_v58  ;;  %v746_v5 = vld [vmem:[#allocation7 + $0x410] sm:$0xff] }
  0xb1   :  { %3253 = vmatpush1.bf16.msra.mxu1 %v5280_v57  ;;  %3223 = vmatprep.subr.bf16.mxu0 %v5282_v21  ;;  %6580 = vst [vmem:[#allocation70_spill] sm:$0xff] %v5304_v42  ;;  %v5307_v15 = vpack.c.bf16 %v723_v56, %v717_v30  ;;  %6583 = vst [vmem:[#allocation73_spill] sm:$0xff] %v5315_v4  ;;  %v741_v56 = vld [vmem:[#allocation7 + $0x3e8] sm:$0xff]  ;;  %v747_v30 = vld [vmem:[#allocation7 + $0x418] sm:$0xff] }
  0xb2   :  { %3255 = vmatprep.subr.bf16.mxu1 %v5285_v62  ;;  %6584 = vst [vmem:[#allocation74_spill] sm:$0xff] %v5320_v22  ;;  %v5324_v43 = vpack.c.bf16 %v747_v30, %v741_v56  ;;  %v752_v0 = vld [vmem:[#allocation7 + $0x440] sm:$0xff]  ;;  %v765_v56 = vld [vmem:[#allocation7 + $0x4a8] sm:$0xff]  ;;  %v771_v30 = vld [vmem:[#allocation7 + $0x4d8] sm:$0xff] }
  0xb3   :  { %6581 = vst [vmem:[#allocation71_spill] sm:$0xff] %v5307_v15 }
  0xb4   :  { %3225 = vmatpush1.bf16.msra.mxu0 %v5288_v29  ;;  %6585 = vst [vmem:[#allocation75_spill] sm:$0xff] %v5324_v43 }
  0xb5   :  { %3257 = vmatpush1.bf16.msra.mxu1 %v5292_v32  ;;  %3227 = vmatprep.subr.bf16.mxu0 %v5294_v2 }
  0xb6   :  { %3259 = vmatprep.subr.bf16.mxu1 %v5297_v19 }
  0xb8   :  { %3229 = vmatpush1.bf16.msra.mxu0 %v5300_v16 }
  0xb9   :  { %3261 = vmatpush1.bf16.msra.mxu1 %v5304_v42  ;;  %3295 = vmatprep.subr.bf16.mxu0 %v4983_v44  ;;  %v5328_v42 = vpack.c.bf16 %v746_v5, %v740_v33  ;;  %v5340_v33 = vpack.c.bf16 %v771_v30, %v765_v56  ;;  %v764_v5 = vld [vmem:[#allocation7 + $0x4a0] sm:$0xff]  ;;  %v789_v56 = vld [vmem:[#allocation7 + $0x568] sm:$0xff]  ;;  %v795_v30 = vld [vmem:[#allocation7 + $0x598] sm:$0xff] }
  0xba   :  { %3263 = vmatprep.subr.bf16.mxu1 %v5307_v15  ;;  %v759_v15 = vld [vmem:[#allocation7 + $0x478] sm:$0xff] }
  0xbb   :  { %951 = vmatmul.mubr.f32.vlgmr.msra.gmra.mrb[32].mxu0 %v6555_v23  ;;  %6586 = vst [vmem:[#allocation76_spill] sm:$0xff] %v5328_v42  ;;  %v5332_v58 = vpack.c.bf16 %v759_v15, %v753_v63  ;;  %6589 = vst [vmem:[#allocation79_spill] sm:$0xff] %v5340_v33  ;;  %v777_v15 = vld [vmem:[#allocation7 + $0x508] sm:$0xff]  ;;  %v783_v63 = vld [vmem:[#allocation7 + $0x538] sm:$0xff] }
  0xbc   :  { %3297 = vmatpush1.bf16.msra.mxu0 %v4990_v54 }
  0xbd   :  { %3265 = vmatpush1.bf16.msra.mxu1 %v5311_v61  ;;  %3299 = vmatprep.subr.bf16.mxu0 %v4994_v59  ;;  %6587 = vst [vmem:[#allocation77_spill] sm:$0xff] %v5332_v58 }
  0xbe   :  { %3267 = vmatprep.subr.bf16.mxu1 %v5315_v4  ;;  %v758_v4 = vld [vmem:[#allocation7 + $0x470] sm:$0xff] }
  0xbf   :  { %v5336_v61 = vpack.c.bf16 %v758_v4, %v752_v0  ;;  %v5348_v4 = vpack.c.bf16 %v783_v63, %v777_v15  ;;  %v776_v0 = vld [vmem:[#allocation7 + $0x500] sm:$0xff]  ;;  %v801_v15 = vld [vmem:[#allocation7 + $0x5c8] sm:$0xff]  ;;  %v807_v63 = vld [vmem:[#allocation7 + $0x5f8] sm:$0xff] }
  0xc0   :  { %3301 = vmatpush1.bf16.msra.mxu0 %v5006_v6 }
  0xc1   :  { %3269 = vmatpush1.bf16.msra.mxu1 %v5320_v22  ;;  %3303 = vmatprep.subr.bf16.mxu0 %v5009_v11  ;;  %6588 = vst [vmem:[#allocation78_spill] sm:$0xff] %v5336_v61  ;;  %6591 = vst [vmem:[#allocation81_spill] sm:$0xff] %v5348_v4 }
  0xc2   :  { %3271 = vmatprep.subr.bf16.mxu1 %v5324_v43  ;;  %v770_v43 = vld [vmem:[#allocation7 + $0x4d0] sm:$0xff] }
  0xc3   :  { %v5344_v22 = vpack.c.bf16 %v770_v43, %v764_v5  ;;  %v5356_v43 = vpack.c.bf16 %v795_v30, %v789_v56  ;;  %v788_v5 = vld [vmem:[#allocation7 + $0x560] sm:$0xff]  ;;  %v6600_v30 = vld [vmem:[#allocation39_spill] sm:$0xff] }
  0xc4   :  { %3305 = vmatpush1.bf16.msra.mxu0 %v5021_v20 }
  0xc5   :  { %3273 = vmatpush1.bf16.msra.mxu1 %v5328_v42  ;;  %3307 = vmatprep.subr.bf16.mxu0 %v5024_v25  ;;  %6590 = vst [vmem:[#allocation80_spill] sm:$0xff] %v5344_v22  ;;  %6593 = vst [vmem:[#allocation83_spill] sm:$0xff] %v5356_v43 }
  0xc6   :  { %3275 = vmatprep.subr.bf16.mxu1 %v5332_v58  ;;  %v782_v58 = vld [vmem:[#allocation7 + $0x530] sm:$0xff] }
  0xc7   :  { %v5352_v42 = vpack.c.bf16 %v782_v58, %v776_v0  ;;  %v5364_v58 = vpack.c.bf16 %v807_v63, %v801_v15  ;;  %v800_v0 = vld [vmem:[#allocation7 + $0x5c0] sm:$0xff]  ;;  %v6603_v63 = vld [vmem:[#allocation44_spill] sm:$0xff] }
  0xc8   :  { %3309 = vmatpush1.bf16.msra.mxu0 %v5037_v34  ;;  %v6602_v15 = vld [vmem:[#allocation41_spill] sm:$0xff] }
  0xc9   :  { %3277 = vmatpush1.bf16.msra.mxu1 %v5336_v61  ;;  %3311 = vmatprep.subr.bf16.mxu0 %v5043_v39  ;;  %6592 = vst [vmem:[#allocation82_spill] sm:$0xff] %v5352_v42  ;;  %6595 = vst [vmem:[#allocation85_spill] sm:$0xff] %v5364_v58 }
  0xca   :  { %3279 = vmatprep.subr.bf16.mxu1 %v5340_v33  ;;  %v794_v33 = vld [vmem:[#allocation7 + $0x590] sm:$0xff] }
  0xcb   :  { %v5360_v61 = vpack.c.bf16 %v794_v33, %v788_v5  ;;  %v6598_v33 = vld [vmem:[#allocation37_spill] sm:$0xff]  ;;  %v6601_v5 = vld [vmem:[#allocation42_spill] sm:$0xff] }
  0xcc   :  { %3313 = vmatpush1.bf16.msra.mxu0 %v5053_v48 }
  0xcd   :  { %3281 = vmatpush1.bf16.msra.mxu1 %v5344_v22  ;;  %3315 = vmatprep.subr.bf16.mxu0 %v5056_v55  ;;  %6594 = vst [vmem:[#allocation84_spill] sm:$0xff] %v5360_v61 }
  0xce   :  { %3283 = vmatprep.subr.bf16.mxu1 %v5348_v4  ;;  %v806_v4 = vld [vmem:[#allocation7 + $0x5f0] sm:$0xff] }
  0xcf   :  { %v5368_v56 = vpack.c.bf16 %v806_v4, %v800_v0  ;;  %v6599_v4 = vld [vmem:[#allocation40_spill] sm:$0xff]  ;;  %v6604_v0 = vld [vmem:[#allocation43_spill] sm:$0xff] }
  0xd0   :  { %3317 = vmatpush1.bf16.msra.mxu0 %v5065_v1 }
  0xd1   :  { %3285 = vmatpush1.bf16.msra.mxu1 %v5352_v42  ;;  %3319 = vmatprep.subr.bf16.mxu0 %v5068_v8  ;;  %6596 = vst [vmem:[#allocation86_spill] sm:$0xff] %v5368_v56 }
  0xd2   :  { %3287 = vmatprep.subr.bf16.mxu1 %v5356_v43 }
  0xd4   :  { %3321 = vmatpush1.bf16.msra.mxu0 %v5077_v18 }
  0xd5   :  { %3289 = vmatpush1.bf16.msra.mxu1 %v5360_v61  ;;  %3323 = vmatprep.subr.bf16.mxu0 %v5080_v24 }
  0xd6   :  { %3291 = vmatprep.subr.bf16.mxu1 %v5364_v58 }
  0xd8   :  { %3325 = vmatpush1.bf16.msra.mxu0 %v5089_v35 }
  0xd9   :  { %3293 = vmatpush1.bf16.msra.mxu1 %v5368_v56  ;;  %3327 = vmatprep.subr.bf16.mxu0 %v5094_v41 }
  0xda   :  { %3359 = vmatprep.subr.bf16.mxu1 %v5091_v36 }
  0xdc   :  { %1022 = vmatmul.mubr.f32.vlgmr.msra.gmra.mrb[18].mxu1 %v6555_v23  ;;  %3329 = vmatpush1.bf16.msra.mxu0 %v5104_v52  ;;  %v6597_v23 = vld [vmem:[#allocation38_spill] sm:$0xff] }
  0xdd   :  { %3361 = vmatpush1.bf16.msra.mxu1 %v5100_v50  ;;  %3331 = vmatprep.subr.bf16.mxu0 %v5109_v60 }
  0xde   :  { %3363 = vmatprep.subr.bf16.mxu1 %v5106_v53 }
  0xe0   :  { %3333 = vmatpush1.bf16.msra.mxu0 %v5120_v9 }
  0xe1   :  { %3365 = vmatpush1.bf16.msra.mxu1 %v5115_v7  ;;  %3335 = vmatprep.subr.bf16.mxu0 %v5125_v14 }
  0xe2   :  { %3367 = vmatprep.subr.bf16.mxu1 %v5122_v10 }
  0xe4   :  { %3337 = vmatpush1.bf16.msra.mxu0 %v5134_v27 }
  0xe5   :  { %3369 = vmatpush1.bf16.msra.mxu1 %v5129_v26  ;;  %3339 = vmatprep.subr.bf16.mxu0 %v5139_v3 }
  0xe6   :  { %3371 = vmatprep.subr.bf16.mxu1 %v5136_v28  ;;  %v6614_v28 = vld [vmem:[#allocation63_spill] sm:$0xff] }
  0xe8   :  { %3341 = vmatpush1.bf16.msra.mxu0 %v5148_v47 }
  0xe9   :  { %3373 = vmatpush1.bf16.msra.mxu1 %v5143_v45  ;;  %3343 = vmatprep.subr.bf16.mxu0 %v5153_v17  ;;  %v6612_v45 = vld [vmem:[#allocation59_spill] sm:$0xff] }
  0xea   :  { %3375 = vmatprep.subr.bf16.mxu1 %v5150_v49  ;;  %v6610_v49 = vld [vmem:[#allocation55_spill] sm:$0xff] }
  0xec   :  { %3345 = vmatpush1.bf16.msra.mxu0 %v5162_v51 }
  0xed   :  { %3377 = vmatpush1.bf16.msra.mxu1 %v5157_v12  ;;  %3347 = vmatprep.subr.bf16.mxu0 %v5167_v31  ;;  %v6608_v12 = vld [vmem:[#allocation51_spill] sm:$0xff] }
  0xee   :  { %3379 = vmatprep.subr.bf16.mxu1 %v5164_v13  ;;  %v6606_v13 = vld [vmem:[#allocation47_spill] sm:$0xff] }
  0xf0   :  { %3349 = vmatpush1.bf16.msra.mxu0 %v5176_v38 }
  0xf1   :  { %3381 = vmatpush1.bf16.msra.mxu1 %v5171_v37  ;;  %3351 = vmatprep.subr.bf16.mxu0 %v5181_v46  ;;  %v6605_v37 = vld [vmem:[#allocation45_spill] sm:$0xff] }
  0xf2   :  { %3383 = vmatprep.subr.bf16.mxu1 %v5178_v40  ;;  %v6607_v40 = vld [vmem:[#allocation49_spill] sm:$0xff] }
  0xf4   :  { %3353 = vmatpush1.bf16.msra.mxu0 %v6597_v23 }
  0xf5   :  { %3385 = vmatpush1.bf16.msra.mxu1 %v6598_v33  ;;  %3355 = vmatprep.subr.bf16.mxu0 %v6599_v4  ;;  %v6609_v33 = vld [vmem:[#allocation53_spill] sm:$0xff] }
  0xf6   :  { %3387 = vmatprep.subr.bf16.mxu1 %v6600_v30  ;;  %v6611_v30 = vld [vmem:[#allocation57_spill] sm:$0xff] }
  0xf8   :  { %3357 = vmatpush1.bf16.msra.mxu0 %v6601_v5 }
  0xf9   :  { %3389 = vmatpush1.bf16.msra.mxu1 %v6602_v15  ;;  %3423 = vmatprep.subr.bf16.mxu0 %v6603_v63  ;;  %v6613_v15 = vld [vmem:[#allocation61_spill] sm:$0xff] }
  0xfa   :  { %3391 = vmatprep.subr.bf16.mxu1 %v6604_v0  ;;  %v6615_v0 = vld [vmem:[#allocation65_spill] sm:$0xff] }
  0xfd   :  { %3393 = vmatpush1.bf16.msra.mxu1 %v6605_v37 }
  0xfe   :  { %3395 = vmatprep.subr.bf16.mxu1 %v6606_v13 }
 0x101   :  { %3397 = vmatpush1.bf16.msra.mxu1 %v6607_v40 }
 0x102   :  { %3399 = vmatprep.subr.bf16.mxu1 %v6608_v12 }
 0x105   :  { %3401 = vmatpush1.bf16.msra.mxu1 %v6609_v33 }
 0x106   :  { %3403 = vmatprep.subr.bf16.mxu1 %v6610_v49  ;;  %v199_v49 = vlaneseq }
 0x109   :  { %3405 = vmatpush1.bf16.msra.mxu1 %v6611_v30  ;;  %v5425_v30 = vshrl.u32 %v199_v49, 7 }
 0x10a   :  { %3407 = vmatprep.subr.bf16.mxu1 %v6612_v45 }
 0x10b   :  { %v213_v45 = vsub.s32 3, %v5425_v30 }
 0x10d   :  { %3409 = vmatpush1.bf16.msra.mxu1 %v6613_v15 }
 0x10e   :  { %3411 = vmatprep.subr.bf16.mxu1 %v6614_v28  ;;  %v5431_v28 = vld [vmem:[%s6368_s3] sm:$0x3f] }
 0x111   :  { %3413 = vmatpush1.bf16.msra.mxu1 %v6615_v0  ;;  %v209_v0 = vsub.s32 2, %v5425_v30 }
 0x112   :  { %3415 = vmatprep.subr.bf16.mxu1 %v5282_v21  ;;  %v5434_v21 = vrot.slane %v5431_v28, %v213_v45 }
 0x113   :  { %v5462_v26 = vrot.slane %v5431_v28, %v209_v0 }
 0x115   :  { %3417 = vmatpush1.bf16.msra.mxu1 %v5288_v29  ;;  %v6481_v29 = vsub.s32 0, %v5425_v30 }
 0x116   :  { %3419 = vmatprep.subr.bf16.mxu1 %v5294_v2 }
 0x117   :  { %v5451_v45 = vrot.slane %v5431_v28, %v6481_v29 }
 0x119   :  { %3421 = vmatpush1.bf16.msra.mxu1 %v5300_v16  ;;  %v6486_v16 = vsub.s32 1, %v5425_v30 }
 0x11a   :  { %3487 = vmatprep.subr.bf16.mxu1 %v4983_v44 }
 0x11b   :  { %v5456_v12 = vrot.slane %v5431_v28, %v6486_v16 }
 0x12e   :  { %v5437_v2 = vpop.f32.mrb[0].mxu0 }
 0x12f   :  { %v5440_v44 = vpop.f32.mrb[0].mxu1  ;;  %v5442_v49 = vpop.f32.mrb[1].mxu0 }
 0x130   :  { %v410_v15 = vpop.f32.mrb[1].mxu1 }
 0x131   :  { %v5446_v33 = vadd.f32 %v410_v15, %v5434_v21 }
 0x132   :  { %v301_v40 = vpop.f32.mrb[2].mxu0 }
 0x133   :  { %6616 = vst [vmem:[#allocation87_spill] sm:$0xff] %v5446_v33  ;;  %v5459_v13 = vadd.f32 %v301_v40, %v5451_v45  ;;  %v303_v37 = vpop.f32.mrb[3].mxu0 }
 0x134   :  { %v5465_v15 = vadd.f32 %v303_v37, %v5456_v12 }
 0x135   :  { %6617 = vst [vmem:[#allocation88_spill] sm:$0xff] %v5459_v13  ;;  %v414_v33 = vpop.f32.mrb[2].mxu1 }
 0x136   :  { %6618 = vst [vmem:[#allocation89_spill] sm:$0xff] %v5465_v15  ;;  %v5468_v29 = vadd.f32 %v414_v33, %v5462_v26  ;;  %v416_v10 = vpop.f32.mrb[3].mxu1  ;;  %v307_v7 = vpop.f32.mrb[4].mxu0 }
 0x137   :  { %v5471_v16 = vadd.f32 %v416_v10, %v5434_v21  ;;  %v5474_v53 = vadd.f32 %v307_v7, %v5451_v45  ;;  %v309_v40 = vpop.f32.mrb[5].mxu0 }
 0x138   :  { %6619 = vst [vmem:[#allocation90_spill] sm:$0xff] %v5468_v29  ;;  %v5477_v13 = vadd.f32 %v309_v40, %v5456_v12 }
 0x139   :  { %6620 = vst [vmem:[#allocation91_spill] sm:$0xff] %v5471_v16  ;;  %6621 = vst [vmem:[#allocation92_spill] sm:$0xff] %v5474_v53  ;;  %v420_v0 = vpop.f32.mrb[4].mxu1 }
 0x13a   :  { %6622 = vst [vmem:[#allocation93_spill] sm:$0xff] %v5477_v13  ;;  %v5480_v37 = vadd.f32 %v420_v0, %v5462_v26  ;;  %v422_v15 = vpop.f32.mrb[5].mxu1  ;;  %v313_v50 = vpop.f32.mrb[6].mxu0 }
 0x13b   :  { %v5483_v33 = vadd.f32 %v422_v15, %v5434_v21  ;;  %v5486_v29 = vadd.f32 %v313_v50, %v5451_v45  ;;  %v315_v10 = vpop.f32.mrb[7].mxu0 }
 0x13c   :  { %6623 = vst [vmem:[#allocation94_spill] sm:$0xff] %v5480_v37  ;;  %v5489_v7 = vadd.f32 %v315_v10, %v5456_v12 }
 0x13d   :  { %6624 = vst [vmem:[#allocation95_spill] sm:$0xff] %v5483_v33  ;;  %6625 = vst [vmem:[#allocation96_spill] sm:$0xff] %v5486_v29  ;;  %v426_v16 = vpop.f32.mrb[6].mxu1 }
 0x13e   :  { %6626 = vst [vmem:[#allocation97_spill] sm:$0xff] %v5489_v7  ;;  %v5492_v40 = vadd.f32 %v426_v16, %v5462_v26  ;;  %v428_v13 = vpop.f32.mrb[7].mxu1  ;;  %v319_v53 = vpop.f32.mrb[8].mxu0 }
 0x13f   :  { %v5495_v0 = vadd.f32 %v428_v13, %v5434_v21  ;;  %v5498_v37 = vadd.f32 %v319_v53, %v5451_v45  ;;  %v321_v15 = vpop.f32.mrb[9].mxu0 }
 0x140   :  { %6627 = vst [vmem:[#allocation98_spill] sm:$0xff] %v5492_v40  ;;  %v5501_v50 = vadd.f32 %v321_v15, %v5456_v12 }
 0x141   :  { %6628 = vst [vmem:[#allocation99_spill] sm:$0xff] %v5495_v0  ;;  %6629 = vst [vmem:[#allocation100_spill] sm:$0xff] %v5498_v37  ;;  %v432_v33 = vpop.f32.mrb[8].mxu1 }
 0x142   :  { %6630 = vst [vmem:[#allocation101_spill] sm:$0xff] %v5501_v50  ;;  %v5504_v10 = vadd.f32 %v432_v33, %v5462_v26  ;;  %v434_v7 = vpop.f32.mrb[9].mxu1  ;;  %v325_v29 = vpop.f32.mrb[10].mxu0 }
 0x143   :  { %v5507_v16 = vadd.f32 %v434_v7, %v5434_v21  ;;  %v5510_v40 = vadd.f32 %v325_v29, %v5451_v45  ;;  %v327_v13 = vpop.f32.mrb[11].mxu0  ;;  %v217_v29 = vsub.s32 4, %v5425_v30 }
 0x144   :  { %6631 = vst [vmem:[#allocation102_spill] sm:$0xff] %v5504_v10  ;;  %v5513_v53 = vadd.f32 %v327_v13, %v5456_v12  ;;  %v221_v13 = vsub.s32 5, %v5425_v30 }
 0x145   :  { %6632 = vst [vmem:[#allocation103_spill] sm:$0xff] %v5507_v16  ;;  %6633 = vst [vmem:[#allocation104_spill] sm:$0xff] %v5510_v40  ;;  %v438_v0 = vpop.f32.mrb[10].mxu1 }
 0x146   :  { %6634 = vst [vmem:[#allocation105_spill] sm:$0xff] %v5513_v53  ;;  %v5516_v15 = vadd.f32 %v438_v0, %v5462_v26  ;;  %v440_v50 = vpop.f32.mrb[11].mxu1  ;;  %v331_v37 = vpop.f32.mrb[12].mxu0 }
 0x147   :  { %v5519_v33 = vadd.f32 %v440_v50, %v5434_v21  ;;  %v5522_v10 = vadd.f32 %v331_v37, %v5451_v45  ;;  %v333_v7 = vpop.f32.mrb[13].mxu0 }
 0x148   :  { %6635 = vst [vmem:[#allocation106_spill] sm:$0xff] %v5516_v15  ;;  %v5526_v40 = vadd.f32 %v333_v7, %v5456_v12 }
 0x149   :  { %6636 = vst [vmem:[#allocation107_spill] sm:$0xff] %v5519_v33  ;;  %6637 = vst [vmem:[#allocation108_spill] sm:$0xff] %v5522_v10  ;;  %v444_v53 = vpop.f32.mrb[12].mxu1  ;;  %v218_v33 = vrot.slane %v5431_v28, %v217_v29 }
 0x14a   :  { %6638 = vst [vmem:[#allocation109_spill] sm:$0xff] %v5526_v40  ;;  %v5530_v0 = vadd.f32 %v444_v53, %v5462_v26  ;;  %v446_v15 = vpop.f32.mrb[13].mxu1  ;;  %v337_v16 = vpop.f32.mrb[14].mxu0  ;;  %v5543_v40 = vrot.slane %v5431_v28, %v221_v13 }
 0x14b   :  { %v5533_v50 = vadd.f32 %v446_v15, %v5434_v21  ;;  %v5536_v37 = vadd.f32 %v337_v16, %v5451_v45  ;;  %v339_v10 = vpop.f32.mrb[15].mxu0 }
 0x14c   :  { %6639 = vst [vmem:[#allocation110_spill] sm:$0xff] %v5530_v0  ;;  %v5540_v7 = vadd.f32 %v339_v10, %v5456_v12 }
 0x14d   :  { %6640 = vst [vmem:[#allocation111_spill] sm:$0xff] %v5533_v50  ;;  %6641 = vst [vmem:[#allocation112_spill] sm:$0xff] %v5536_v37  ;;  %v450_v63 = vpop.f32.mrb[14].mxu1 }
 0x14e   :  { %6642 = vst [vmem:[#allocation113_spill] sm:$0xff] %v5540_v7  ;;  %v5546_v53 = vadd.f32 %v450_v63, %v5462_v26  ;;  %v452_v0 = vpop.f32.mrb[15].mxu1  ;;  %v521_v5 = vpop.f32.mrb[16].mxu0 }
 0x14f   :  { %v5548_v15 = vadd.f32 %v521_v5, %v218_v33  ;;  %v523_v50 = vpop.f32.mrb[17].mxu0 }
 0x150   :  { %6643 = vst [vmem:[#allocation114_spill] sm:$0xff] %v5546_v53  ;;  %v5551_v16 = vadd.f32 %v523_v50, %v5543_v40 }
 0x151   :  { %6644 = vst [vmem:[#allocation115_spill] sm:$0xff] %v5548_v15 }
 0x152   :  { %6645 = vst [vmem:[#allocation116_spill] sm:$0xff] %v5551_v16  ;;  %v527_v37 = vpop.f32.mrb[18].mxu0 }
 0x153   :  { %v5553_v29 = vadd.f32 %v527_v37, %v218_v33  ;;  %v529_v10 = vpop.f32.mrb[19].mxu0 }
 0x154   :  { %v5556_v7 = vadd.f32 %v529_v10, %v5543_v40 }
 0x155   :  { %6646 = vst [vmem:[#allocation117_spill] sm:$0xff] %v5553_v29 }
 0x156   :  { %6647 = vst [vmem:[#allocation118_spill] sm:$0xff] %v5556_v7  ;;  %v533_v28 = vpop.f32.mrb[20].mxu0 }
 0x157   :  { %v5558_v13 = vadd.f32 %v533_v28, %v218_v33  ;;  %v535_v63 = vpop.f32.mrb[21].mxu0 }
 0x158   :  { %v5561_v53 = vadd.f32 %v535_v63, %v5543_v40 }
 0x159   :  { %6648 = vst [vmem:[#allocation119_spill] sm:$0xff] %v5558_v13 }
 0x15a   :  { %6649 = vst [vmem:[#allocation120_spill] sm:$0xff] %v5561_v53  ;;  %v539_v5 = vpop.f32.mrb[22].mxu0 }
 0x15b   :  { %v5563_v15 = vadd.f32 %v539_v5, %v218_v33  ;;  %v541_v36 = vpop.f32.mrb[23].mxu0 }
 0x15c   :  { %v5566_v50 = vadd.f32 %v541_v36, %v5543_v40 }
 0x15d   :  { %6650 = vst [vmem:[#allocation121_spill] sm:$0xff] %v5563_v15 }
 0x15e   :  { %6651 = vst [vmem:[#allocation122_spill] sm:$0xff] %v5566_v50  ;;  %v545_v37 = vpop.f32.mrb[24].mxu0 }
 0x15f   :  { %v5568_v16 = vadd.f32 %v545_v37, %v218_v33  ;;  %v547_v29 = vpop.f32.mrb[25].mxu0 }
 0x160   :  { %v5571_v10 = vadd.f32 %v547_v29, %v5543_v40  ;;  %v296_v29 = vadd.f32 %v5437_v2, %v5451_v45 }
 0x161   :  { %6652 = vst [vmem:[#allocation123_spill] sm:$0xff] %v5568_v16 }
 0x162   :  { %6653 = vst [vmem:[#allocation124_spill] sm:$0xff] %v5571_v10  ;;  %v551_v28 = vpop.f32.mrb[26].mxu0  ;;  %v453_v10 = vadd.f32 %v452_v0, %v5434_v21  ;;  %v808_v21 = vld [vmem:[%s6369_s4] sm:$0x3] }
 0x163   :  { %v5573_v7 = vadd.f32 %v551_v28, %v218_v33  ;;  %v553_v13 = vpop.f32.mrb[27].mxu0 }
 0x164   :  { %v5576_v63 = vadd.f32 %v553_v13, %v5543_v40 }
 0x165   :  { %6654 = vst [vmem:[#allocation125_spill] sm:$0xff] %v5573_v7 }
 0x166   :  { %6655 = vst [vmem:[#allocation126_spill] sm:$0xff] %v5576_v63  ;;  %v557_v5 = vpop.f32.mrb[28].mxu0 }
 0x167   :  { %v5578_v53 = vadd.f32 %v557_v5, %v218_v33  ;;  %v559_v15 = vpop.f32.mrb[29].mxu0  ;;  %v298_v5 = vadd.f32 %v5442_v49, %v5456_v12 }
 0x168   :  { %v5581_v36 = vadd.f32 %v559_v15, %v5543_v40 }
 0x169   :  { %6656 = vst [vmem:[#allocation127_spill] sm:$0xff] %v5578_v53 }
 0x16a   :  { %6657 = vst [vmem:[#allocation128_spill] sm:$0xff] %v5581_v36  ;;  %v563_v37 = vpop.f32.mrb[30].mxu0 }
 0x16b   :  { %v565_v50 = vpop.f32.mrb[31].mxu0  ;;  %v564_v13 = vadd.f32 %v563_v37, %v218_v33  ;;  %v6658_v33 = vsub.s32 0, %v5425_v30 }
 0x16f   :  { %v881_v28 = vpop.f32.mrb[16].mxu1 }
 0x170   :  { %v1028_v16 = vadd.f32 %v881_v28, %v296_v29  ;;  %v883_v7 = vpop.f32.mrb[17].mxu1  ;;  %v566_v29 = vadd.f32 %v565_v50, %v5543_v40  ;;  %v6660_v50 = vld [vmem:[#allocation46_spill] sm:$0xff] }
 0x171   :  { %v1029_v56 = vadd.f32 %v883_v7, %v453_v10  ;;  %v5593_v7 = vrot.slane %v808_v21, %v6658_v33 }
 0x172   :  { %v1030_v36 = vmul.f32 0.5, %v1028_v16 }
 0x173   :  { %v1031_v23 = vmul.f32 0.5, %v1029_v56 }
 0x174   :  { %4679 = vtanh.f32 %v1030_v36 }
 0x175   :  { %4681 = vtanh.f32 %v1031_v23 }
 0x17e   :  { %v4680_v58 = vpop.eup %4679 }
 0x17f   :  { %v4682_v2 = vpop.eup %4681  ;;  %v1034_v45 = vmul.f32 0.5, %v4680_v58 }
 0x180   :  { %v1035_v12 = vmul.f32 0.5, %v4682_v2 }
 0x181   :  { %v1036_v23 = vadd.f32 0.5, %v1034_v45 }
 0x182   :  { %v1037_v36 = vadd.f32 0.5, %v1035_v12 }
 0x18e   :  { %v952_v63 = vpop.f32.mrb[32].mxu0 }
 0x18f   :  { %v1038_v53 = vadd.f32 %v952_v63, %v298_v5  ;;  %v954_v4 = vpop.f32.mrb[33].mxu0 }
 0x190   :  { %v1039_v15 = vadd.f32 %v954_v4, %v564_v13  ;;  %v6659_v4 = vsub.s32 1, %v5425_v30 }
 0x191   :  { %v1040_v0 = vmul.f32 0.5, %v1038_v53  ;;  %v409_v53 = vadd.f32 %v5440_v44, %v5462_v26 }
 0x192   :  { %v1041_v49 = vmul.f32 0.5, %v1039_v15  ;;  %v5597_v16 = vrot.slane %v808_v21, %v6659_v4 }
 0x193   :  { %4683 = vtanh.f32 %v1040_v0 }
 0x194   :  { %4685 = vtanh.f32 %v1041_v49 }
 0x19d   :  { %v4684_v5 = vpop.eup %4683 }
 0x19e   :  { %v4686_v15 = vpop.eup %4685  ;;  %v1044_v21 = vmul.f32 0.5, %v4684_v5  ;;  %v6672_v5 = vld [vmem:[#allocation72_spill] sm:$0xff] }
 0x19f   :  { %v1045_v2 = vmul.f32 0.5, %v4686_v15  ;;  %v6673_v15 = vld [vmem:[#allocation73_spill] sm:$0xff] }
 0x1a0   :  { %v1046_v33 = vadd.f32 0.5, %v1044_v21  ;;  %v6674_v21 = vld [vmem:[#allocation74_spill] sm:$0xff] }
 0x1a1   :  { %v1047_v49 = vadd.f32 0.5, %v1045_v2  ;;  %v6675_v2 = vld [vmem:[#allocation75_spill] sm:$0xff] }
 0x1af   :  { %v1023_v56 = vpop.f32.mrb[18].mxu1 }
 0x1b0   :  { %v1059_v10 = vadd.f32 %v5593_v7, %v1023_v56  ;;  %v1025_v63 = vpop.f32.mrb[19].mxu1 }
 0x1b1   :  { %v1060_v58 = vadd.f32 %v5597_v16, %v1025_v63  ;;  %v6663_v63 = vld [vmem:[#allocation52_spill] sm:$0xff] }
 0x1b2   :  { %v1061_v37 = vmul.f32 %v1059_v10, %v1036_v23  ;;  %v6661_v23 = vld [vmem:[#allocation48_spill] sm:$0xff]  ;;  %v6662_v10 = vld [vmem:[#allocation50_spill] sm:$0xff] }
 0x1b3   :  { %v1062_v28 = vmul.f32 %v1060_v58, %v1037_v36  ;;  %v6664_v36 = vld [vmem:[#allocation54_spill] sm:$0xff]  ;;  %v6665_v58 = vld [vmem:[#allocation56_spill] sm:$0xff] }
 0x1b4   :  { %v1063_v30 = vadd.f32 %v1061_v37, %v409_v53  ;;  %v6666_v53 = vld [vmem:[#allocation58_spill] sm:$0xff]  ;;  %v6667_v37 = vld [vmem:[#allocation60_spill] sm:$0xff] }
 0x1b5   :  { %v1064_v13 = vadd.f32 %v1062_v28, %v566_v29  ;;  %v6668_v29 = vld [vmem:[#allocation62_spill] sm:$0xff]  ;;  %v6669_v28 = vld [vmem:[#allocation64_spill] sm:$0xff] }
 0x1b6   :  { %4687 = vtanh.f32 %v1063_v30  ;;  %v6670_v30 = vld [vmem:[#allocation70_spill] sm:$0xff] }
 0x1b7   :  { %4689 = vtanh.f32 %v1064_v13  ;;  %v6671_v13 = vld [vmem:[#allocation71_spill] sm:$0xff] }
 0x1c0   :  { %v4688_v45 = vpop.eup %4687 }
 0x1c1   :  { %v4690_v0 = vpop.eup %4689  ;;  %v1067_v12 = vsub.f32 0.0, %v4688_v45 }
 0x1c2   :  { %v1068_v4 = vsub.f32 0.0, %v4690_v0 }
 0x1c3   :  { %v1069_v56 = vmul.f32 %v1067_v12, %v1046_v33  ;;  %v6678_v33 = vld [vmem:[#allocation78_spill] sm:$0xff]  ;;  %v6679_v12 = vld [vmem:[#allocation79_spill] sm:$0xff] }
 0x1c4   :  { %v1070_v44 = vmul.f32 %v1068_v4, %v1047_v49  ;;  %v6680_v49 = vld [vmem:[#allocation81_spill] sm:$0xff] }
 0x1c5   :  { %v5604_v26 = vadd.f32 %v4688_v45, %v1069_v56  ;;  %v6676_v45 = vld [vmem:[#allocation76_spill] sm:$0xff]  ;;  %v6681_v4 = vld [vmem:[#allocation85_spill] sm:$0xff]  ;;  %v6682_v56 = vld [vmem:[#allocation38_spill] sm:$0xff] }
 0x1c6   :  { %v5606_v40 = vadd.f32 %v4690_v0, %v1070_v44  ;;  %v6677_v0 = vld [vmem:[#allocation77_spill] sm:$0xff]  ;;  %v6683_v44 = vld [vmem:[#allocation40_spill] sm:$0xff] }
 0x1c8   :  { %1143 = vmatprep.mubr.f32.mxu0 %v5606_v40  ;;  %1214 = vmatprep.mubr.f32.mxu1 %v5606_v40 }
 0x1c9   :  { %1144 = vmatmul.mubr.f32.vlgmr.msra.gmra.mrb[34].mxu0 %v5604_v26  ;;  %1215 = vmatmul.mubr.f32.vlgmr.msra.gmra.mrb[20].mxu1 %v5604_v26 }
 0x1ca   :  { %3425 = vmatpush1.bf16.msra.mxu0 %v6660_v50  ;;  %1285 = vmatprep.mubr.f32.mxu0 %v5606_v40 }
 0x1cb   :  { %3427 = vmatprep.subr.bf16.mxu0 %v6661_v23  ;;  %3489 = vmatpush1.bf16.msra.mxu1 %v4990_v54 }
 0x1cc   :  { %3491 = vmatprep.subr.bf16.mxu1 %v4994_v59 }
 0x1ce   :  { %3429 = vmatpush1.bf16.msra.mxu0 %v6662_v10 }
 0x1cf   :  { %3431 = vmatprep.subr.bf16.mxu0 %v6663_v63  ;;  %3493 = vmatpush1.bf16.msra.mxu1 %v5006_v6 }
 0x1d0   :  { %3495 = vmatprep.subr.bf16.mxu1 %v5009_v11 }
 0x1d2   :  { %3433 = vmatpush1.bf16.msra.mxu0 %v6664_v36 }
 0x1d3   :  { %3435 = vmatprep.subr.bf16.mxu0 %v6665_v58  ;;  %3497 = vmatpush1.bf16.msra.mxu1 %v5021_v20 }
 0x1d4   :  { %3499 = vmatprep.subr.bf16.mxu1 %v5024_v25 }
 0x1d6   :  { %3437 = vmatpush1.bf16.msra.mxu0 %v6666_v53 }
 0x1d7   :  { %3439 = vmatprep.subr.bf16.mxu0 %v6667_v37  ;;  %3501 = vmatpush1.bf16.msra.mxu1 %v5037_v34 }
 0x1d8   :  { %3503 = vmatprep.subr.bf16.mxu1 %v5043_v39 }
 0x1da   :  { %3441 = vmatpush1.bf16.msra.mxu0 %v6668_v29 }
 0x1db   :  { %3443 = vmatprep.subr.bf16.mxu0 %v6669_v28  ;;  %3505 = vmatpush1.bf16.msra.mxu1 %v5053_v48 }
 0x1dc   :  { %3507 = vmatprep.subr.bf16.mxu1 %v5056_v55 }
 0x1de   :  { %3445 = vmatpush1.bf16.msra.mxu0 %v5280_v57 }
 0x1df   :  { %3447 = vmatprep.subr.bf16.mxu0 %v5285_v62  ;;  %3509 = vmatpush1.bf16.msra.mxu1 %v5065_v1 }
 0x1e0   :  { %3511 = vmatprep.subr.bf16.mxu1 %v5068_v8 }
 0x1e2   :  { %3449 = vmatpush1.bf16.msra.mxu0 %v5292_v32 }
 0x1e3   :  { %3451 = vmatprep.subr.bf16.mxu0 %v5297_v19  ;;  %3513 = vmatpush1.bf16.msra.mxu1 %v5077_v18 }
 0x1e4   :  { %3515 = vmatprep.subr.bf16.mxu1 %v5080_v24 }
 0x1e6   :  { %3453 = vmatpush1.bf16.msra.mxu0 %v6670_v30 }
 0x1e7   :  { %3455 = vmatprep.subr.bf16.mxu0 %v6671_v13  ;;  %3517 = vmatpush1.bf16.msra.mxu1 %v5089_v35 }
 0x1e8   :  { %3519 = vmatprep.subr.bf16.mxu1 %v5094_v41 }
 0x1ea   :  { %3457 = vmatpush1.bf16.msra.mxu0 %v6672_v5 }
 0x1eb   :  { %3459 = vmatprep.subr.bf16.mxu0 %v6673_v15  ;;  %3521 = vmatpush1.bf16.msra.mxu1 %v5104_v52 }
 0x1ec   :  { %3523 = vmatprep.subr.bf16.mxu1 %v5109_v60 }
 0x1ee   :  { %3461 = vmatpush1.bf16.msra.mxu0 %v6674_v21 }
 0x1ef   :  { %3463 = vmatprep.subr.bf16.mxu0 %v6675_v2  ;;  %3525 = vmatpush1.bf16.msra.mxu1 %v5120_v9 }
 0x1f0   :  { %3527 = vmatprep.subr.bf16.mxu1 %v5125_v14 }
 0x1f2   :  { %3465 = vmatpush1.bf16.msra.mxu0 %v6676_v45 }
 0x1f3   :  { %3467 = vmatprep.subr.bf16.mxu0 %v6677_v0  ;;  %3529 = vmatpush1.bf16.msra.mxu1 %v5134_v27 }
 0x1f4   :  { %3531 = vmatprep.subr.bf16.mxu1 %v5139_v3 }
 0x1f6   :  { %3469 = vmatpush1.bf16.msra.mxu0 %v6678_v33  ;;  %v6723_v33 = vld [vmem:[#allocation127_spill] sm:$0xff] }
 0x1f7   :  { %3471 = vmatprep.subr.bf16.mxu0 %v6679_v12  ;;  %3533 = vmatpush1.bf16.msra.mxu1 %v5148_v47  ;;  %v6722_v12 = vld [vmem:[#allocation111_spill] sm:$0xff] }
 0x1f8   :  { %3535 = vmatprep.subr.bf16.mxu1 %v5153_v17  ;;  %v6721_v17 = vld [vmem:[#allocation89_spill] sm:$0xff] }
 0x1fa   :  { %3473 = vmatpush1.bf16.msra.mxu0 %v5344_v22  ;;  %v6720_v22 = vld [vmem:[#allocation88_spill] sm:$0xff] }
 0x1fb   :  { %3475 = vmatprep.subr.bf16.mxu0 %v6680_v49  ;;  %3537 = vmatpush1.bf16.msra.mxu1 %v5162_v51  ;;  %v6684_v49 = vld [vmem:[#allocation86_spill] sm:$0xff]  ;;  %v6685_v51 = vld [vmem:[#allocation15_spill] sm:$0xff] }
 0x1fc   :  { %3539 = vmatprep.subr.bf16.mxu1 %v5167_v31  ;;  %v6686_v31 = vld [vmem:[#allocation42_spill] sm:$0xff] }
 0x1fe   :  { %3477 = vmatpush1.bf16.msra.mxu0 %v5352_v42  ;;  %v6687_v42 = vld [vmem:[#allocation44_spill] sm:$0xff] }
 0x1ff   :  { %3479 = vmatprep.subr.bf16.mxu0 %v5356_v43  ;;  %3541 = vmatpush1.bf16.msra.mxu1 %v5176_v38  ;;  %v6688_v38 = vld [vmem:[#allocation16_spill] sm:$0xff]  ;;  %v6698_v43 = vld [vmem:[#allocation33_spill] sm:$0xff] }
 0x200   :  { %3543 = vmatprep.subr.bf16.mxu1 %v5181_v46  ;;  %v6689_v46 = vld [vmem:[#allocation17_spill] sm:$0xff] }
 0x202   :  { %3481 = vmatpush1.bf16.msra.mxu0 %v5360_v61  ;;  %v6690_v61 = vld [vmem:[#allocation18_spill] sm:$0xff] }
 0x203   :  { %3483 = vmatprep.subr.bf16.mxu0 %v6681_v4  ;;  %3545 = vmatpush1.bf16.msra.mxu1 %v6682_v56  ;;  %v6691_v4 = vld [vmem:[#allocation19_spill] sm:$0xff]  ;;  %v6692_v56 = vld [vmem:[#allocation21_spill] sm:$0xff] }
 0x204   :  { %3547 = vmatprep.subr.bf16.mxu1 %v6683_v44  ;;  %v6693_v44 = vld [vmem:[#allocation23_spill] sm:$0xff] }
 0x206   :  { %3485 = vmatpush1.bf16.msra.mxu0 %v6684_v49  ;;  %v6694_v49 = vld [vmem:[#allocation25_spill] sm:$0xff] }
 0x207   :  { %3551 = vmatprep.subr.bf16.mxu0 %v6685_v51  ;;  %3549 = vmatpush1.bf16.msra.mxu1 %v6686_v31  ;;  %v6695_v51 = vld [vmem:[#allocation27_spill] sm:$0xff]  ;;  %v6696_v31 = vld [vmem:[#allocation29_spill] sm:$0xff] }
 0x208   :  { %3615 = vmatprep.subr.bf16.mxu1 %v6687_v42  ;;  %v6697_v42 = vld [vmem:[#allocation31_spill] sm:$0xff] }
 0x209   :  { %1286 = vmatmul.mubr.f32.vlgmr.msra.gmra.mrb[36].mxu0 %v5604_v26 }
 0x20a   :  { %3553 = vmatpush1.bf16.msra.mxu0 %v6688_v38  ;;  %v6699_v38 = vld [vmem:[#allocation35_spill] sm:$0xff] }
 0x20b   :  { %3555 = vmatprep.subr.bf16.mxu0 %v6689_v46  ;;  %v6700_v46 = vld [vmem:[#allocation37_spill] sm:$0xff] }
 0x20e   :  { %3557 = vmatpush1.bf16.msra.mxu0 %v6690_v61  ;;  %v6701_v61 = vld [vmem:[#allocation39_spill] sm:$0xff] }
 0x20f   :  { %3559 = vmatprep.subr.bf16.mxu0 %v6691_v4  ;;  %v6702_v4 = vld [vmem:[#allocation41_spill] sm:$0xff] }
 0x212   :  { %3561 = vmatpush1.bf16.msra.mxu0 %v6692_v56  ;;  %v6703_v56 = vld [vmem:[#allocation43_spill] sm:$0xff] }
 0x213   :  { %3563 = vmatprep.subr.bf16.mxu0 %v6693_v44  ;;  %v6704_v44 = vld [vmem:[#allocation45_spill] sm:$0xff] }
 0x216   :  { %3565 = vmatpush1.bf16.msra.mxu0 %v6694_v49  ;;  %v6705_v49 = vld [vmem:[#allocation47_spill] sm:$0xff] }
 0x217   :  { %3567 = vmatprep.subr.bf16.mxu0 %v6695_v51  ;;  %v6706_v51 = vld [vmem:[#allocation49_spill] sm:$0xff] }
 0x21a   :  { %3569 = vmatpush1.bf16.msra.mxu0 %v6696_v31  ;;  %v6707_v31 = vld [vmem:[#allocation51_spill] sm:$0xff] }
 0x21b   :  { %3571 = vmatprep.subr.bf16.mxu0 %v6697_v42  ;;  %v6708_v42 = vld [vmem:[#allocation53_spill] sm:$0xff] }
 0x21e   :  { %3573 = vmatpush1.bf16.msra.mxu0 %v6698_v43  ;;  %v6709_v43 = vld [vmem:[#allocation55_spill] sm:$0xff] }
 0x21f   :  { %3575 = vmatprep.subr.bf16.mxu0 %v6699_v38  ;;  %v6710_v38 = vld [vmem:[#allocation57_spill] sm:$0xff] }
 0x222   :  { %3577 = vmatpush1.bf16.msra.mxu0 %v6700_v46  ;;  %v6711_v46 = vld [vmem:[#allocation59_spill] sm:$0xff] }
 0x223   :  { %3579 = vmatprep.subr.bf16.mxu0 %v6701_v61  ;;  %v6712_v61 = vld [vmem:[#allocation61_spill] sm:$0xff] }
 0x226   :  { %3581 = vmatpush1.bf16.msra.mxu0 %v6702_v4  ;;  %v6713_v4 = vld [vmem:[#allocation63_spill] sm:$0xff] }
 0x227   :  { %3583 = vmatprep.subr.bf16.mxu0 %v6703_v56  ;;  %v6714_v56 = vld [vmem:[#allocation65_spill] sm:$0xff] }
 0x22a   :  { %3585 = vmatpush1.bf16.msra.mxu0 %v6704_v44  ;;  %v6715_v44 = vld [vmem:[#allocation66_spill] sm:$0xff] }
 0x22b   :  { %3587 = vmatprep.subr.bf16.mxu0 %v6705_v49  ;;  %v6716_v49 = vld [vmem:[#allocation67_spill] sm:$0xff] }
 0x22e   :  { %3589 = vmatpush1.bf16.msra.mxu0 %v6706_v51  ;;  %v6717_v51 = vld [vmem:[#allocation68_spill] sm:$0xff] }
 0x22f   :  { %3591 = vmatprep.subr.bf16.mxu0 %v6707_v31  ;;  %v6718_v31 = vld [vmem:[#allocation69_spill] sm:$0xff] }
 0x232   :  { %3593 = vmatpush1.bf16.msra.mxu0 %v6708_v42  ;;  %v6719_v42 = vld [vmem:[#allocation14_spill] sm:$0xff] }
 0x233   :  { %3595 = vmatprep.subr.bf16.mxu0 %v6709_v43 }
 0x236   :  { %3597 = vmatpush1.bf16.msra.mxu0 %v6710_v38 }
 0x237   :  { %3599 = vmatprep.subr.bf16.mxu0 %v6711_v46 }
 0x23a   :  { %3601 = vmatpush1.bf16.msra.mxu0 %v6712_v61 }
 0x23b   :  { %3603 = vmatprep.subr.bf16.mxu0 %v6713_v4 }
 0x23e   :  { %3605 = vmatpush1.bf16.msra.mxu0 %v6714_v56 }
 0x23f   :  { %3607 = vmatprep.subr.bf16.mxu0 %v6715_v44 }
 0x242   :  { %3609 = vmatpush1.bf16.msra.mxu0 %v6716_v49 }
 0x243   :  { %3611 = vmatprep.subr.bf16.mxu0 %v6717_v51 }
 0x246   :  { %3613 = vmatpush1.bf16.msra.mxu0 %v6718_v31 }
 0x247   :  { %3679 = vmatprep.subr.bf16.mxu0 %v6719_v42 }
 0x29c   :  { %v1145_v43 = vpop.f32.mrb[34].mxu0  ;;  %v1216_v38 = vpop.f32.mrb[20].mxu1 }
 0x29d   :  { %v1292_v46 = vadd.f32 %v1145_v43, %v6720_v22  ;;  %v1302_v61 = vadd.f32 %v1216_v38, %v6721_v17  ;;  %v1147_v47 = vpop.f32.mrb[35].mxu0  ;;  %v1218_v4 = vpop.f32.mrb[21].mxu1 }
 0x29e   :  { %v1293_v56 = vadd.f32 %v1147_v47, %v6722_v12  ;;  %v1303_v44 = vadd.f32 %v1218_v4, %v6723_v33 }
 0x29f   :  { %v1294_v3 = vmul.f32 0.5, %v1292_v46  ;;  %v1304_v42 = vmul.f32 0.5, %v1302_v61 }
 0x2a0   :  { %v1295_v49 = vmul.f32 0.5, %v1293_v56  ;;  %v1305_v45 = vmul.f32 0.5, %v1303_v44 }
 0x2a1   :  { %4691 = vtanh.f32 %v1294_v3  ;;  %v6724_v3 = vld [vmem:[#allocation90_spill] sm:$0xff] }
 0x2a2   :  { %4693 = vtanh.f32 %v1295_v49  ;;  %v6725_v49 = vld [vmem:[#allocation128_spill] sm:$0xff] }
 0x2a3   :  { %4695 = vtanh.f32 %v1304_v42 }
 0x2a4   :  { %4697 = vtanh.f32 %v1305_v45 }
 0x2ab   :  { %v4692_v51 = vpop.eup %4691 }
 0x2ac   :  { %v4694_v31 = vpop.eup %4693  ;;  %v1298_v27 = vmul.f32 0.5, %v4692_v51 }
 0x2ad   :  { %v1299_v0 = vmul.f32 0.5, %v4694_v31  ;;  %v4696_v51 = vpop.eup %4695 }
 0x2ae   :  { %v1300_v22 = vadd.f32 0.5, %v1298_v27  ;;  %v4698_v31 = vpop.eup %4697  ;;  %v1308_v61 = vmul.f32 0.5, %v4696_v51  ;;  %v6735_v51 = vld [vmem:[#allocation80_spill] sm:$0xff] }
 0x2af   :  { %v1301_v47 = vadd.f32 0.5, %v1299_v0  ;;  %v1309_v42 = vmul.f32 0.5, %v4698_v31  ;;  %v6736_v31 = vld [vmem:[#allocation81_spill] sm:$0xff] }
 0x2b1   :  { %v1311_v0 = vadd.f32 0.5, %v1309_v42  ;;  %v6738_v42 = vld [vmem:[#allocation32_spill] sm:$0xff] }
 0x2dc   :  { %v1287_v14 = vpop.f32.mrb[36].mxu0 }
 0x2dd   :  { %v1312_v17 = vadd.f32 %v1287_v14, %v5593_v7  ;;  %v1289_v38 = vpop.f32.mrb[37].mxu0  ;;  %v1310_v14 = vadd.f32 0.5, %v1308_v61  ;;  %v6737_v61 = vld [vmem:[#allocation30_spill] sm:$0xff] }
 0x2de   :  { %v1313_v43 = vadd.f32 %v1289_v38, %v5597_v16 }
 0x2df   :  { %v1314_v46 = vmul.f32 %v1312_v17, %v1300_v22 }
 0x2e0   :  { %v1315_v33 = vmul.f32 %v1313_v43, %v1301_v47  ;;  %v6728_v43 = vld [vmem:[#allocation77_spill] sm:$0xff] }
 0x2e1   :  { %v1316_v12 = vadd.f32 %v1314_v46, %v6724_v3  ;;  %v6729_v46 = vld [vmem:[#allocation22_spill] sm:$0xff] }
 0x2e2   :  { %v1317_v4 = vadd.f32 %v1315_v33, %v6725_v49  ;;  %v6730_v33 = vld [vmem:[#allocation24_spill] sm:$0xff]  ;;  %v6731_v3 = vld [vmem:[#allocation78_spill] sm:$0xff] }
 0x2e3   :  { %4699 = vtanh.f32 %v1316_v12  ;;  %v6732_v12 = vld [vmem:[#allocation79_spill] sm:$0xff]  ;;  %v6733_v49 = vld [vmem:[#allocation26_spill] sm:$0xff] }
 0x2e4   :  { %4701 = vtanh.f32 %v1317_v4  ;;  %v6734_v4 = vld [vmem:[#allocation28_spill] sm:$0xff] }
 0x2ed   :  { %v4700_v27 = vpop.eup %4699 }
 0x2ee   :  { %v4702_v56 = vpop.eup %4701  ;;  %v1320_v45 = vsub.f32 %v5604_v26, %v4700_v27  ;;  %v6726_v26 = vld [vmem:[#allocation20_spill] sm:$0xff] }
 0x2ef   :  { %v1321_v44 = vsub.f32 %v5606_v40, %v4702_v56  ;;  %v6727_v40 = vld [vmem:[#allocation76_spill] sm:$0xff] }
 0x2f0   :  { %v1322_v22 = vmul.f32 %v1320_v45, %v1310_v14  ;;  %v6741_v14 = vld [vmem:[#allocation34_spill] sm:$0xff]  ;;  %v6742_v45 = vld [vmem:[#allocation36_spill] sm:$0xff] }
 0x2f1   :  { %v1323_v17 = vmul.f32 %v1321_v44, %v1311_v0  ;;  %v6743_v0 = vld [vmem:[#allocation84_spill] sm:$0xff]  ;;  %v6744_v44 = vld [vmem:[#allocation85_spill] sm:$0xff] }
 0x2f2   :  { %v5720_v38 = vadd.f32 %v4700_v27, %v1322_v22  ;;  %v6739_v27 = vld [vmem:[#allocation82_spill] sm:$0xff] }
 0x2f3   :  { %v5722_v47 = vadd.f32 %v4702_v56, %v1323_v17  ;;  %v6740_v56 = vld [vmem:[#allocation83_spill] sm:$0xff]  ;;  %v6745_v22 = vld [vmem:[#allocation38_spill] sm:$0xff]  ;;  %v6746_v17 = vld [vmem:[#allocation40_spill] sm:$0xff] }
 0x2f5   :  { %1396 = vmatprep.mubr.f32.mxu1 %v5722_v47  ;;  %1467 = vmatprep.mubr.f32.mxu0 %v5722_v47 }
 0x2f6   :  { %1397 = vmatmul.mubr.f32.vlgmr.msra.gmra.mrb[22].mxu1 %v5720_v38  ;;  %1468 = vmatmul.mubr.f32.vlgmr.msra.gmra.mrb[38].mxu0 %v5720_v38 }
 0x2f7   :  { %3617 = vmatpush1.bf16.msra.mxu1 %v6660_v50  ;;  %1538 = vmatprep.mubr.f32.mxu1 %v5722_v47 }
 0x2f8   :  { %3619 = vmatprep.subr.bf16.mxu1 %v6661_v23  ;;  %3681 = vmatpush1.bf16.msra.mxu0 %v4990_v54 }
 0x2f9   :  { %3683 = vmatprep.subr.bf16.mxu0 %v4994_v59 }
 0x2fb   :  { %3621 = vmatpush1.bf16.msra.mxu1 %v6662_v10 }
 0x2fc   :  { %3623 = vmatprep.subr.bf16.mxu1 %v6663_v63  ;;  %3685 = vmatpush1.bf16.msra.mxu0 %v5006_v6 }
 0x2fd   :  { %3687 = vmatprep.subr.bf16.mxu0 %v5009_v11 }
 0x2ff   :  { %3625 = vmatpush1.bf16.msra.mxu1 %v6664_v36 }
 0x300   :  { %3627 = vmatprep.subr.bf16.mxu1 %v6665_v58  ;;  %3689 = vmatpush1.bf16.msra.mxu0 %v5021_v20 }
 0x301   :  { %3691 = vmatprep.subr.bf16.mxu0 %v5024_v25 }
 0x303   :  { %3629 = vmatpush1.bf16.msra.mxu1 %v6666_v53 }
 0x304   :  { %3631 = vmatprep.subr.bf16.mxu1 %v6667_v37  ;;  %3693 = vmatpush1.bf16.msra.mxu0 %v5037_v34 }
 0x305   :  { %3695 = vmatprep.subr.bf16.mxu0 %v5043_v39 }
 0x307   :  { %3633 = vmatpush1.bf16.msra.mxu1 %v6668_v29 }
 0x308   :  { %3635 = vmatprep.subr.bf16.mxu1 %v6669_v28  ;;  %3697 = vmatpush1.bf16.msra.mxu0 %v5053_v48 }
 0x309   :  { %3699 = vmatprep.subr.bf16.mxu0 %v5056_v55 }
 0x30b   :  { %3637 = vmatpush1.bf16.msra.mxu1 %v5280_v57 }
 0x30c   :  { %3639 = vmatprep.subr.bf16.mxu1 %v5285_v62  ;;  %3701 = vmatpush1.bf16.msra.mxu0 %v5065_v1 }
 0x30d   :  { %3703 = vmatprep.subr.bf16.mxu0 %v5068_v8 }
 0x30f   :  { %3641 = vmatpush1.bf16.msra.mxu1 %v5292_v32 }
 0x310   :  { %3643 = vmatprep.subr.bf16.mxu1 %v5297_v19  ;;  %3705 = vmatpush1.bf16.msra.mxu0 %v5077_v18 }
 0x311   :  { %3707 = vmatprep.subr.bf16.mxu0 %v5080_v24 }
 0x313   :  { %3645 = vmatpush1.bf16.msra.mxu1 %v6670_v30 }
 0x314   :  { %3647 = vmatprep.subr.bf16.mxu1 %v6671_v13  ;;  %3709 = vmatpush1.bf16.msra.mxu0 %v5089_v35 }
 0x315   :  { %3711 = vmatprep.subr.bf16.mxu0 %v5094_v41 }
 0x317   :  { %3649 = vmatpush1.bf16.msra.mxu1 %v6672_v5 }
 0x318   :  { %3651 = vmatprep.subr.bf16.mxu1 %v6673_v15  ;;  %3713 = vmatpush1.bf16.msra.mxu0 %v5104_v52 }
 0x319   :  { %3715 = vmatprep.subr.bf16.mxu0 %v5109_v60 }
 0x31b   :  { %3653 = vmatpush1.bf16.msra.mxu1 %v6674_v21 }
 0x31c   :  { %3655 = vmatprep.subr.bf16.mxu1 %v6675_v2  ;;  %3717 = vmatpush1.bf16.msra.mxu0 %v5120_v9 }
 0x31d   :  { %3719 = vmatprep.subr.bf16.mxu0 %v6726_v26 }
 0x31f   :  { %3657 = vmatpush1.bf16.msra.mxu1 %v6727_v40 }
 0x320   :  { %3659 = vmatprep.subr.bf16.mxu1 %v6728_v43  ;;  %3721 = vmatpush1.bf16.msra.mxu0 %v6729_v46 }
 0x321   :  { %3723 = vmatprep.subr.bf16.mxu0 %v6730_v33 }
 0x323   :  { %3661 = vmatpush1.bf16.msra.mxu1 %v6731_v3  ;;  %v6786_v3 = vld [vmem:[#allocation125_spill] sm:$0xff] }
 0x324   :  { %3663 = vmatprep.subr.bf16.mxu1 %v6732_v12  ;;  %3725 = vmatpush1.bf16.msra.mxu0 %v6733_v49  ;;  %v6785_v12 = vld [vmem:[#allocation107_spill] sm:$0xff] }
 0x325   :  { %3727 = vmatprep.subr.bf16.mxu0 %v6734_v4  ;;  %v6784_v4 = vld [vmem:[#allocation93_spill] sm:$0xff] }
 0x327   :  { %3665 = vmatpush1.bf16.msra.mxu1 %v6735_v51  ;;  %v6783_v51 = vld [vmem:[#allocation92_spill] sm:$0xff] }
 0x328   :  { %3667 = vmatprep.subr.bf16.mxu1 %v6736_v31  ;;  %3729 = vmatpush1.bf16.msra.mxu0 %v6737_v61  ;;  %v6747_v31 = vld [vmem:[#allocation86_spill] sm:$0xff]  ;;  %v6748_v61 = vld [vmem:[#allocation15_spill] sm:$0xff] }
 0x329   :  { %3731 = vmatprep.subr.bf16.mxu0 %v6738_v42  ;;  %v6749_v42 = vld [vmem:[#allocation42_spill] sm:$0xff] }
 0x32b   :  { %3669 = vmatpush1.bf16.msra.mxu1 %v6739_v27  ;;  %v6750_v27 = vld [vmem:[#allocation44_spill] sm:$0xff] }
 0x32c   :  { %3671 = vmatprep.subr.bf16.mxu1 %v6740_v56  ;;  %3733 = vmatpush1.bf16.msra.mxu0 %v6741_v14  ;;  %v6751_v14 = vld [vmem:[#allocation16_spill] sm:$0xff]  ;;  %v6761_v56 = vld [vmem:[#allocation33_spill] sm:$0xff] }
 0x32d   :  { %3735 = vmatprep.subr.bf16.mxu0 %v6742_v45  ;;  %v6752_v45 = vld [vmem:[#allocation17_spill] sm:$0xff] }
 0x32f   :  { %3673 = vmatpush1.bf16.msra.mxu1 %v6743_v0  ;;  %v6753_v0 = vld [vmem:[#allocation18_spill] sm:$0xff] }
 0x330   :  { %3675 = vmatprep.subr.bf16.mxu1 %v6744_v44  ;;  %3737 = vmatpush1.bf16.msra.mxu0 %v6745_v22  ;;  %v6754_v44 = vld [vmem:[#allocation19_spill] sm:$0xff]  ;;  %v6755_v22 = vld [vmem:[#allocation21_spill] sm:$0xff] }
 0x331   :  { %3739 = vmatprep.subr.bf16.mxu0 %v6746_v17  ;;  %v6756_v17 = vld [vmem:[#allocation23_spill] sm:$0xff] }
 0x333   :  { %3677 = vmatpush1.bf16.msra.mxu1 %v6747_v31  ;;  %v6757_v31 = vld [vmem:[#allocation25_spill] sm:$0xff] }
 0x334   :  { %3743 = vmatprep.subr.bf16.mxu1 %v6748_v61  ;;  %3741 = vmatpush1.bf16.msra.mxu0 %v6749_v42  ;;  %v6758_v61 = vld [vmem:[#allocation27_spill] sm:$0xff]  ;;  %v6759_v42 = vld [vmem:[#allocation29_spill] sm:$0xff] }
 0x335   :  { %3807 = vmatprep.subr.bf16.mxu0 %v6750_v27  ;;  %v6760_v27 = vld [vmem:[#allocation31_spill] sm:$0xff] }
 0x336   :  { %1539 = vmatmul.mubr.f32.vlgmr.msra.gmra.mrb[24].mxu1 %v5720_v38 }
 0x337   :  { %3745 = vmatpush1.bf16.msra.mxu1 %v6751_v14  ;;  %v6762_v14 = vld [vmem:[#allocation35_spill] sm:$0xff] }
 0x338   :  { %3747 = vmatprep.subr.bf16.mxu1 %v6752_v45  ;;  %v6763_v45 = vld [vmem:[#allocation37_spill] sm:$0xff] }
 0x33b   :  { %3749 = vmatpush1.bf16.msra.mxu1 %v6753_v0  ;;  %v6764_v0 = vld [vmem:[#allocation39_spill] sm:$0xff] }
 0x33c   :  { %3751 = vmatprep.subr.bf16.mxu1 %v6754_v44  ;;  %v6765_v44 = vld [vmem:[#allocation41_spill] sm:$0xff] }
 0x33f   :  { %3753 = vmatpush1.bf16.msra.mxu1 %v6755_v22  ;;  %v6766_v22 = vld [vmem:[#allocation43_spill] sm:$0xff] }
 0x340   :  { %3755 = vmatprep.subr.bf16.mxu1 %v6756_v17  ;;  %v6767_v17 = vld [vmem:[#allocation45_spill] sm:$0xff] }
 0x343   :  { %3757 = vmatpush1.bf16.msra.mxu1 %v6757_v31  ;;  %v6768_v31 = vld [vmem:[#allocation47_spill] sm:$0xff] }
 0x344   :  { %3759 = vmatprep.subr.bf16.mxu1 %v6758_v61  ;;  %v6769_v61 = vld [vmem:[#allocation49_spill] sm:$0xff] }
 0x347   :  { %3761 = vmatpush1.bf16.msra.mxu1 %v6759_v42  ;;  %v6770_v42 = vld [vmem:[#allocation51_spill] sm:$0xff] }
 0x348   :  { %3763 = vmatprep.subr.bf16.mxu1 %v6760_v27  ;;  %v6771_v27 = vld [vmem:[#allocation53_spill] sm:$0xff] }
 0x34b   :  { %3765 = vmatpush1.bf16.msra.mxu1 %v6761_v56  ;;  %v6772_v56 = vld [vmem:[#allocation55_spill] sm:$0xff] }
 0x34c   :  { %3767 = vmatprep.subr.bf16.mxu1 %v6762_v14  ;;  %v6773_v14 = vld [vmem:[#allocation57_spill] sm:$0xff] }
 0x34f   :  { %3769 = vmatpush1.bf16.msra.mxu1 %v6763_v45  ;;  %v6774_v45 = vld [vmem:[#allocation59_spill] sm:$0xff] }
 0x350   :  { %3771 = vmatprep.subr.bf16.mxu1 %v6764_v0  ;;  %v6775_v0 = vld [vmem:[#allocation61_spill] sm:$0xff] }
 0x353   :  { %3773 = vmatpush1.bf16.msra.mxu1 %v6765_v44  ;;  %v6776_v44 = vld [vmem:[#allocation63_spill] sm:$0xff] }
 0x354   :  { %3775 = vmatprep.subr.bf16.mxu1 %v6766_v22  ;;  %v6777_v22 = vld [vmem:[#allocation65_spill] sm:$0xff] }
 0x357   :  { %3777 = vmatpush1.bf16.msra.mxu1 %v6767_v17  ;;  %v6778_v17 = vld [vmem:[#allocation66_spill] sm:$0xff] }
 0x358   :  { %3779 = vmatprep.subr.bf16.mxu1 %v6768_v31  ;;  %v6779_v31 = vld [vmem:[#allocation67_spill] sm:$0xff] }
 0x35b   :  { %3781 = vmatpush1.bf16.msra.mxu1 %v6769_v61  ;;  %v6780_v61 = vld [vmem:[#allocation68_spill] sm:$0xff] }
 0x35c   :  { %3783 = vmatprep.subr.bf16.mxu1 %v6770_v42  ;;  %v6781_v42 = vld [vmem:[#allocation69_spill] sm:$0xff] }
 0x35f   :  { %3785 = vmatpush1.bf16.msra.mxu1 %v6771_v27  ;;  %v6782_v27 = vld [vmem:[#allocation14_spill] sm:$0xff] }
 0x360   :  { %3787 = vmatprep.subr.bf16.mxu1 %v6772_v56 }
 0x363   :  { %3789 = vmatpush1.bf16.msra.mxu1 %v6773_v14 }
 0x364   :  { %3791 = vmatprep.subr.bf16.mxu1 %v6774_v45 }
 0x367   :  { %3793 = vmatpush1.bf16.msra.mxu1 %v6775_v0 }
 0x368   :  { %3795 = vmatprep.subr.bf16.mxu1 %v6776_v44 }
 0x36b   :  { %3797 = vmatpush1.bf16.msra.mxu1 %v6777_v22 }
 0x36c   :  { %3799 = vmatprep.subr.bf16.mxu1 %v6778_v17 }
 0x36f   :  { %3801 = vmatpush1.bf16.msra.mxu1 %v6779_v31 }
 0x370   :  { %3803 = vmatprep.subr.bf16.mxu1 %v6780_v61 }
 0x373   :  { %3805 = vmatpush1.bf16.msra.mxu1 %v6781_v42 }
 0x374   :  { %3871 = vmatprep.subr.bf16.mxu1 %v6782_v27 }
 0x3c9   :  { %v1398_v56 = vpop.f32.mrb[22].mxu1  ;;  %v1469_v14 = vpop.f32.mrb[38].mxu0 }
 0x3ca   :  { %v1545_v45 = vadd.f32 %v1398_v56, %v6783_v51  ;;  %v1555_v0 = vadd.f32 %v1469_v14, %v6784_v4  ;;  %v1400_v49 = vpop.f32.mrb[23].mxu1  ;;  %v1471_v44 = vpop.f32.mrb[39].mxu0 }
 0x3cb   :  { %v1546_v22 = vadd.f32 %v1400_v49, %v6785_v12  ;;  %v1556_v17 = vadd.f32 %v1471_v44, %v6786_v3 }
 0x3cc   :  { %v1547_v33 = vmul.f32 0.5, %v1545_v45  ;;  %v1557_v27 = vmul.f32 0.5, %v1555_v0  ;;  %v6788_v45 = vld [vmem:[#allocation126_spill] sm:$0xff] }
 0x3cd   :  { %v1548_v31 = vmul.f32 0.5, %v1546_v22  ;;  %v1558_v40 = vmul.f32 0.5, %v1556_v17 }
 0x3ce   :  { %4703 = vtanh.f32 %v1547_v33  ;;  %v6787_v33 = vld [vmem:[#allocation94_spill] sm:$0xff] }
 0x3cf   :  { %4705 = vtanh.f32 %v1548_v31 }
 0x3d0   :  { %4707 = vtanh.f32 %v1557_v27 }
 0x3d1   :  { %4709 = vtanh.f32 %v1558_v40 }
 0x3d8   :  { %v4704_v61 = vpop.eup %4703 }
 0x3d9   :  { %v4706_v42 = vpop.eup %4705  ;;  %v1551_v46 = vmul.f32 0.5, %v4704_v61 }
 0x3da   :  { %v1552_v43 = vmul.f32 0.5, %v4706_v42  ;;  %v4708_v61 = vpop.eup %4707 }
 0x3db   :  { %v1553_v51 = vadd.f32 0.5, %v1551_v46  ;;  %v4710_v42 = vpop.eup %4709  ;;  %v1561_v0 = vmul.f32 0.5, %v4708_v61  ;;  %v6798_v61 = vld [vmem:[#allocation80_spill] sm:$0xff] }
 0x3dc   :  { %v1554_v12 = vadd.f32 0.5, %v1552_v43  ;;  %v1562_v27 = vmul.f32 0.5, %v4710_v42  ;;  %v6799_v42 = vld [vmem:[#allocation81_spill] sm:$0xff] }
 0x3de   :  { %v1564_v43 = vadd.f32 0.5, %v1562_v27  ;;  %v6801_v27 = vld [vmem:[#allocation32_spill] sm:$0xff] }
 0x409   :  { %v1540_v26 = vpop.f32.mrb[24].mxu1 }
 0x40a   :  { %v1565_v4 = vadd.f32 %v1540_v26, %v5593_v7  ;;  %v1542_v56 = vpop.f32.mrb[25].mxu1  ;;  %v1563_v26 = vadd.f32 0.5, %v1561_v0  ;;  %v6800_v0 = vld [vmem:[#allocation30_spill] sm:$0xff] }
 0x40b   :  { %v1566_v3 = vadd.f32 %v1542_v56, %v5597_v16 }
 0x40c   :  { %v1567_v49 = vmul.f32 %v1565_v4, %v1553_v51 }
 0x40d   :  { %v1568_v14 = vmul.f32 %v1566_v3, %v1554_v12  ;;  %v6791_v3 = vld [vmem:[#allocation77_spill] sm:$0xff] }
 0x40e   :  { %v1569_v31 = vadd.f32 %v1567_v49, %v6787_v33  ;;  %v6792_v49 = vld [vmem:[#allocation22_spill] sm:$0xff] }
 0x40f   :  { %v1570_v44 = vadd.f32 %v1568_v14, %v6788_v45  ;;  %v6793_v14 = vld [vmem:[#allocation24_spill] sm:$0xff]  ;;  %v6794_v33 = vld [vmem:[#allocation78_spill] sm:$0xff] }
 0x410   :  { %4711 = vtanh.f32 %v1569_v31  ;;  %v6795_v31 = vld [vmem:[#allocation79_spill] sm:$0xff]  ;;  %v6796_v45 = vld [vmem:[#allocation26_spill] sm:$0xff] }
 0x411   :  { %4713 = vtanh.f32 %v1570_v44  ;;  %v6797_v44 = vld [vmem:[#allocation28_spill] sm:$0xff] }
 0x41a   :  { %v4712_v46 = vpop.eup %4711 }
 0x41b   :  { %v4714_v22 = vpop.eup %4713  ;;  %v1573_v40 = vsub.f32 %v5720_v38, %v4712_v46  ;;  %v6789_v38 = vld [vmem:[#allocation20_spill] sm:$0xff] }
 0x41c   :  { %v1574_v17 = vsub.f32 %v5722_v47, %v4714_v22  ;;  %v6790_v47 = vld [vmem:[#allocation76_spill] sm:$0xff] }
 0x41d   :  { %v1575_v51 = vmul.f32 %v1573_v40, %v1563_v26  ;;  %v6804_v26 = vld [vmem:[#allocation34_spill] sm:$0xff]  ;;  %v6805_v40 = vld [vmem:[#allocation36_spill] sm:$0xff] }
 0x41e   :  { %v1576_v4 = vmul.f32 %v1574_v17, %v1564_v43  ;;  %v6806_v43 = vld [vmem:[#allocation84_spill] sm:$0xff]  ;;  %v6807_v17 = vld [vmem:[#allocation85_spill] sm:$0xff] }
 0x41f   :  { %v5836_v56 = vadd.f32 %v4712_v46, %v1575_v51  ;;  %v6802_v46 = vld [vmem:[#allocation82_spill] sm:$0xff] }
 0x420   :  { %v5838_v12 = vadd.f32 %v4714_v22, %v1576_v4  ;;  %v6803_v22 = vld [vmem:[#allocation83_spill] sm:$0xff]  ;;  %v6808_v51 = vld [vmem:[#allocation38_spill] sm:$0xff]  ;;  %v6809_v4 = vld [vmem:[#allocation40_spill] sm:$0xff] }
 0x422   :  { %1649 = vmatprep.mubr.f32.mxu0 %v5838_v12  ;;  %1720 = vmatprep.mubr.f32.mxu1 %v5838_v12 }
 0x423   :  { %1650 = vmatmul.mubr.f32.vlgmr.msra.gmra.mrb[40].mxu0 %v5836_v56  ;;  %1721 = vmatmul.mubr.f32.vlgmr.msra.gmra.mrb[26].mxu1 %v5836_v56 }
 0x424   :  { %3809 = vmatpush1.bf16.msra.mxu0 %v6660_v50  ;;  %1791 = vmatprep.mubr.f32.mxu0 %v5838_v12 }
 0x425   :  { %3811 = vmatprep.subr.bf16.mxu0 %v6661_v23  ;;  %3873 = vmatpush1.bf16.msra.mxu1 %v4990_v54 }
 0x426   :  { %3875 = vmatprep.subr.bf16.mxu1 %v4994_v59 }
 0x428   :  { %3813 = vmatpush1.bf16.msra.mxu0 %v6662_v10 }
 0x429   :  { %3815 = vmatprep.subr.bf16.mxu0 %v6663_v63  ;;  %3877 = vmatpush1.bf16.msra.mxu1 %v5006_v6 }
 0x42a   :  { %3879 = vmatprep.subr.bf16.mxu1 %v5009_v11 }
 0x42c   :  { %3817 = vmatpush1.bf16.msra.mxu0 %v6664_v36 }
 0x42d   :  { %3819 = vmatprep.subr.bf16.mxu0 %v6665_v58  ;;  %3881 = vmatpush1.bf16.msra.mxu1 %v5021_v20 }
 0x42e   :  { %3883 = vmatprep.subr.bf16.mxu1 %v5024_v25 }
 0x430   :  { %3821 = vmatpush1.bf16.msra.mxu0 %v6666_v53 }
 0x431   :  { %3823 = vmatprep.subr.bf16.mxu0 %v6667_v37  ;;  %3885 = vmatpush1.bf16.msra.mxu1 %v5037_v34 }
 0x432   :  { %3887 = vmatprep.subr.bf16.mxu1 %v5043_v39 }
 0x434   :  { %3825 = vmatpush1.bf16.msra.mxu0 %v6668_v29 }
 0x435   :  { %3827 = vmatprep.subr.bf16.mxu0 %v6669_v28  ;;  %3889 = vmatpush1.bf16.msra.mxu1 %v5053_v48 }
 0x436   :  { %3891 = vmatprep.subr.bf16.mxu1 %v5056_v55 }
 0x438   :  { %3829 = vmatpush1.bf16.msra.mxu0 %v5280_v57 }
 0x439   :  { %3831 = vmatprep.subr.bf16.mxu0 %v5285_v62  ;;  %3893 = vmatpush1.bf16.msra.mxu1 %v5065_v1 }
 0x43a   :  { %3895 = vmatprep.subr.bf16.mxu1 %v5068_v8 }
 0x43c   :  { %3833 = vmatpush1.bf16.msra.mxu0 %v5292_v32 }
 0x43d   :  { %3835 = vmatprep.subr.bf16.mxu0 %v5297_v19  ;;  %3897 = vmatpush1.bf16.msra.mxu1 %v5077_v18 }
 0x43e   :  { %3899 = vmatprep.subr.bf16.mxu1 %v5080_v24 }
 0x440   :  { %3837 = vmatpush1.bf16.msra.mxu0 %v6670_v30 }
 0x441   :  { %3839 = vmatprep.subr.bf16.mxu0 %v6671_v13  ;;  %3901 = vmatpush1.bf16.msra.mxu1 %v5089_v35 }
 0x442   :  { %3903 = vmatprep.subr.bf16.mxu1 %v5094_v41 }
 0x444   :  { %3841 = vmatpush1.bf16.msra.mxu0 %v6672_v5 }
 0x445   :  { %3843 = vmatprep.subr.bf16.mxu0 %v6673_v15  ;;  %3905 = vmatpush1.bf16.msra.mxu1 %v5104_v52 }
 0x446   :  { %3907 = vmatprep.subr.bf16.mxu1 %v5109_v60 }
 0x448   :  { %3845 = vmatpush1.bf16.msra.mxu0 %v6674_v21 }
 0x449   :  { %3847 = vmatprep.subr.bf16.mxu0 %v6675_v2  ;;  %3909 = vmatpush1.bf16.msra.mxu1 %v5120_v9 }
 0x44a   :  { %3911 = vmatprep.subr.bf16.mxu1 %v6789_v38 }
 0x44c   :  { %3849 = vmatpush1.bf16.msra.mxu0 %v6790_v47 }
 0x44d   :  { %3851 = vmatprep.subr.bf16.mxu0 %v6791_v3  ;;  %3913 = vmatpush1.bf16.msra.mxu1 %v6792_v49 }
 0x44e   :  { %3915 = vmatprep.subr.bf16.mxu1 %v6793_v14 }
 0x450   :  { %3853 = vmatpush1.bf16.msra.mxu0 %v6794_v33  ;;  %v6849_v33 = vld [vmem:[#allocation123_spill] sm:$0xff] }
 0x451   :  { %3855 = vmatprep.subr.bf16.mxu0 %v6795_v31  ;;  %3917 = vmatpush1.bf16.msra.mxu1 %v6796_v45  ;;  %v6848_v31 = vld [vmem:[#allocation103_spill] sm:$0xff] }
 0x452   :  { %3919 = vmatprep.subr.bf16.mxu1 %v6797_v44  ;;  %v6847_v44 = vld [vmem:[#allocation97_spill] sm:$0xff] }
 0x454   :  { %3857 = vmatpush1.bf16.msra.mxu0 %v6798_v61  ;;  %v6846_v61 = vld [vmem:[#allocation96_spill] sm:$0xff] }
 0x455   :  { %3859 = vmatprep.subr.bf16.mxu0 %v6799_v42  ;;  %3921 = vmatpush1.bf16.msra.mxu1 %v6800_v0  ;;  %v6810_v42 = vld [vmem:[#allocation86_spill] sm:$0xff]  ;;  %v6811_v0 = vld [vmem:[#allocation15_spill] sm:$0xff] }
 0x456   :  { %3923 = vmatprep.subr.bf16.mxu1 %v6801_v27  ;;  %v6812_v27 = vld [vmem:[#allocation42_spill] sm:$0xff] }
 0x458   :  { %3861 = vmatpush1.bf16.msra.mxu0 %v6802_v46  ;;  %v6813_v46 = vld [vmem:[#allocation44_spill] sm:$0xff] }
 0x459   :  { %3863 = vmatprep.subr.bf16.mxu0 %v6803_v22  ;;  %3925 = vmatpush1.bf16.msra.mxu1 %v6804_v26  ;;  %v6814_v26 = vld [vmem:[#allocation16_spill] sm:$0xff]  ;;  %v6824_v22 = vld [vmem:[#allocation33_spill] sm:$0xff] }
 0x45a   :  { %3927 = vmatprep.subr.bf16.mxu1 %v6805_v40  ;;  %v6815_v40 = vld [vmem:[#allocation17_spill] sm:$0xff] }
 0x45c   :  { %3865 = vmatpush1.bf16.msra.mxu0 %v6806_v43  ;;  %v6816_v43 = vld [vmem:[#allocation18_spill] sm:$0xff] }
 0x45d   :  { %3867 = vmatprep.subr.bf16.mxu0 %v6807_v17  ;;  %3929 = vmatpush1.bf16.msra.mxu1 %v6808_v51  ;;  %v6817_v17 = vld [vmem:[#allocation19_spill] sm:$0xff]  ;;  %v6818_v51 = vld [vmem:[#allocation21_spill] sm:$0xff] }
 0x45e   :  { %3931 = vmatprep.subr.bf16.mxu1 %v6809_v4  ;;  %v6819_v4 = vld [vmem:[#allocation23_spill] sm:$0xff] }
 0x460   :  { %3869 = vmatpush1.bf16.msra.mxu0 %v6810_v42  ;;  %v6820_v42 = vld [vmem:[#allocation25_spill] sm:$0xff] }
 0x461   :  { %3935 = vmatprep.subr.bf16.mxu0 %v6811_v0  ;;  %3933 = vmatpush1.bf16.msra.mxu1 %v6812_v27  ;;  %v6821_v0 = vld [vmem:[#allocation27_spill] sm:$0xff]  ;;  %v6822_v27 = vld [vmem:[#allocation29_spill] sm:$0xff] }
 0x462   :  { %3999 = vmatprep.subr.bf16.mxu1 %v6813_v46  ;;  %v6823_v46 = vld [vmem:[#allocation31_spill] sm:$0xff] }
 0x463   :  { %1792 = vmatmul.mubr.f32.vlgmr.msra.gmra.mrb[42].mxu0 %v5836_v56 }
 0x464   :  { %3937 = vmatpush1.bf16.msra.mxu0 %v6814_v26  ;;  %v6825_v26 = vld [vmem:[#allocation35_spill] sm:$0xff] }
 0x465   :  { %3939 = vmatprep.subr.bf16.mxu0 %v6815_v40  ;;  %v6826_v40 = vld [vmem:[#allocation37_spill] sm:$0xff] }
 0x468   :  { %3941 = vmatpush1.bf16.msra.mxu0 %v6816_v43  ;;  %v6827_v43 = vld [vmem:[#allocation39_spill] sm:$0xff] }
 0x469   :  { %3943 = vmatprep.subr.bf16.mxu0 %v6817_v17  ;;  %v6828_v17 = vld [vmem:[#allocation41_spill] sm:$0xff] }
 0x46c   :  { %3945 = vmatpush1.bf16.msra.mxu0 %v6818_v51  ;;  %v6829_v51 = vld [vmem:[#allocation43_spill] sm:$0xff] }
 0x46d   :  { %3947 = vmatprep.subr.bf16.mxu0 %v6819_v4  ;;  %v6830_v4 = vld [vmem:[#allocation45_spill] sm:$0xff] }
 0x470   :  { %3949 = vmatpush1.bf16.msra.mxu0 %v6820_v42  ;;  %v6831_v42 = vld [vmem:[#allocation47_spill] sm:$0xff] }
 0x471   :  { %3951 = vmatprep.subr.bf16.mxu0 %v6821_v0  ;;  %v6832_v0 = vld [vmem:[#allocation49_spill] sm:$0xff] }
 0x474   :  { %3953 = vmatpush1.bf16.msra.mxu0 %v6822_v27  ;;  %v6833_v27 = vld [vmem:[#allocation51_spill] sm:$0xff] }
 0x475   :  { %3955 = vmatprep.subr.bf16.mxu0 %v6823_v46  ;;  %v6834_v46 = vld [vmem:[#allocation53_spill] sm:$0xff] }
 0x478   :  { %3957 = vmatpush1.bf16.msra.mxu0 %v6824_v22  ;;  %v6835_v22 = vld [vmem:[#allocation55_spill] sm:$0xff] }
 0x479   :  { %3959 = vmatprep.subr.bf16.mxu0 %v6825_v26  ;;  %v6836_v26 = vld [vmem:[#allocation57_spill] sm:$0xff] }
 0x47c   :  { %3961 = vmatpush1.bf16.msra.mxu0 %v6826_v40  ;;  %v6837_v40 = vld [vmem:[#allocation59_spill] sm:$0xff] }
 0x47d   :  { %3963 = vmatprep.subr.bf16.mxu0 %v6827_v43  ;;  %v6838_v43 = vld [vmem:[#allocation61_spill] sm:$0xff] }
 0x480   :  { %3965 = vmatpush1.bf16.msra.mxu0 %v6828_v17  ;;  %v6839_v17 = vld [vmem:[#allocation63_spill] sm:$0xff] }
 0x481   :  { %3967 = vmatprep.subr.bf16.mxu0 %v6829_v51  ;;  %v6840_v51 = vld [vmem:[#allocation65_spill] sm:$0xff] }
 0x484   :  { %3969 = vmatpush1.bf16.msra.mxu0 %v6830_v4  ;;  %v6841_v4 = vld [vmem:[#allocation66_spill] sm:$0xff] }
 0x485   :  { %3971 = vmatprep.subr.bf16.mxu0 %v6831_v42  ;;  %v6842_v42 = vld [vmem:[#allocation67_spill] sm:$0xff] }
 0x488   :  { %3973 = vmatpush1.bf16.msra.mxu0 %v6832_v0  ;;  %v6843_v0 = vld [vmem:[#allocation68_spill] sm:$0xff] }
 0x489   :  { %3975 = vmatprep.subr.bf16.mxu0 %v6833_v27  ;;  %v6844_v27 = vld [vmem:[#allocation69_spill] sm:$0xff] }
 0x48c   :  { %3977 = vmatpush1.bf16.msra.mxu0 %v6834_v46  ;;  %v6845_v46 = vld [vmem:[#allocation14_spill] sm:$0xff] }
 0x48d   :  { %3979 = vmatprep.subr.bf16.mxu0 %v6835_v22 }
 0x490   :  { %3981 = vmatpush1.bf16.msra.mxu0 %v6836_v26 }
 0x491   :  { %3983 = vmatprep.subr.bf16.mxu0 %v6837_v40 }
 0x494   :  { %3985 = vmatpush1.bf16.msra.mxu0 %v6838_v43 }
 0x495   :  { %3987 = vmatprep.subr.bf16.mxu0 %v6839_v17 }
 0x498   :  { %3989 = vmatpush1.bf16.msra.mxu0 %v6840_v51 }
 0x499   :  { %3991 = vmatprep.subr.bf16.mxu0 %v6841_v4 }
 0x49c   :  { %3993 = vmatpush1.bf16.msra.mxu0 %v6842_v42 }
 0x49d   :  { %3995 = vmatprep.subr.bf16.mxu0 %v6843_v0 }
 0x4a0   :  { %3997 = vmatpush1.bf16.msra.mxu0 %v6844_v27 }
 0x4a1   :  { %4063 = vmatprep.subr.bf16.mxu0 %v6845_v46 }
 0x4f6   :  { %v1651_v22 = vpop.f32.mrb[40].mxu0  ;;  %v1722_v26 = vpop.f32.mrb[26].mxu1 }
 0x4f7   :  { %v1798_v40 = vadd.f32 %v1651_v22, %v6846_v61  ;;  %v1808_v43 = vadd.f32 %v1722_v26, %v6847_v44  ;;  %v1653_v45 = vpop.f32.mrb[41].mxu0  ;;  %v1724_v17 = vpop.f32.mrb[27].mxu1 }
 0x4f8   :  { %v1799_v51 = vadd.f32 %v1653_v45, %v6848_v31  ;;  %v1809_v4 = vadd.f32 %v1724_v17, %v6849_v33 }
 0x4f9   :  { %v1800_v14 = vmul.f32 0.5, %v1798_v40  ;;  %v1810_v46 = vmul.f32 0.5, %v1808_v43  ;;  %v6851_v40 = vld [vmem:[#allocation124_spill] sm:$0xff] }
 0x4fa   :  { %v1801_v42 = vmul.f32 0.5, %v1799_v51  ;;  %v1811_v47 = vmul.f32 0.5, %v1809_v4 }
 0x4fb   :  { %4715 = vtanh.f32 %v1800_v14  ;;  %v6850_v14 = vld [vmem:[#allocation98_spill] sm:$0xff] }
 0x4fc   :  { %4717 = vtanh.f32 %v1801_v42 }
 0x4fd   :  { %4719 = vtanh.f32 %v1810_v46 }
 0x4fe   :  { %4721 = vtanh.f32 %v1811_v47 }
 0x505   :  { %v4716_v0 = vpop.eup %4715 }
 0x506   :  { %v4718_v27 = vpop.eup %4717  ;;  %v1804_v49 = vmul.f32 0.5, %v4716_v0 }
 0x507   :  { %v1805_v3 = vmul.f32 0.5, %v4718_v27  ;;  %v4720_v0 = vpop.eup %4719 }
 0x508   :  { %v1806_v61 = vadd.f32 0.5, %v1804_v49  ;;  %v4722_v27 = vpop.eup %4721  ;;  %v1814_v43 = vmul.f32 0.5, %v4720_v0  ;;  %v6861_v0 = vld [vmem:[#allocation80_spill] sm:$0xff] }
 0x509   :  { %v1807_v31 = vadd.f32 0.5, %v1805_v3  ;;  %v1815_v46 = vmul.f32 0.5, %v4722_v27  ;;  %v6862_v27 = vld [vmem:[#allocation81_spill] sm:$0xff] }
 0x50b   :  { %v1817_v3 = vadd.f32 0.5, %v1815_v46  ;;  %v6864_v46 = vld [vmem:[#allocation32_spill] sm:$0xff] }
 0x536   :  { %v1793_v38 = vpop.f32.mrb[42].mxu0 }
 0x537   :  { %v1818_v44 = vadd.f32 %v1793_v38, %v5593_v7  ;;  %v1795_v22 = vpop.f32.mrb[43].mxu0  ;;  %v1816_v38 = vadd.f32 0.5, %v1814_v43  ;;  %v6863_v43 = vld [vmem:[#allocation30_spill] sm:$0xff] }
 0x538   :  { %v1819_v33 = vadd.f32 %v1795_v22, %v5597_v16 }
 0x539   :  { %v1820_v45 = vmul.f32 %v1818_v44, %v1806_v61 }
 0x53a   :  { %v1821_v26 = vmul.f32 %v1819_v33, %v1807_v31  ;;  %v6854_v33 = vld [vmem:[#allocation77_spill] sm:$0xff] }
 0x53b   :  { %v1822_v42 = vadd.f32 %v1820_v45, %v6850_v14  ;;  %v6855_v45 = vld [vmem:[#allocation22_spill] sm:$0xff] }
 0x53c   :  { %v1823_v17 = vadd.f32 %v1821_v26, %v6851_v40  ;;  %v6856_v26 = vld [vmem:[#allocation24_spill] sm:$0xff]  ;;  %v6857_v14 = vld [vmem:[#allocation78_spill] sm:$0xff] }
 0x53d   :  { %4723 = vtanh.f32 %v1822_v42  ;;  %v6858_v42 = vld [vmem:[#allocation79_spill] sm:$0xff]  ;;  %v6859_v40 = vld [vmem:[#allocation26_spill] sm:$0xff] }
 0x53e   :  { %4725 = vtanh.f32 %v1823_v17  ;;  %v6860_v17 = vld [vmem:[#allocation28_spill] sm:$0xff] }
 0x547   :  { %v4724_v49 = vpop.eup %4723 }
 0x548   :  { %v4726_v51 = vpop.eup %4725  ;;  %v1826_v47 = vsub.f32 %v5836_v56, %v4724_v49  ;;  %v6852_v56 = vld [vmem:[#allocation20_spill] sm:$0xff] }
 0x549   :  { %v1827_v4 = vsub.f32 %v5838_v12, %v4726_v51  ;;  %v6853_v12 = vld [vmem:[#allocation76_spill] sm:$0xff] }
 0x54a   :  { %v1828_v61 = vmul.f32 %v1826_v47, %v1816_v38  ;;  %v6867_v38 = vld [vmem:[#allocation34_spill] sm:$0xff]  ;;  %v6868_v47 = vld [vmem:[#allocation36_spill] sm:$0xff] }
 0x54b   :  { %v1829_v44 = vmul.f32 %v1827_v4, %v1817_v3  ;;  %v6869_v3 = vld [vmem:[#allocation84_spill] sm:$0xff]  ;;  %v6870_v4 = vld [vmem:[#allocation85_spill] sm:$0xff] }
 0x54c   :  { %v5952_v22 = vadd.f32 %v4724_v49, %v1828_v61  ;;  %v6865_v49 = vld [vmem:[#allocation82_spill] sm:$0xff] }
 0x54d   :  { %v5954_v31 = vadd.f32 %v4726_v51, %v1829_v44  ;;  %v6866_v51 = vld [vmem:[#allocation83_spill] sm:$0xff]  ;;  %v6871_v61 = vld [vmem:[#allocation38_spill] sm:$0xff]  ;;  %v6872_v44 = vld [vmem:[#allocation40_spill] sm:$0xff] }
 0x54f   :  { %1902 = vmatprep.mubr.f32.mxu1 %v5954_v31  ;;  %1973 = vmatprep.mubr.f32.mxu0 %v5954_v31 }
 0x550   :  { %1903 = vmatmul.mubr.f32.vlgmr.msra.gmra.mrb[28].mxu1 %v5952_v22  ;;  %1974 = vmatmul.mubr.f32.vlgmr.msra.gmra.mrb[44].mxu0 %v5952_v22 }
 0x551   :  { %4001 = vmatpush1.bf16.msra.mxu1 %v6660_v50  ;;  %2044 = vmatprep.mubr.f32.mxu1 %v5954_v31 }
 0x552   :  { %4003 = vmatprep.subr.bf16.mxu1 %v6661_v23  ;;  %4065 = vmatpush1.bf16.msra.mxu0 %v4990_v54 }
 0x553   :  { %4067 = vmatprep.subr.bf16.mxu0 %v4994_v59 }
 0x555   :  { %4005 = vmatpush1.bf16.msra.mxu1 %v6662_v10 }
 0x556   :  { %4007 = vmatprep.subr.bf16.mxu1 %v6663_v63  ;;  %4069 = vmatpush1.bf16.msra.mxu0 %v5006_v6 }
 0x557   :  { %4071 = vmatprep.subr.bf16.mxu0 %v5009_v11 }
 0x559   :  { %4009 = vmatpush1.bf16.msra.mxu1 %v6664_v36 }
 0x55a   :  { %4011 = vmatprep.subr.bf16.mxu1 %v6665_v58  ;;  %4073 = vmatpush1.bf16.msra.mxu0 %v5021_v20 }
 0x55b   :  { %4075 = vmatprep.subr.bf16.mxu0 %v5024_v25 }
 0x55d   :  { %4013 = vmatpush1.bf16.msra.mxu1 %v6666_v53 }
 0x55e   :  { %4015 = vmatprep.subr.bf16.mxu1 %v6667_v37  ;;  %4077 = vmatpush1.bf16.msra.mxu0 %v5037_v34 }
 0x55f   :  { %4079 = vmatprep.subr.bf16.mxu0 %v5043_v39 }
 0x561   :  { %4017 = vmatpush1.bf16.msra.mxu1 %v6668_v29 }
 0x562   :  { %4019 = vmatprep.subr.bf16.mxu1 %v6669_v28  ;;  %4081 = vmatpush1.bf16.msra.mxu0 %v5053_v48 }
 0x563   :  { %4083 = vmatprep.subr.bf16.mxu0 %v5056_v55 }
 0x565   :  { %4021 = vmatpush1.bf16.msra.mxu1 %v5280_v57 }
 0x566   :  { %4023 = vmatprep.subr.bf16.mxu1 %v5285_v62  ;;  %4085 = vmatpush1.bf16.msra.mxu0 %v5065_v1 }
 0x567   :  { %4087 = vmatprep.subr.bf16.mxu0 %v5068_v8 }
 0x569   :  { %4025 = vmatpush1.bf16.msra.mxu1 %v5292_v32 }
 0x56a   :  { %4027 = vmatprep.subr.bf16.mxu1 %v5297_v19  ;;  %4089 = vmatpush1.bf16.msra.mxu0 %v5077_v18 }
 0x56b   :  { %4091 = vmatprep.subr.bf16.mxu0 %v5080_v24 }
 0x56d   :  { %4029 = vmatpush1.bf16.msra.mxu1 %v6670_v30 }
 0x56e   :  { %4031 = vmatprep.subr.bf16.mxu1 %v6671_v13  ;;  %4093 = vmatpush1.bf16.msra.mxu0 %v5089_v35 }
 0x56f   :  { %4095 = vmatprep.subr.bf16.mxu0 %v5094_v41 }
 0x571   :  { %4033 = vmatpush1.bf16.msra.mxu1 %v6672_v5 }
 0x572   :  { %4035 = vmatprep.subr.bf16.mxu1 %v6673_v15  ;;  %4097 = vmatpush1.bf16.msra.mxu0 %v5104_v52 }
 0x573   :  { %4099 = vmatprep.subr.bf16.mxu0 %v5109_v60 }
 0x575   :  { %4037 = vmatpush1.bf16.msra.mxu1 %v6674_v21 }
 0x576   :  { %4039 = vmatprep.subr.bf16.mxu1 %v6675_v2  ;;  %4101 = vmatpush1.bf16.msra.mxu0 %v5120_v9 }
 0x577   :  { %4103 = vmatprep.subr.bf16.mxu0 %v6852_v56 }
 0x579   :  { %4041 = vmatpush1.bf16.msra.mxu1 %v6853_v12 }
 0x57a   :  { %4043 = vmatprep.subr.bf16.mxu1 %v6854_v33  ;;  %4105 = vmatpush1.bf16.msra.mxu0 %v6855_v45 }
 0x57b   :  { %4107 = vmatprep.subr.bf16.mxu0 %v6856_v26 }
 0x57d   :  { %4045 = vmatpush1.bf16.msra.mxu1 %v6857_v14  ;;  %v6912_v14 = vld [vmem:[#allocation121_spill] sm:$0xff] }
 0x57e   :  { %4047 = vmatprep.subr.bf16.mxu1 %v6858_v42  ;;  %4109 = vmatpush1.bf16.msra.mxu0 %v6859_v40  ;;  %v6911_v42 = vld [vmem:[#allocation99_spill] sm:$0xff] }
 0x57f   :  { %4111 = vmatprep.subr.bf16.mxu0 %v6860_v17  ;;  %v6910_v17 = vld [vmem:[#allocation101_spill] sm:$0xff] }
 0x581   :  { %4049 = vmatpush1.bf16.msra.mxu1 %v6861_v0  ;;  %v6909_v0 = vld [vmem:[#allocation100_spill] sm:$0xff] }
 0x582   :  { %4051 = vmatprep.subr.bf16.mxu1 %v6862_v27  ;;  %4113 = vmatpush1.bf16.msra.mxu0 %v6863_v43  ;;  %v6873_v27 = vld [vmem:[#allocation86_spill] sm:$0xff]  ;;  %v6874_v43 = vld [vmem:[#allocation15_spill] sm:$0xff] }
 0x583   :  { %4115 = vmatprep.subr.bf16.mxu0 %v6864_v46  ;;  %v6875_v46 = vld [vmem:[#allocation42_spill] sm:$0xff] }
 0x585   :  { %4053 = vmatpush1.bf16.msra.mxu1 %v6865_v49  ;;  %v6876_v49 = vld [vmem:[#allocation44_spill] sm:$0xff] }
 0x586   :  { %4055 = vmatprep.subr.bf16.mxu1 %v6866_v51  ;;  %4117 = vmatpush1.bf16.msra.mxu0 %v6867_v38  ;;  %v6877_v38 = vld [vmem:[#allocation16_spill] sm:$0xff]  ;;  %v6887_v51 = vld [vmem:[#allocation33_spill] sm:$0xff] }
 0x587   :  { %4119 = vmatprep.subr.bf16.mxu0 %v6868_v47  ;;  %v6878_v47 = vld [vmem:[#allocation17_spill] sm:$0xff] }
 0x589   :  { %4057 = vmatpush1.bf16.msra.mxu1 %v6869_v3  ;;  %v6879_v3 = vld [vmem:[#allocation18_spill] sm:$0xff] }
 0x58a   :  { %4059 = vmatprep.subr.bf16.mxu1 %v6870_v4  ;;  %4121 = vmatpush1.bf16.msra.mxu0 %v6871_v61  ;;  %v6880_v4 = vld [vmem:[#allocation19_spill] sm:$0xff]  ;;  %v6881_v61 = vld [vmem:[#allocation21_spill] sm:$0xff] }
 0x58b   :  { %4123 = vmatprep.subr.bf16.mxu0 %v6872_v44  ;;  %v6882_v44 = vld [vmem:[#allocation23_spill] sm:$0xff] }
 0x58d   :  { %4061 = vmatpush1.bf16.msra.mxu1 %v6873_v27  ;;  %v6883_v27 = vld [vmem:[#allocation25_spill] sm:$0xff] }
 0x58e   :  { %4127 = vmatprep.subr.bf16.mxu1 %v6874_v43  ;;  %4125 = vmatpush1.bf16.msra.mxu0 %v6875_v46  ;;  %v6884_v43 = vld [vmem:[#allocation27_spill] sm:$0xff]  ;;  %v6885_v46 = vld [vmem:[#allocation29_spill] sm:$0xff] }
 0x58f   :  { %4191 = vmatprep.subr.bf16.mxu0 %v6876_v49  ;;  %v6886_v49 = vld [vmem:[#allocation31_spill] sm:$0xff] }
 0x590   :  { %2045 = vmatmul.mubr.f32.vlgmr.msra.gmra.mrb[30].mxu1 %v5952_v22 }
 0x591   :  { %4129 = vmatpush1.bf16.msra.mxu1 %v6877_v38  ;;  %v6888_v38 = vld [vmem:[#allocation35_spill] sm:$0xff] }
 0x592   :  { %4131 = vmatprep.subr.bf16.mxu1 %v6878_v47  ;;  %v6889_v47 = vld [vmem:[#allocation37_spill] sm:$0xff] }
 0x595   :  { %4133 = vmatpush1.bf16.msra.mxu1 %v6879_v3  ;;  %v6890_v3 = vld [vmem:[#allocation39_spill] sm:$0xff] }
 0x596   :  { %4135 = vmatprep.subr.bf16.mxu1 %v6880_v4  ;;  %v6891_v4 = vld [vmem:[#allocation41_spill] sm:$0xff] }
 0x599   :  { %4137 = vmatpush1.bf16.msra.mxu1 %v6881_v61  ;;  %v6892_v61 = vld [vmem:[#allocation43_spill] sm:$0xff] }
 0x59a   :  { %4139 = vmatprep.subr.bf16.mxu1 %v6882_v44  ;;  %v6893_v44 = vld [vmem:[#allocation45_spill] sm:$0xff] }
 0x59d   :  { %4141 = vmatpush1.bf16.msra.mxu1 %v6883_v27  ;;  %v6894_v27 = vld [vmem:[#allocation47_spill] sm:$0xff] }
 0x59e   :  { %4143 = vmatprep.subr.bf16.mxu1 %v6884_v43  ;;  %v6895_v43 = vld [vmem:[#allocation49_spill] sm:$0xff] }
 0x5a1   :  { %4145 = vmatpush1.bf16.msra.mxu1 %v6885_v46  ;;  %v6896_v46 = vld [vmem:[#allocation51_spill] sm:$0xff] }
 0x5a2   :  { %4147 = vmatprep.subr.bf16.mxu1 %v6886_v49  ;;  %v6897_v49 = vld [vmem:[#allocation53_spill] sm:$0xff] }
 0x5a5   :  { %4149 = vmatpush1.bf16.msra.mxu1 %v6887_v51  ;;  %v6898_v51 = vld [vmem:[#allocation55_spill] sm:$0xff] }
 0x5a6   :  { %4151 = vmatprep.subr.bf16.mxu1 %v6888_v38  ;;  %v6899_v38 = vld [vmem:[#allocation57_spill] sm:$0xff] }
 0x5a9   :  { %4153 = vmatpush1.bf16.msra.mxu1 %v6889_v47  ;;  %v6900_v47 = vld [vmem:[#allocation59_spill] sm:$0xff] }
 0x5aa   :  { %4155 = vmatprep.subr.bf16.mxu1 %v6890_v3  ;;  %v6901_v3 = vld [vmem:[#allocation61_spill] sm:$0xff] }
 0x5ad   :  { %4157 = vmatpush1.bf16.msra.mxu1 %v6891_v4  ;;  %v6902_v4 = vld [vmem:[#allocation63_spill] sm:$0xff] }
 0x5ae   :  { %4159 = vmatprep.subr.bf16.mxu1 %v6892_v61  ;;  %v6903_v61 = vld [vmem:[#allocation65_spill] sm:$0xff] }
 0x5b1   :  { %4161 = vmatpush1.bf16.msra.mxu1 %v6893_v44  ;;  %v6904_v44 = vld [vmem:[#allocation66_spill] sm:$0xff] }
 0x5b2   :  { %4163 = vmatprep.subr.bf16.mxu1 %v6894_v27  ;;  %v6905_v27 = vld [vmem:[#allocation67_spill] sm:$0xff] }
 0x5b5   :  { %4165 = vmatpush1.bf16.msra.mxu1 %v6895_v43  ;;  %v6906_v43 = vld [vmem:[#allocation68_spill] sm:$0xff] }
 0x5b6   :  { %4167 = vmatprep.subr.bf16.mxu1 %v6896_v46  ;;  %v6907_v46 = vld [vmem:[#allocation69_spill] sm:$0xff] }
 0x5b9   :  { %4169 = vmatpush1.bf16.msra.mxu1 %v6897_v49  ;;  %v6908_v49 = vld [vmem:[#allocation14_spill] sm:$0xff] }
 0x5ba   :  { %4171 = vmatprep.subr.bf16.mxu1 %v6898_v51 }
 0x5bd   :  { %4173 = vmatpush1.bf16.msra.mxu1 %v6899_v38 }
 0x5be   :  { %4175 = vmatprep.subr.bf16.mxu1 %v6900_v47 }
 0x5c1   :  { %4177 = vmatpush1.bf16.msra.mxu1 %v6901_v3 }
 0x5c2   :  { %4179 = vmatprep.subr.bf16.mxu1 %v6902_v4 }
 0x5c5   :  { %4181 = vmatpush1.bf16.msra.mxu1 %v6903_v61 }
 0x5c6   :  { %4183 = vmatprep.subr.bf16.mxu1 %v6904_v44 }
 0x5c9   :  { %4185 = vmatpush1.bf16.msra.mxu1 %v6905_v27 }
 0x5ca   :  { %4187 = vmatprep.subr.bf16.mxu1 %v6906_v43 }
 0x5cd   :  { %4189 = vmatpush1.bf16.msra.mxu1 %v6907_v46 }
 0x5ce   :  { %4255 = vmatprep.subr.bf16.mxu1 %v6908_v49 }
 0x623   :  { %v1904_v51 = vpop.f32.mrb[28].mxu1  ;;  %v1975_v38 = vpop.f32.mrb[44].mxu0 }
 0x624   :  { %v2051_v47 = vadd.f32 %v1904_v51, %v6909_v0  ;;  %v2061_v3 = vadd.f32 %v1975_v38, %v6910_v17  ;;  %v1906_v40 = vpop.f32.mrb[29].mxu1  ;;  %v1977_v4 = vpop.f32.mrb[45].mxu0 }
 0x625   :  { %v2052_v61 = vadd.f32 %v1906_v40, %v6911_v42  ;;  %v2062_v44 = vadd.f32 %v1977_v4, %v6912_v14 }
 0x626   :  { %v2053_v26 = vmul.f32 0.5, %v2051_v47  ;;  %v2063_v49 = vmul.f32 0.5, %v2061_v3  ;;  %v6914_v47 = vld [vmem:[#allocation122_spill] sm:$0xff] }
 0x627   :  { %v2054_v27 = vmul.f32 0.5, %v2052_v61  ;;  %v2064_v12 = vmul.f32 0.5, %v2062_v44 }
 0x628   :  { %4727 = vtanh.f32 %v2053_v26  ;;  %v6913_v26 = vld [vmem:[#allocation102_spill] sm:$0xff] }
 0x629   :  { %4729 = vtanh.f32 %v2054_v27 }
 0x62a   :  { %4731 = vtanh.f32 %v2063_v49 }
 0x62b   :  { %4733 = vtanh.f32 %v2064_v12 }
 0x632   :  { %v4728_v43 = vpop.eup %4727 }
 0x633   :  { %v4730_v46 = vpop.eup %4729  ;;  %v2057_v45 = vmul.f32 0.5, %v4728_v43 }
 0x634   :  { %v2058_v33 = vmul.f32 0.5, %v4730_v46  ;;  %v4732_v43 = vpop.eup %4731 }
 0x635   :  { %v2059_v0 = vadd.f32 0.5, %v2057_v45  ;;  %v4734_v46 = vpop.eup %4733  ;;  %v2067_v3 = vmul.f32 0.5, %v4732_v43  ;;  %v6924_v43 = vld [vmem:[#allocation80_spill] sm:$0xff] }
 0x636   :  { %v2060_v42 = vadd.f32 0.5, %v2058_v33  ;;  %v2068_v49 = vmul.f32 0.5, %v4734_v46  ;;  %v6925_v46 = vld [vmem:[#allocation81_spill] sm:$0xff] }
 0x638   :  { %v2070_v33 = vadd.f32 0.5, %v2068_v49  ;;  %v6927_v49 = vld [vmem:[#allocation32_spill] sm:$0xff] }
 0x663   :  { %v2046_v56 = vpop.f32.mrb[30].mxu1 }
 0x664   :  { %v2071_v17 = vadd.f32 %v2046_v56, %v5593_v7  ;;  %v2048_v51 = vpop.f32.mrb[31].mxu1  ;;  %v2069_v56 = vadd.f32 0.5, %v2067_v3  ;;  %v6926_v3 = vld [vmem:[#allocation30_spill] sm:$0xff] }
 0x665   :  { %v2072_v14 = vadd.f32 %v2048_v51, %v5597_v16 }
 0x666   :  { %v2073_v40 = vmul.f32 %v2071_v17, %v2059_v0 }
 0x667   :  { %v2074_v38 = vmul.f32 %v2072_v14, %v2060_v42  ;;  %v6917_v14 = vld [vmem:[#allocation77_spill] sm:$0xff] }
 0x668   :  { %v2075_v27 = vadd.f32 %v2073_v40, %v6913_v26  ;;  %v6918_v40 = vld [vmem:[#allocation22_spill] sm:$0xff] }
 0x669   :  { %v2076_v4 = vadd.f32 %v2074_v38, %v6914_v47  ;;  %v6919_v38 = vld [vmem:[#allocation24_spill] sm:$0xff]  ;;  %v6920_v26 = vld [vmem:[#allocation78_spill] sm:$0xff] }
 0x66a   :  { %4735 = vtanh.f32 %v2075_v27  ;;  %v6921_v27 = vld [vmem:[#allocation79_spill] sm:$0xff]  ;;  %v6922_v47 = vld [vmem:[#allocation26_spill] sm:$0xff] }
 0x66b   :  { %4737 = vtanh.f32 %v2076_v4  ;;  %v6923_v4 = vld [vmem:[#allocation28_spill] sm:$0xff] }
 0x674   :  { %v4736_v45 = vpop.eup %4735 }
 0x675   :  { %v4738_v61 = vpop.eup %4737  ;;  %v2079_v12 = vsub.f32 %v5952_v22, %v4736_v45  ;;  %v6915_v22 = vld [vmem:[#allocation20_spill] sm:$0xff] }
 0x676   :  { %v2080_v44 = vsub.f32 %v5954_v31, %v4738_v61  ;;  %v6916_v31 = vld [vmem:[#allocation76_spill] sm:$0xff] }
 0x677   :  { %v2081_v0 = vmul.f32 %v2079_v12, %v2069_v56  ;;  %v6930_v56 = vld [vmem:[#allocation34_spill] sm:$0xff]  ;;  %v6931_v12 = vld [vmem:[#allocation36_spill] sm:$0xff] }
 0x678   :  { %v2082_v17 = vmul.f32 %v2080_v44, %v2070_v33  ;;  %v6932_v33 = vld [vmem:[#allocation84_spill] sm:$0xff]  ;;  %v6933_v44 = vld [vmem:[#allocation85_spill] sm:$0xff] }
 0x679   :  { %v6068_v51 = vadd.f32 %v4736_v45, %v2081_v0  ;;  %v6928_v45 = vld [vmem:[#allocation82_spill] sm:$0xff] }
 0x67a   :  { %v6070_v42 = vadd.f32 %v4738_v61, %v2082_v17  ;;  %v6929_v61 = vld [vmem:[#allocation83_spill] sm:$0xff]  ;;  %v6934_v0 = vld [vmem:[#allocation38_spill] sm:$0xff]  ;;  %v6935_v17 = vld [vmem:[#allocation40_spill] sm:$0xff] }
 0x67c   :  { %2155 = vmatprep.mubr.f32.mxu0 %v6070_v42  ;;  %2226 = vmatprep.mubr.f32.mxu1 %v6070_v42 }
 0x67d   :  { %2156 = vmatmul.mubr.f32.vlgmr.msra.gmra.mrb[46].mxu0 %v6068_v51  ;;  %2227 = vmatmul.mubr.f32.vlgmr.msra.gmra.mrb[32].mxu1 %v6068_v51 }
 0x67e   :  { %4193 = vmatpush1.bf16.msra.mxu0 %v6660_v50  ;;  %2297 = vmatprep.mubr.f32.mxu0 %v6070_v42 }
 0x67f   :  { %4195 = vmatprep.subr.bf16.mxu0 %v6661_v23  ;;  %4257 = vmatpush1.bf16.msra.mxu1 %v4990_v54 }
 0x680   :  { %4259 = vmatprep.subr.bf16.mxu1 %v4994_v59 }
 0x682   :  { %4197 = vmatpush1.bf16.msra.mxu0 %v6662_v10 }
 0x683   :  { %4199 = vmatprep.subr.bf16.mxu0 %v6663_v63  ;;  %4261 = vmatpush1.bf16.msra.mxu1 %v5006_v6 }
 0x684   :  { %4263 = vmatprep.subr.bf16.mxu1 %v5009_v11 }
 0x686   :  { %4201 = vmatpush1.bf16.msra.mxu0 %v6664_v36 }
 0x687   :  { %4203 = vmatprep.subr.bf16.mxu0 %v6665_v58  ;;  %4265 = vmatpush1.bf16.msra.mxu1 %v5021_v20 }
 0x688   :  { %4267 = vmatprep.subr.bf16.mxu1 %v5024_v25 }
 0x68a   :  { %4205 = vmatpush1.bf16.msra.mxu0 %v6666_v53 }
 0x68b   :  { %4207 = vmatprep.subr.bf16.mxu0 %v6667_v37  ;;  %4269 = vmatpush1.bf16.msra.mxu1 %v5037_v34 }
 0x68c   :  { %4271 = vmatprep.subr.bf16.mxu1 %v5043_v39 }
 0x68e   :  { %4209 = vmatpush1.bf16.msra.mxu0 %v6668_v29 }
 0x68f   :  { %4211 = vmatprep.subr.bf16.mxu0 %v6669_v28  ;;  %4273 = vmatpush1.bf16.msra.mxu1 %v5053_v48 }
 0x690   :  { %4275 = vmatprep.subr.bf16.mxu1 %v5056_v55 }
 0x692   :  { %4213 = vmatpush1.bf16.msra.mxu0 %v5280_v57 }
 0x693   :  { %4215 = vmatprep.subr.bf16.mxu0 %v5285_v62  ;;  %4277 = vmatpush1.bf16.msra.mxu1 %v5065_v1 }
 0x694   :  { %4279 = vmatprep.subr.bf16.mxu1 %v5068_v8 }
 0x696   :  { %4217 = vmatpush1.bf16.msra.mxu0 %v5292_v32 }
 0x697   :  { %4219 = vmatprep.subr.bf16.mxu0 %v5297_v19  ;;  %4281 = vmatpush1.bf16.msra.mxu1 %v5077_v18 }
 0x698   :  { %4283 = vmatprep.subr.bf16.mxu1 %v5080_v24 }
 0x69a   :  { %4221 = vmatpush1.bf16.msra.mxu0 %v6670_v30 }
 0x69b   :  { %4223 = vmatprep.subr.bf16.mxu0 %v6671_v13  ;;  %4285 = vmatpush1.bf16.msra.mxu1 %v5089_v35 }
 0x69c   :  { %4287 = vmatprep.subr.bf16.mxu1 %v5094_v41 }
 0x69e   :  { %4225 = vmatpush1.bf16.msra.mxu0 %v6672_v5 }
 0x69f   :  { %4227 = vmatprep.subr.bf16.mxu0 %v6673_v15  ;;  %4289 = vmatpush1.bf16.msra.mxu1 %v5104_v52 }
 0x6a0   :  { %4291 = vmatprep.subr.bf16.mxu1 %v5109_v60 }
 0x6a2   :  { %4229 = vmatpush1.bf16.msra.mxu0 %v6674_v21 }
 0x6a3   :  { %4231 = vmatprep.subr.bf16.mxu0 %v6675_v2  ;;  %4293 = vmatpush1.bf16.msra.mxu1 %v5120_v9 }
 0x6a4   :  { %4295 = vmatprep.subr.bf16.mxu1 %v6915_v22 }
 0x6a6   :  { %4233 = vmatpush1.bf16.msra.mxu0 %v6916_v31 }
 0x6a7   :  { %4235 = vmatprep.subr.bf16.mxu0 %v6917_v14  ;;  %4297 = vmatpush1.bf16.msra.mxu1 %v6918_v40 }
 0x6a8   :  { %4299 = vmatprep.subr.bf16.mxu1 %v6919_v38 }
 0x6aa   :  { %4237 = vmatpush1.bf16.msra.mxu0 %v6920_v26  ;;  %v6975_v26 = vld [vmem:[#allocation119_spill] sm:$0xff] }
 0x6ab   :  { %4239 = vmatprep.subr.bf16.mxu0 %v6921_v27  ;;  %4301 = vmatpush1.bf16.msra.mxu1 %v6922_v47  ;;  %v6974_v27 = vld [vmem:[#allocation95_spill] sm:$0xff] }
 0x6ac   :  { %4303 = vmatprep.subr.bf16.mxu1 %v6923_v4  ;;  %v6973_v4 = vld [vmem:[#allocation105_spill] sm:$0xff] }
 0x6ae   :  { %4241 = vmatpush1.bf16.msra.mxu0 %v6924_v43  ;;  %v6972_v43 = vld [vmem:[#allocation104_spill] sm:$0xff] }
 0x6af   :  { %4243 = vmatprep.subr.bf16.mxu0 %v6925_v46  ;;  %4305 = vmatpush1.bf16.msra.mxu1 %v6926_v3  ;;  %v6936_v46 = vld [vmem:[#allocation86_spill] sm:$0xff]  ;;  %v6937_v3 = vld [vmem:[#allocation15_spill] sm:$0xff] }
 0x6b0   :  { %4307 = vmatprep.subr.bf16.mxu1 %v6927_v49  ;;  %v6938_v49 = vld [vmem:[#allocation42_spill] sm:$0xff] }
 0x6b2   :  { %4245 = vmatpush1.bf16.msra.mxu0 %v6928_v45  ;;  %v6939_v45 = vld [vmem:[#allocation44_spill] sm:$0xff] }
 0x6b3   :  { %4247 = vmatprep.subr.bf16.mxu0 %v6929_v61  ;;  %4309 = vmatpush1.bf16.msra.mxu1 %v6930_v56  ;;  %v6940_v56 = vld [vmem:[#allocation16_spill] sm:$0xff]  ;;  %v6950_v61 = vld [vmem:[#allocation33_spill] sm:$0xff] }
 0x6b4   :  { %4311 = vmatprep.subr.bf16.mxu1 %v6931_v12  ;;  %v6941_v12 = vld [vmem:[#allocation17_spill] sm:$0xff] }
 0x6b6   :  { %4249 = vmatpush1.bf16.msra.mxu0 %v6932_v33  ;;  %v6942_v33 = vld [vmem:[#allocation18_spill] sm:$0xff] }
 0x6b7   :  { %4251 = vmatprep.subr.bf16.mxu0 %v6933_v44  ;;  %4313 = vmatpush1.bf16.msra.mxu1 %v6934_v0  ;;  %v6943_v44 = vld [vmem:[#allocation19_spill] sm:$0xff]  ;;  %v6944_v0 = vld [vmem:[#allocation21_spill] sm:$0xff] }
 0x6b8   :  { %4315 = vmatprep.subr.bf16.mxu1 %v6935_v17  ;;  %v6945_v17 = vld [vmem:[#allocation23_spill] sm:$0xff] }
 0x6ba   :  { %4253 = vmatpush1.bf16.msra.mxu0 %v6936_v46  ;;  %v6946_v46 = vld [vmem:[#allocation25_spill] sm:$0xff] }
 0x6bb   :  { %4319 = vmatprep.subr.bf16.mxu0 %v6937_v3  ;;  %4317 = vmatpush1.bf16.msra.mxu1 %v6938_v49  ;;  %v6947_v3 = vld [vmem:[#allocation27_spill] sm:$0xff]  ;;  %v6948_v49 = vld [vmem:[#allocation29_spill] sm:$0xff] }
 0x6bc   :  { %4383 = vmatprep.subr.bf16.mxu1 %v6939_v45  ;;  %v6949_v45 = vld [vmem:[#allocation31_spill] sm:$0xff] }
 0x6bd   :  { %2298 = vmatmul.mubr.f32.vlgmr.msra.gmra.mrb[48].mxu0 %v6068_v51 }
 0x6be   :  { %4321 = vmatpush1.bf16.msra.mxu0 %v6940_v56  ;;  %v6951_v56 = vld [vmem:[#allocation35_spill] sm:$0xff] }
 0x6bf   :  { %4323 = vmatprep.subr.bf16.mxu0 %v6941_v12  ;;  %v6952_v12 = vld [vmem:[#allocation37_spill] sm:$0xff] }
 0x6c2   :  { %4325 = vmatpush1.bf16.msra.mxu0 %v6942_v33  ;;  %v6953_v33 = vld [vmem:[#allocation39_spill] sm:$0xff] }
 0x6c3   :  { %4327 = vmatprep.subr.bf16.mxu0 %v6943_v44  ;;  %v6954_v44 = vld [vmem:[#allocation41_spill] sm:$0xff] }
 0x6c6   :  { %4329 = vmatpush1.bf16.msra.mxu0 %v6944_v0  ;;  %v6955_v0 = vld [vmem:[#allocation43_spill] sm:$0xff] }
 0x6c7   :  { %4331 = vmatprep.subr.bf16.mxu0 %v6945_v17  ;;  %v6956_v17 = vld [vmem:[#allocation45_spill] sm:$0xff] }
 0x6ca   :  { %4333 = vmatpush1.bf16.msra.mxu0 %v6946_v46  ;;  %v6957_v46 = vld [vmem:[#allocation47_spill] sm:$0xff] }
 0x6cb   :  { %4335 = vmatprep.subr.bf16.mxu0 %v6947_v3  ;;  %v6958_v3 = vld [vmem:[#allocation49_spill] sm:$0xff] }
 0x6ce   :  { %4337 = vmatpush1.bf16.msra.mxu0 %v6948_v49  ;;  %v6959_v49 = vld [vmem:[#allocation51_spill] sm:$0xff] }
 0x6cf   :  { %4339 = vmatprep.subr.bf16.mxu0 %v6949_v45  ;;  %v6960_v45 = vld [vmem:[#allocation53_spill] sm:$0xff] }
 0x6d2   :  { %4341 = vmatpush1.bf16.msra.mxu0 %v6950_v61  ;;  %v6961_v61 = vld [vmem:[#allocation55_spill] sm:$0xff] }
 0x6d3   :  { %4343 = vmatprep.subr.bf16.mxu0 %v6951_v56  ;;  %v6962_v56 = vld [vmem:[#allocation57_spill] sm:$0xff] }
 0x6d6   :  { %4345 = vmatpush1.bf16.msra.mxu0 %v6952_v12  ;;  %v6963_v12 = vld [vmem:[#allocation59_spill] sm:$0xff] }
 0x6d7   :  { %4347 = vmatprep.subr.bf16.mxu0 %v6953_v33  ;;  %v6964_v33 = vld [vmem:[#allocation61_spill] sm:$0xff] }
 0x6da   :  { %4349 = vmatpush1.bf16.msra.mxu0 %v6954_v44  ;;  %v6965_v44 = vld [vmem:[#allocation63_spill] sm:$0xff] }
 0x6db   :  { %4351 = vmatprep.subr.bf16.mxu0 %v6955_v0  ;;  %v6966_v0 = vld [vmem:[#allocation65_spill] sm:$0xff] }
 0x6de   :  { %4353 = vmatpush1.bf16.msra.mxu0 %v6956_v17  ;;  %v6967_v17 = vld [vmem:[#allocation66_spill] sm:$0xff] }
 0x6df   :  { %4355 = vmatprep.subr.bf16.mxu0 %v6957_v46  ;;  %v6968_v46 = vld [vmem:[#allocation67_spill] sm:$0xff] }
 0x6e2   :  { %4357 = vmatpush1.bf16.msra.mxu0 %v6958_v3  ;;  %v6969_v3 = vld [vmem:[#allocation68_spill] sm:$0xff] }
 0x6e3   :  { %4359 = vmatprep.subr.bf16.mxu0 %v6959_v49  ;;  %v6970_v49 = vld [vmem:[#allocation69_spill] sm:$0xff] }
 0x6e6   :  { %4361 = vmatpush1.bf16.msra.mxu0 %v6960_v45  ;;  %v6971_v45 = vld [vmem:[#allocation14_spill] sm:$0xff] }
 0x6e7   :  { %4363 = vmatprep.subr.bf16.mxu0 %v6961_v61 }
 0x6ea   :  { %4365 = vmatpush1.bf16.msra.mxu0 %v6962_v56 }
 0x6eb   :  { %4367 = vmatprep.subr.bf16.mxu0 %v6963_v12 }
 0x6ee   :  { %4369 = vmatpush1.bf16.msra.mxu0 %v6964_v33 }
 0x6ef   :  { %4371 = vmatprep.subr.bf16.mxu0 %v6965_v44 }
 0x6f2   :  { %4373 = vmatpush1.bf16.msra.mxu0 %v6966_v0 }
 0x6f3   :  { %4375 = vmatprep.subr.bf16.mxu0 %v6967_v17 }
 0x6f6   :  { %4377 = vmatpush1.bf16.msra.mxu0 %v6968_v46 }
 0x6f7   :  { %4379 = vmatprep.subr.bf16.mxu0 %v6969_v3 }
 0x6fa   :  { %4381 = vmatpush1.bf16.msra.mxu0 %v6970_v49 }
 0x6fb   :  { %4447 = vmatprep.subr.bf16.mxu0 %v6971_v45 }
 0x750   :  { %v2157_v61 = vpop.f32.mrb[46].mxu0  ;;  %v2228_v56 = vpop.f32.mrb[32].mxu1 }
 0x751   :  { %v2304_v12 = vadd.f32 %v2157_v61, %v6972_v43  ;;  %v2314_v33 = vadd.f32 %v2228_v56, %v6973_v4  ;;  %v2159_v47 = vpop.f32.mrb[47].mxu0  ;;  %v2230_v44 = vpop.f32.mrb[33].mxu1 }
 0x752   :  { %v2305_v0 = vadd.f32 %v2159_v47, %v6974_v27  ;;  %v2315_v17 = vadd.f32 %v2230_v44, %v6975_v26 }
 0x753   :  { %v2306_v38 = vmul.f32 0.5, %v2304_v12  ;;  %v2316_v45 = vmul.f32 0.5, %v2314_v33  ;;  %v6977_v12 = vld [vmem:[#allocation120_spill] sm:$0xff] }
 0x754   :  { %v2307_v46 = vmul.f32 0.5, %v2305_v0  ;;  %v2317_v31 = vmul.f32 0.5, %v2315_v17 }
 0x755   :  { %4739 = vtanh.f32 %v2306_v38  ;;  %v6976_v38 = vld [vmem:[#allocation106_spill] sm:$0xff] }
 0x756   :  { %4741 = vtanh.f32 %v2307_v46 }
 0x757   :  { %4743 = vtanh.f32 %v2316_v45 }
 0x758   :  { %4745 = vtanh.f32 %v2317_v31 }
 0x75f   :  { %v4740_v3 = vpop.eup %4739 }
 0x760   :  { %v4742_v49 = vpop.eup %4741  ;;  %v2310_v40 = vmul.f32 0.5, %v4740_v3 }
 0x761   :  { %v2311_v14 = vmul.f32 0.5, %v4742_v49  ;;  %v4744_v3 = vpop.eup %4743 }
 0x762   :  { %v2312_v43 = vadd.f32 0.5, %v2310_v40  ;;  %v4746_v49 = vpop.eup %4745  ;;  %v2320_v33 = vmul.f32 0.5, %v4744_v3  ;;  %v7006_v3 = vld [vmem:[#allocation19_spill] sm:$0xff] }
 0x763   :  { %v2313_v27 = vadd.f32 0.5, %v2311_v14  ;;  %v2321_v0 = vmul.f32 0.5, %v4746_v49  ;;  %v7007_v49 = vld [vmem:[#allocation21_spill] sm:$0xff] }
 0x765   :  { %v2323_v14 = vadd.f32 0.5, %v2321_v0  ;;  %v7009_v0 = vld [vmem:[#allocation25_spill] sm:$0xff] }
 0x790   :  { %v2299_v22 = vpop.f32.mrb[48].mxu0 }
 0x791   :  { %v2324_v4 = vadd.f32 %v2299_v22, %v5593_v7  ;;  %v2301_v61 = vpop.f32.mrb[49].mxu0  ;;  %v2322_v22 = vadd.f32 0.5, %v2320_v33  ;;  %v7008_v33 = vld [vmem:[#allocation23_spill] sm:$0xff] }
 0x792   :  { %v2325_v26 = vadd.f32 %v2301_v61, %v5597_v16 }
 0x793   :  { %v2326_v47 = vmul.f32 %v2324_v4, %v2312_v43 }
 0x794   :  { %v2327_v56 = vmul.f32 %v2325_v26, %v2313_v27  ;;  %v6999_v26 = vld [vmem:[#allocation86_spill] sm:$0xff] }
 0x795   :  { %v2328_v46 = vadd.f32 %v2326_v47, %v6976_v38  ;;  %v7000_v47 = vld [vmem:[#allocation15_spill] sm:$0xff]  ;;  %v7002_v38 = vld [vmem:[#allocation44_spill] sm:$0xff] }
 0x796   :  { %v2329_v44 = vadd.f32 %v2327_v56, %v6977_v12  ;;  %v7001_v56 = vld [vmem:[#allocation42_spill] sm:$0xff]  ;;  %v7004_v12 = vld [vmem:[#allocation17_spill] sm:$0xff] }
 0x797   :  { %4747 = vtanh.f32 %v2328_v46  ;;  %v7003_v46 = vld [vmem:[#allocation16_spill] sm:$0xff] }
 0x798   :  { %4749 = vtanh.f32 %v2329_v44  ;;  %v7005_v44 = vld [vmem:[#allocation18_spill] sm:$0xff] }
 0x7a1   :  { %v4748_v40 = vpop.eup %4747 }
 0x7a2   :  { %v4750_v17 = vpop.eup %4749  ;;  %v2332_v31 = vsub.f32 %v6068_v51, %v4748_v40  ;;  %v6997_v51 = vld [vmem:[#allocation38_spill] sm:$0xff] }
 0x7a3   :  { %v2333_v45 = vsub.f32 %v6070_v42, %v4750_v17  ;;  %v6998_v42 = vld [vmem:[#allocation40_spill] sm:$0xff] }
 0x7a4   :  { %v2334_v43 = vmul.f32 %v2332_v31, %v2322_v22  ;;  %v7012_v22 = vld [vmem:[#allocation31_spill] sm:$0xff]  ;;  %v7013_v31 = vld [vmem:[#allocation33_spill] sm:$0xff] }
 0x7a5   :  { %v2335_v4 = vmul.f32 %v2333_v45, %v2323_v14  ;;  %v7014_v14 = vld [vmem:[#allocation35_spill] sm:$0xff]  ;;  %v7015_v45 = vld [vmem:[#allocation37_spill] sm:$0xff] }
 0x7a6   :  { %v6184_v61 = vadd.f32 %v4748_v40, %v2334_v43  ;;  %v7010_v40 = vld [vmem:[#allocation27_spill] sm:$0xff] }
 0x7a7   :  { %v6186_v27 = vadd.f32 %v4750_v17, %v2335_v4  ;;  %v7011_v17 = vld [vmem:[#allocation29_spill] sm:$0xff]  ;;  %v7016_v43 = vld [vmem:[#allocation39_spill] sm:$0xff] }
 0x7a8   :  { %v7017_v4 = vld [vmem:[#allocation41_spill] sm:$0xff] }
 0x7a9   :  { %2408 = vmatprep.mubr.f32.mxu1 %v6186_v27  ;;  %2479 = vmatprep.mubr.f32.mxu0 %v6186_v27 }
 0x7aa   :  { %2409 = vmatmul.mubr.f32.vlgmr.msra.gmra.mrb[34].mxu1 %v6184_v61  ;;  %2480 = vmatmul.mubr.f32.vlgmr.msra.gmra.mrb[50].mxu0 %v6184_v61 }
 0x7ab   :  { %4385 = vmatpush1.bf16.msra.mxu1 %v6660_v50  ;;  %2550 = vmatprep.mubr.f32.mxu1 %v6186_v27 }
 0x7ac   :  { %4387 = vmatprep.subr.bf16.mxu1 %v6661_v23  ;;  %4449 = vmatpush1.bf16.msra.mxu0 %v4990_v54  ;;  %v6978_v54 = vld [vmem:[#allocation20_spill] sm:$0xff] }
 0x7ad   :  { %4451 = vmatprep.subr.bf16.mxu0 %v4994_v59  ;;  %v6979_v59 = vld [vmem:[#allocation76_spill] sm:$0xff] }
 0x7af   :  { %4389 = vmatpush1.bf16.msra.mxu1 %v6662_v10 }
 0x7b0   :  { %4391 = vmatprep.subr.bf16.mxu1 %v6663_v63  ;;  %4453 = vmatpush1.bf16.msra.mxu0 %v5006_v6  ;;  %v6980_v6 = vld [vmem:[#allocation77_spill] sm:$0xff] }
 0x7b1   :  { %4455 = vmatprep.subr.bf16.mxu0 %v5009_v11  ;;  %v6981_v11 = vld [vmem:[#allocation22_spill] sm:$0xff] }
 0x7b3   :  { %4393 = vmatpush1.bf16.msra.mxu1 %v6664_v36 }
 0x7b4   :  { %4395 = vmatprep.subr.bf16.mxu1 %v6665_v58  ;;  %4457 = vmatpush1.bf16.msra.mxu0 %v5021_v20  ;;  %v6982_v20 = vld [vmem:[#allocation24_spill] sm:$0xff] }
 0x7b5   :  { %4459 = vmatprep.subr.bf16.mxu0 %v5024_v25  ;;  %v6983_v25 = vld [vmem:[#allocation78_spill] sm:$0xff] }
 0x7b7   :  { %4397 = vmatpush1.bf16.msra.mxu1 %v6666_v53 }
 0x7b8   :  { %4399 = vmatprep.subr.bf16.mxu1 %v6667_v37  ;;  %4461 = vmatpush1.bf16.msra.mxu0 %v5037_v34  ;;  %v6984_v34 = vld [vmem:[#allocation79_spill] sm:$0xff] }
 0x7b9   :  { %4463 = vmatprep.subr.bf16.mxu0 %v5043_v39  ;;  %v6985_v39 = vld [vmem:[#allocation26_spill] sm:$0xff] }
 0x7bb   :  { %4401 = vmatpush1.bf16.msra.mxu1 %v6668_v29 }
 0x7bc   :  { %4403 = vmatprep.subr.bf16.mxu1 %v6669_v28  ;;  %4465 = vmatpush1.bf16.msra.mxu0 %v5053_v48  ;;  %v6986_v48 = vld [vmem:[#allocation28_spill] sm:$0xff] }
 0x7bd   :  { %4467 = vmatprep.subr.bf16.mxu0 %v5056_v55  ;;  %v6987_v55 = vld [vmem:[#allocation80_spill] sm:$0xff] }
 0x7bf   :  { %4405 = vmatpush1.bf16.msra.mxu1 %v5280_v57 }
 0x7c0   :  { %4407 = vmatprep.subr.bf16.mxu1 %v5285_v62  ;;  %4469 = vmatpush1.bf16.msra.mxu0 %v5065_v1  ;;  %v6988_v1 = vld [vmem:[#allocation81_spill] sm:$0xff] }
 0x7c1   :  { %4471 = vmatprep.subr.bf16.mxu0 %v5068_v8  ;;  %v6989_v8 = vld [vmem:[#allocation30_spill] sm:$0xff] }
 0x7c3   :  { %4409 = vmatpush1.bf16.msra.mxu1 %v5292_v32 }
 0x7c4   :  { %4411 = vmatprep.subr.bf16.mxu1 %v5297_v19  ;;  %4473 = vmatpush1.bf16.msra.mxu0 %v5077_v18  ;;  %v6990_v18 = vld [vmem:[#allocation32_spill] sm:$0xff] }
 0x7c5   :  { %4475 = vmatprep.subr.bf16.mxu0 %v5080_v24  ;;  %v6991_v24 = vld [vmem:[#allocation82_spill] sm:$0xff] }
 0x7c7   :  { %4413 = vmatpush1.bf16.msra.mxu1 %v6670_v30 }
 0x7c8   :  { %4415 = vmatprep.subr.bf16.mxu1 %v6671_v13  ;;  %4477 = vmatpush1.bf16.msra.mxu0 %v5089_v35  ;;  %v6992_v35 = vld [vmem:[#allocation83_spill] sm:$0xff] }
 0x7c9   :  { %4479 = vmatprep.subr.bf16.mxu0 %v5094_v41  ;;  %v6993_v41 = vld [vmem:[#allocation34_spill] sm:$0xff] }
 0x7cb   :  { %4417 = vmatpush1.bf16.msra.mxu1 %v6672_v5 }
 0x7cc   :  { %4419 = vmatprep.subr.bf16.mxu1 %v6673_v15  ;;  %4481 = vmatpush1.bf16.msra.mxu0 %v5104_v52  ;;  %v6994_v52 = vld [vmem:[#allocation36_spill] sm:$0xff] }
 0x7cd   :  { %4483 = vmatprep.subr.bf16.mxu0 %v5109_v60  ;;  %v6995_v60 = vld [vmem:[#allocation84_spill] sm:$0xff] }
 0x7cf   :  { %4421 = vmatpush1.bf16.msra.mxu1 %v6674_v21 }
 0x7d0   :  { %4423 = vmatprep.subr.bf16.mxu1 %v6675_v2  ;;  %4485 = vmatpush1.bf16.msra.mxu0 %v5120_v9  ;;  %v6996_v9 = vld [vmem:[#allocation85_spill] sm:$0xff] }
 0x7d1   :  { %4487 = vmatprep.subr.bf16.mxu0 %v6978_v54  ;;  %v7018_v54 = vld [vmem:[#allocation43_spill] sm:$0xff] }
 0x7d3   :  { %4425 = vmatpush1.bf16.msra.mxu1 %v6979_v59 }
 0x7d4   :  { %4427 = vmatprep.subr.bf16.mxu1 %v6980_v6  ;;  %4489 = vmatpush1.bf16.msra.mxu0 %v6981_v11  ;;  %v7019_v11 = vld [vmem:[#allocation45_spill] sm:$0xff] }
 0x7d5   :  { %4491 = vmatprep.subr.bf16.mxu0 %v6982_v20  ;;  %v7020_v20 = vld [vmem:[#allocation47_spill] sm:$0xff] }
 0x7d7   :  { %4429 = vmatpush1.bf16.msra.mxu1 %v6983_v25 }
 0x7d8   :  { %4431 = vmatprep.subr.bf16.mxu1 %v6984_v34  ;;  %4493 = vmatpush1.bf16.msra.mxu0 %v6985_v39  ;;  %v7021_v39 = vld [vmem:[#allocation49_spill] sm:$0xff] }
 0x7d9   :  { %4495 = vmatprep.subr.bf16.mxu0 %v6986_v48  ;;  %v7022_v48 = vld [vmem:[#allocation51_spill] sm:$0xff] }
 0x7db   :  { %4433 = vmatpush1.bf16.msra.mxu1 %v6987_v55 }
 0x7dc   :  { %4435 = vmatprep.subr.bf16.mxu1 %v6988_v1  ;;  %4497 = vmatpush1.bf16.msra.mxu0 %v6989_v8  ;;  %v7023_v8 = vld [vmem:[#allocation53_spill] sm:$0xff] }
 0x7dd   :  { %4499 = vmatprep.subr.bf16.mxu0 %v6990_v18  ;;  %v7024_v18 = vld [vmem:[#allocation55_spill] sm:$0xff] }
 0x7df   :  { %4437 = vmatpush1.bf16.msra.mxu1 %v6991_v24 }
 0x7e0   :  { %4439 = vmatprep.subr.bf16.mxu1 %v6992_v35  ;;  %4501 = vmatpush1.bf16.msra.mxu0 %v6993_v41  ;;  %v7025_v41 = vld [vmem:[#allocation57_spill] sm:$0xff] }
 0x7e1   :  { %4503 = vmatprep.subr.bf16.mxu0 %v6994_v52  ;;  %v7026_v52 = vld [vmem:[#allocation59_spill] sm:$0xff] }
 0x7e3   :  { %4441 = vmatpush1.bf16.msra.mxu1 %v6995_v60 }
 0x7e4   :  { %4443 = vmatprep.subr.bf16.mxu1 %v6996_v9  ;;  %4505 = vmatpush1.bf16.msra.mxu0 %v6997_v51  ;;  %v7027_v51 = vld [vmem:[#allocation61_spill] sm:$0xff] }
 0x7e5   :  { %4507 = vmatprep.subr.bf16.mxu0 %v6998_v42  ;;  %v7028_v42 = vld [vmem:[#allocation63_spill] sm:$0xff] }
 0x7e7   :  { %4445 = vmatpush1.bf16.msra.mxu1 %v6999_v26 }
 0x7e8   :  { %4511 = vmatprep.subr.bf16.mxu1 %v7000_v47  ;;  %4509 = vmatpush1.bf16.msra.mxu0 %v7001_v56  ;;  %v7029_v47 = vld [vmem:[#allocation65_spill] sm:$0xff]  ;;  %v7030_v56 = vld [vmem:[#allocation66_spill] sm:$0xff] }
 0x7e9   :  { %4575 = vmatprep.subr.bf16.mxu0 %v7002_v38  ;;  %v7031_v38 = vld [vmem:[#allocation67_spill] sm:$0xff] }
 0x7ea   :  { %2551 = vmatmul.mubr.f32.vlgmr.msra.gmra.mrb[36].mxu1 %v6184_v61 }
 0x7eb   :  { %4513 = vmatpush1.bf16.msra.mxu1 %v7003_v46  ;;  %v7032_v46 = vld [vmem:[#allocation68_spill] sm:$0xff] }
 0x7ec   :  { %4515 = vmatprep.subr.bf16.mxu1 %v7004_v12  ;;  %v7033_v12 = vld [vmem:[#allocation69_spill] sm:$0xff] }
 0x7ef   :  { %4517 = vmatpush1.bf16.msra.mxu1 %v7005_v44 }
 0x7f0   :  { %4519 = vmatprep.subr.bf16.mxu1 %v7006_v3 }
 0x7f3   :  { %4521 = vmatpush1.bf16.msra.mxu1 %v7007_v49  ;;  %v7034_v49 = vld [vmem:[#allocation108_spill] sm:$0xff] }
 0x7f4   :  { %4523 = vmatprep.subr.bf16.mxu1 %v7008_v33 }
 0x7f7   :  { %4525 = vmatpush1.bf16.msra.mxu1 %v7009_v0  ;;  %v7035_v0 = vld [vmem:[#allocation109_spill] sm:$0xff] }
 0x7f8   :  { %4527 = vmatprep.subr.bf16.mxu1 %v7010_v40 }
 0x7fb   :  { %4529 = vmatpush1.bf16.msra.mxu1 %v7011_v17 }
 0x7fc   :  { %4531 = vmatprep.subr.bf16.mxu1 %v7012_v22 }
 0x7ff   :  { %4533 = vmatpush1.bf16.msra.mxu1 %v7013_v31  ;;  %v7036_v31 = vld [vmem:[#allocation91_spill] sm:$0xff] }
 0x800   :  { %4535 = vmatprep.subr.bf16.mxu1 %v7014_v14 }
 0x803   :  { %4537 = vmatpush1.bf16.msra.mxu1 %v7015_v45  ;;  %v7037_v45 = vld [vmem:[#allocation117_spill] sm:$0xff] }
 0x804   :  { %4539 = vmatprep.subr.bf16.mxu1 %v7016_v43 }
 0x807   :  { %4541 = vmatpush1.bf16.msra.mxu1 %v7017_v4 }
 0x808   :  { %4543 = vmatprep.subr.bf16.mxu1 %v7018_v54 }
 0x80b   :  { %4545 = vmatpush1.bf16.msra.mxu1 %v7019_v11 }
 0x80c   :  { %4547 = vmatprep.subr.bf16.mxu1 %v7020_v20 }
 0x80f   :  { %4549 = vmatpush1.bf16.msra.mxu1 %v7021_v39 }
 0x810   :  { %4551 = vmatprep.subr.bf16.mxu1 %v7022_v48 }
 0x813   :  { %4553 = vmatpush1.bf16.msra.mxu1 %v7023_v8 }
 0x814   :  { %4555 = vmatprep.subr.bf16.mxu1 %v7024_v18 }
 0x817   :  { %4557 = vmatpush1.bf16.msra.mxu1 %v7025_v41 }
 0x818   :  { %4559 = vmatprep.subr.bf16.mxu1 %v7026_v52 }
 0x81b   :  { %4561 = vmatpush1.bf16.msra.mxu1 %v7027_v51 }
 0x81c   :  { %4563 = vmatprep.subr.bf16.mxu1 %v7028_v42 }
 0x81f   :  { %4565 = vmatpush1.bf16.msra.mxu1 %v7029_v47 }
 0x820   :  { %4567 = vmatprep.subr.bf16.mxu1 %v7030_v56 }
 0x823   :  { %4569 = vmatpush1.bf16.msra.mxu1 %v7031_v38 }
 0x824   :  { %4571 = vmatprep.subr.bf16.mxu1 %v7032_v46 }
 0x827   :  { %4573 = vmatpush1.bf16.msra.mxu1 %v7033_v12  ;;  %v7038_v12 = vld [vmem:[#allocation110_spill] sm:$0xff] }
 0x87d   :  { %v2410_v44 = vpop.f32.mrb[34].mxu1  ;;  %v2481_v3 = vpop.f32.mrb[50].mxu0 }
 0x87e   :  { %v2557_v33 = vadd.f32 %v2410_v44, %v7034_v49  ;;  %v2567_v40 = vadd.f32 %v2481_v3, %v7035_v0  ;;  %v2412_v17 = vpop.f32.mrb[35].mxu1  ;;  %v2483_v22 = vpop.f32.mrb[51].mxu0  ;;  %v7039_v3 = vld [vmem:[#allocation118_spill] sm:$0xff] }
 0x87f   :  { %v2558_v14 = vadd.f32 %v2412_v17, %v7036_v31  ;;  %v2568_v43 = vadd.f32 %v2483_v22, %v7037_v45 }
 0x880   :  { %v2559_v4 = vmul.f32 0.5, %v2557_v33  ;;  %v2569_v48 = vmul.f32 0.5, %v2567_v40 }
 0x881   :  { %v2560_v54 = vmul.f32 0.5, %v2558_v14  ;;  %v2570_v18 = vmul.f32 0.5, %v2568_v43 }
 0x882   :  { %4751 = vtanh.f32 %v2559_v4 }
 0x883   :  { %4753 = vtanh.f32 %v2560_v54 }
 0x884   :  { %4755 = vtanh.f32 %v2569_v48  ;;  %v2854_v48 = vld [vmem:[#allocation9 + $0x50] sm:$0xff] }
 0x885   :  { %4757 = vtanh.f32 %v2570_v18  ;;  %v2872_v18 = vld [vmem:[#allocation9 + $0xe0] sm:$0xff] }
 0x88c   :  { %v4752_v11 = vpop.eup %4751 }
 0x88d   :  { %v4754_v20 = vpop.eup %4753  ;;  %v2563_v39 = vmul.f32 0.5, %v4752_v11 }
 0x88e   :  { %v2564_v8 = vmul.f32 0.5, %v4754_v20  ;;  %v4756_v33 = vpop.eup %4755 }
 0x88f   :  { %v2565_v52 = vadd.f32 0.5, %v2563_v39  ;;  %v4758_v0 = vpop.eup %4757  ;;  %v2573_v40 = vmul.f32 0.5, %v4756_v33 }
 0x890   :  { %v2566_v47 = vadd.f32 0.5, %v2564_v8  ;;  %v2574_v17 = vmul.f32 0.5, %v4758_v0  ;;  %v2855_v8 = vld [vmem:[#allocation9 + $0x58] sm:$0xff] }
 0x891   :  { %v2575_v14 = vadd.f32 0.5, %v2573_v40  ;;  %v7040_v40 = vld [vmem:[#allocation112_spill] sm:$0xff] }
 0x892   :  { %v2576_v43 = vadd.f32 0.5, %v2574_v17 }
 0x8bd   :  { %v2552_v41 = vpop.f32.mrb[36].mxu1 }
 0x8be   :  { %v2577_v51 = vadd.f32 %v2552_v41, %v5593_v7  ;;  %v2554_v42 = vpop.f32.mrb[37].mxu1  ;;  %v2873_v41 = vld [vmem:[#allocation9 + $0xe8] sm:$0xff] }
 0x8bf   :  { %v2578_v56 = vadd.f32 %v2554_v42, %v5597_v16  ;;  %v2856_v42 = vld [vmem:[#allocation9 + $0x60] sm:$0xff] }
 0x8c0   :  { %v2579_v38 = vmul.f32 %v2577_v51, %v2565_v52  ;;  %v4660_v52 = vpack.c.bf16 %v2855_v8, %v2854_v48  ;;  %v4662_v51 = vpack.c.bf16 %v2873_v41, %v2872_v18  ;;  %v2970_v48 = vld [vmem:[%s6371_s6] ss:$0 sm:$0xff] }
 0x8c1   :  { %v2580_v46 = vmul.f32 %v2578_v56, %v2566_v47  ;;  %v2857_v47 = vld [vmem:[#allocation9 + $0x68] sm:$0xff]  ;;  %v2874_v56 = vld [vmem:[#allocation9 + $0xf0] sm:$0xff] }
 0x8c2   :  { %v2581_v44 = vadd.f32 %v2579_v38, %v7038_v12  ;;  %v2875_v38 = vld [vmem:[#allocation9 + $0xf8] sm:$0xff] }
 0x8c3   :  { %v2582_v49 = vadd.f32 %v2580_v46, %v7039_v3  ;;  %v4664_v46 = vpack.c.bf16 %v2857_v47, %v2856_v42  ;;  %v4666_v12 = vpack.c.bf16 %v2875_v38, %v2874_v56  ;;  %v2859_v3 = vld [vmem:[#allocation9 + $0x78] sm:$0xff] }
 0x8c4   :  { %4759 = vtanh.f32 %v2581_v44  ;;  %v2858_v44 = vld [vmem:[#allocation9 + $0x70] sm:$0xff] }
 0x8c5   :  { %4761 = vtanh.f32 %v2582_v49  ;;  %v4668_v49 = vpack.c.bf16 %v2859_v3, %v2858_v44 }
 0x8ce   :  { %v4760_v22 = vpop.eup %4759 }
 0x8cf   :  { %v4762_v31 = vpop.eup %4761  ;;  %v2585_v45 = vsub.f32 %v6184_v61, %v4760_v22 }
 0x8d0   :  { %v2586_v4 = vsub.f32 %v6186_v27, %v4762_v31  ;;  %v2850_v27 = vld [vmem:[#allocation9 + $0x30] sm:$0xff] }
 0x8d1   :  { %v2587_v54 = vmul.f32 %v2585_v45, %v2575_v14 }
 0x8d2   :  { %v2588_v11 = vmul.f32 %v2586_v4, %v2576_v43  ;;  %v7042_v43 = vld [vmem:[#allocation87_spill] sm:$0xff] }
 0x8d3   :  { %v6299_v20 = vadd.f32 %v4760_v22, %v2587_v54  ;;  %v7041_v22 = vld [vmem:[#allocation113_spill] sm:$0xff]  ;;  %v7043_v54 = vld [vmem:[#allocation115_spill] sm:$0xff] }
 0x8d4   :  { %v6301_v39 = vadd.f32 %v4762_v31, %v2588_v11 }
 0x8d6   :  { %2661 = vmatprep.mubr.f32.mxu0 %v6301_v39  ;;  %2732 = vmatprep.mubr.f32.mxu1 %v6301_v39 }
 0x8d7   :  { %2662 = vmatmul.mubr.f32.vlgmr.msra.gmra.mrb[52].mxu0 %v6299_v20  ;;  %2733 = vmatmul.mubr.f32.vlgmr.msra.gmra.mrb[38].mxu1 %v6299_v20 }
 0x8d8   :  { %4577 = vmatpush1.bf16.msra.mxu0 %v6660_v50  ;;  %2803 = vmatprep.mubr.f32.mxu0 %v6301_v39  ;;  %v2845_v50 = vld [vmem:[#allocation9 + $0x8] sm:$0xff] }
 0x8d9   :  { %4579 = vmatprep.subr.bf16.mxu0 %v6661_v23  ;;  %v2862_v23 = vld [vmem:[#allocation9 + $0x90] sm:$0xff] }
 0x8dc   :  { %4581 = vmatpush1.bf16.msra.mxu0 %v6662_v10  ;;  %v2863_v10 = vld [vmem:[#allocation9 + $0x98] sm:$0xff] }
 0x8dd   :  { %4583 = vmatprep.subr.bf16.mxu0 %v6663_v63 }
 0x8e0   :  { %4585 = vmatpush1.bf16.msra.mxu0 %v6664_v36  ;;  %v4642_v36 = vpack.c.bf16 %v2863_v10, %v2862_v23 }
 0x8e1   :  { %4587 = vmatprep.subr.bf16.mxu0 %v6665_v58  ;;  %v2846_v58 = vld [vmem:[#allocation9 + $0x10] sm:$0xff] }
 0x8e4   :  { %4589 = vmatpush1.bf16.msra.mxu0 %v6666_v53  ;;  %v2847_v53 = vld [vmem:[#allocation9 + $0x18] sm:$0xff] }
 0x8e5   :  { %4591 = vmatprep.subr.bf16.mxu0 %v6667_v37  ;;  %v4644_v37 = vpack.c.bf16 %v2847_v53, %v2846_v58 }
 0x8e8   :  { %4593 = vmatpush1.bf16.msra.mxu0 %v6668_v29  ;;  %v2864_v29 = vld [vmem:[#allocation9 + $0xa0] sm:$0xff] }
 0x8e9   :  { %4595 = vmatprep.subr.bf16.mxu0 %v6669_v28  ;;  %v2865_v28 = vld [vmem:[#allocation9 + $0xa8] sm:$0xff] }
 0x8ec   :  { %4597 = vmatpush1.bf16.msra.mxu0 %v5280_v57  ;;  %v2860_v57 = vld [vmem:[#allocation9 + $0x80] sm:$0xff] }
 0x8ed   :  { %4599 = vmatprep.subr.bf16.mxu0 %v5285_v62  ;;  %v2861_v62 = vld [vmem:[#allocation9 + $0x88] sm:$0xff] }
 0x8f0   :  { %4601 = vmatpush1.bf16.msra.mxu0 %v5292_v32  ;;  %v2844_v32 = vld [vmem:[#allocation9] sm:$0xff] }
 0x8f1   :  { %4603 = vmatprep.subr.bf16.mxu0 %v5297_v19  ;;  %v4638_v19 = vpack.c.bf16 %v2861_v62, %v2860_v57  ;;  %v4640_v63 = vpack.c.bf16 %v2845_v50, %v2844_v32 }
 0x8f3   :  { %4639 = vmatprep.subr.bf16.mxu1 %v4638_v19 }
 0x8f4   :  { %4605 = vmatpush1.bf16.msra.mxu0 %v6670_v30  ;;  %4641 = vmatpush3.bf16.msra.mxu1 %v4640_v63  ;;  %v4646_v30 = vpack.c.bf16 %v2865_v28, %v2864_v29 }
 0x8f5   :  { %4607 = vmatprep.subr.bf16.mxu0 %v6671_v13  ;;  %4643 = vmatprep.subr.bf16.mxu1 %v4642_v36  ;;  %v2848_v13 = vld [vmem:[#allocation9 + $0x20] sm:$0xff] }
 0x8f8   :  { %4609 = vmatpush1.bf16.msra.mxu0 %v6672_v5  ;;  %4645 = vmatpush3.bf16.msra.mxu1 %v4644_v37  ;;  %v2849_v5 = vld [vmem:[#allocation9 + $0x28] sm:$0xff] }
 0x8f9   :  { %4611 = vmatprep.subr.bf16.mxu0 %v6673_v15  ;;  %v4648_v15 = vpack.c.bf16 %v2849_v5, %v2848_v13  ;;  %4647 = vmatprep.subr.bf16.mxu1 %v4646_v30  ;;  %v7044_v5 = vld [vmem:[#allocation114_spill] sm:$0xff] }
 0x8fc   :  { %4613 = vmatpush1.bf16.msra.mxu0 %v6674_v21  ;;  %4649 = vmatpush3.bf16.msra.mxu1 %v4648_v15  ;;  %v2866_v21 = vld [vmem:[#allocation9 + $0xb0] sm:$0xff] }
 0x8fd   :  { %4615 = vmatprep.subr.bf16.mxu0 %v6675_v2  ;;  %v2867_v2 = vld [vmem:[#allocation9 + $0xb8] sm:$0xff] }
 0x8fe   :  { %v4650_v61 = vpack.c.bf16 %v2867_v2, %v2866_v21  ;;  %v7045_v21 = vld [vmem:[#allocation116_spill] sm:$0xff] }
 0x900   :  { %4617 = vmatpush1.bf16.msra.mxu0 %v6979_v59  ;;  %v2851_v59 = vld [vmem:[#allocation9 + $0x38] sm:$0xff]  ;;  %4651 = vmatprep.subr.bf16.mxu1 %v4650_v61 }
 0x901   :  { %4619 = vmatprep.subr.bf16.mxu0 %v6980_v6  ;;  %v4652_v6 = vpack.c.bf16 %v2851_v59, %v2850_v27 }
 0x903   :  { %4653 = vmatpush3.bf16.msra.mxu1 %v4652_v6 }
 0x904   :  { %4621 = vmatpush1.bf16.msra.mxu0 %v6983_v25  ;;  %v2868_v25 = vld [vmem:[#allocation9 + $0xc0] sm:$0xff] }
 0x905   :  { %4623 = vmatprep.subr.bf16.mxu0 %v6984_v34  ;;  %v2869_v34 = vld [vmem:[#allocation9 + $0xc8] sm:$0xff] }
 0x908   :  { %4625 = vmatpush1.bf16.msra.mxu0 %v6987_v55  ;;  %v2852_v55 = vld [vmem:[#allocation9 + $0x40] sm:$0xff] }
 0x909   :  { %4627 = vmatprep.subr.bf16.mxu0 %v6988_v1  ;;  %v4654_v1 = vpack.c.bf16 %v2869_v34, %v2868_v25 }
 0x90b   :  { %4655 = vmatprep.subr.bf16.mxu1 %v4654_v1 }
 0x90c   :  { %4629 = vmatpush1.bf16.msra.mxu0 %v6991_v24  ;;  %v2853_v24 = vld [vmem:[#allocation9 + $0x48] sm:$0xff] }
 0x90d   :  { %4631 = vmatprep.subr.bf16.mxu0 %v6992_v35  ;;  %v2870_v35 = vld [vmem:[#allocation9 + $0xd0] sm:$0xff] }
 0x910   :  { %4633 = vmatpush1.bf16.msra.mxu0 %v6995_v60  ;;  %v2871_v60 = vld [vmem:[#allocation9 + $0xd8] sm:$0xff] }
 0x911   :  { %4635 = vmatprep.subr.bf16.mxu0 %v6996_v9  ;;  %v4656_v9 = vpack.c.bf16 %v2853_v24, %v2852_v55 }
 0x913   :  { %4657 = vmatpush3.bf16.msra.mxu1 %v4656_v9 }
 0x914   :  { %4637 = vmatpush1.bf16.msra.mxu0 %v6999_v26  ;;  %v4658_v26 = vpack.c.bf16 %v2871_v60, %v2870_v35 }
 0x916   :  { %4659 = vmatprep.subr.bf16.mxu1 %v4658_v26 }
 0x917   :  { %2804 = vmatmul.mubr.f32.vlgmr.msra.gmra.mrb[54].mxu0 %v6299_v20  ;;  %4661 = vmatpush3.bf16.msra.mxu1 %v4660_v52 }
 0x918   :  { %4663 = vmatprep.subr.bf16.mxu1 %v4662_v51 }
 0x91b   :  { %4665 = vmatpush3.bf16.msra.mxu1 %v4664_v46 }
 0x91c   :  { %4667 = vmatprep.subr.bf16.mxu1 %v4666_v12 }
 0x91f   :  { %4669 = vmatpush3.bf16.msra.mxu1 %v4668_v49 }
 0x9aa   :  { %v2663_v33 = vpop.f32.mrb[52].mxu0  ;;  %v2734_v0 = vpop.f32.mrb[38].mxu1 }
 0x9ab   :  { %v2810_v17 = vadd.f32 %v2663_v33, %v7040_v40  ;;  %v2820_v31 = vadd.f32 %v2734_v0, %v7041_v22  ;;  %v2665_v14 = vpop.f32.mrb[53].mxu0  ;;  %v2736_v45 = vpop.f32.mrb[39].mxu1 }
 0x9ac   :  { %v2811_v4 = vadd.f32 %v2665_v14, %v7042_v43  ;;  %v2821_v11 = vadd.f32 %v2736_v45, %v7043_v54 }
 0x9ad   :  { %v2812_v57 = vmul.f32 0.5, %v2810_v17  ;;  %v2822_v23 = vmul.f32 0.5, %v2820_v31 }
 0x9ae   :  { %v2813_v62 = vmul.f32 0.5, %v2811_v4  ;;  %v2823_v63 = vmul.f32 0.5, %v2821_v11 }
 0x9af   :  { %4763 = vtanh.f32 %v2812_v57 }
 0x9b0   :  { %4765 = vtanh.f32 %v2813_v62 }
 0x9b1   :  { %4767 = vtanh.f32 %v2822_v23 }
 0x9b2   :  { %4769 = vtanh.f32 %v2823_v63 }
 0x9b9   :  { %v4764_v32 = vpop.eup %4763 }
 0x9ba   :  { %v4766_v19 = vpop.eup %4765  ;;  %v2816_v50 = vmul.f32 0.5, %v4764_v32 }
 0x9bb   :  { %v2817_v10 = vmul.f32 0.5, %v4766_v19  ;;  %v4768_v61 = vpop.eup %4767 }
 0x9bc   :  { %v2818_v58 = vadd.f32 0.5, %v2816_v50  ;;  %v4770_v27 = vpop.eup %4769  ;;  %v2826_v59 = vmul.f32 0.5, %v4768_v61 }
 0x9bd   :  { %v2819_v29 = vadd.f32 0.5, %v2817_v10  ;;  %v2827_v6 = vmul.f32 0.5, %v4770_v27 }
 0x9bf   :  { %v2829_v1 = vadd.f32 0.5, %v2827_v6 }
 0x9ea   :  { %v2805_v36 = vpop.f32.mrb[54].mxu0 }
 0x9eb   :  { %v2830_v53 = vadd.f32 %v2805_v36, %v5593_v7  ;;  %v2807_v37 = vpop.f32.mrb[55].mxu0  ;;  %v2828_v7 = vadd.f32 0.5, %v2826_v59 }
 0x9ec   :  { %v2831_v28 = vadd.f32 %v2807_v37, %v5597_v16 }
 0x9ed   :  { %v2832_v30 = vmul.f32 %v2830_v53, %v2818_v58 }
 0x9ee   :  { %v2833_v13 = vmul.f32 %v2831_v28, %v2819_v29 }
 0x9ef   :  { %v2834_v15 = vadd.f32 %v2832_v30, %v7044_v5 }
 0x9f0   :  { %v2835_v2 = vadd.f32 %v2833_v13, %v7045_v21 }
 0x9f1   :  { %4771 = vtanh.f32 %v2834_v15 }
 0x9f2   :  { %4773 = vtanh.f32 %v2835_v2 }
 0x9fb   :  { %v4772_v25 = vpop.eup %4771 }
 0x9fc   :  { %v4774_v34 = vpop.eup %4773  ;;  %v2838_v55 = vsub.f32 %v6299_v20, %v4772_v25 }
 0x9fd   :  { %v2839_v16 = vsub.f32 %v6301_v39, %v4774_v34 }
 0x9fe   :  { %v2840_v24 = vmul.f32 %v2838_v55, %v2828_v7 }
 0x9ff   :  { %v2841_v35 = vmul.f32 %v2839_v16, %v2829_v1 }
 0xa00   :  { %v2842_v60 = vadd.f32 %v4772_v25, %v2840_v24 }
 0xa01   :  { %v2843_v9 = vadd.f32 %v4774_v34, %v2841_v35 }
 0xa03   :  { %2947 = vmatprep.mubr.f32.mxu1 %v2843_v9 }
 0xa04   :  { %2948 = vmatmul.mubr.f32.vlgmr.msra.gmra.mrb[40].mxu1 %v2842_v60 }
 0xad7   :  { %v3003_v26 = vpop.f32.mrb[40].mxu1 }
 0xad8   :  { %v3004_v8 = vpop.f32.mrb[41].mxu1 }
 0xad9   :  { %v3005_v18 = vadd.f32 %v3004_v8, %v3003_v26 }
 0xadb   :  { %v2950_v41 = vadd.f32 %v3005_v18, %v2970_v48 }
 0xadd   :  { %2953 = vst [vmem:[#allocation10] sm:$0xff] %v2950_v41 }
 0xade   :  { %4852 = shalt.err (!%p4849_p0)
}
 0xadf   :  { %s4853_s13 = scalar_lea.hbm %s6372_s7, 128 }
 0xae0   :  { %p4854_p1 = scmp.ne.s32.totalorder %s6372_s7, %s4853_s13  ;;  %p4857_p2 = scmp.lt.u32.totalorder %s4853_s13, %s6372_s7 }
 0xae2   :  { %p4859_p3 = pnand %p4857_p2, %p4854_p1 }
 0xae4   :  { %4862 = shalt.err (!%p4859_p3)
}
 0xae5   :  { %2963 = dma.vmem_to_hbm [thread:$0]  %s2961_s12, 128, %s6372_s7, [#allocation6]  }
 0xae6   :  { %4867 = dma.done.wait [#allocation6], 128  }
 0xae7   :  { %4868 = vsyncadd [#allocation6], 4294967168 }
 0xae8   :  { %2967 = vsyncpa [#allocation5], 1 }
 0xae9   :  { %2968 = vsyncpa [#allocation8], 1 }
 0xaea   :  { %2969 = vsyncpa [#allocation6], 1 }

</bundles_post_ra>
